<compile_context>
chip_gen: v7x
topology: tpu7x:2x2x1
jax: 0.10.0
libtpu: 0.0.40
codegen_flags: <defaults>
</compile_context>

<pallas_src>
import jax
import jax.numpy as jnp
from jax.experimental import pallas as pl
from jax.experimental.pallas import tpu as pltpu

TEMPERATURE = 0.07
MASK_FILL = -10.0
EPS = 1e-12          # F.normalize default eps
NEG_BIG = -1e9       # finite "-inf": exp(NEG_BIG - m_new) underflows to exactly 0
M_INIT = -1e4        # running-max init; every real logit is >= MASK_FILL/T > M_INIT


def _ntxent_body(q_ref, k_ref, mask_ref, out_ref, qn_ref, m_acc, l_acc, pos_acc,
                 *, n_real, n_half, half_blocks, use_bf16):
    """One (tile, tile) tile of the (2*N_pad, 2*N_pad) similarity matrix.

    q_ref   : (T, D_pad) f32 query-feature rows (un-normalized)
    k_ref   : (T, D_pad) f32 key-feature rows   (un-normalized)
    mask_ref: (T, T) int8 {0 keep, 1 masked_fill} or None
    out_ref : (T, 128) f32 per-row loss (broadcast over lanes), written on the
              last key block only
    qn_ref  : (T, D_pad) normalized/scaled query rows, cached per row block
    m_acc / l_acc / pos_acc : (T, 1) f32 online-LSE accumulators
    """
    qi = pl.program_id(0)
    kj = pl.program_id(1)
    n_k = pl.num_programs(1)
    tq = q_ref.shape[0]
    tk = k_ref.shape[0]

    inv_t = jnp.float32(1.0 / TEMPERATURE)
    eps2 = jnp.float32(EPS * EPS)
    has_pad = n_real != n_half          # static python bool

    @pl.when(kj == 0)
    def _init():
        # F.normalize(dim=1): x / max(||x||, eps) == x * rsqrt(max(||x||^2, eps^2))
        # 1/temperature is folded into the query-side scale (EUP rsqrt, no divide).
        q = q_ref[...]
        q_ss = jnp.sum(q * q, axis=1, keepdims=True)
        qn = q * (jax.lax.rsqrt(jnp.maximum(q_ss, eps2)) * inv_t)
        qn_ref[...] = qn.astype(qn_ref.dtype)
        m_acc[...] = jnp.full_like(m_acc, M_INIT)
        l_acc[...] = jnp.zeros_like(l_acc)
        pos_acc[...] = jnp.zeros_like(pos_acc)

    k = k_ref[...]
    k_ss = jnp.sum(k * k, axis=1, keepdims=True)
    kn = (k * jax.lax.rsqrt(jnp.maximum(k_ss, eps2))).astype(qn_ref.dtype)

    # NT-form matmul: contract the feature (last) dim of both operands (no
    # explicit transpose through the XLU).  f32 path asks for full precision;
    # the bf16 path trades ~2x MXU throughput for loosened tolerance.
    precision = None if use_bf16 else jax.lax.Precision.HIGHEST
    logits = jax.lax.dot_general(
        qn_ref[...], kn,
        dimension_numbers=(((1,), (1,)), ((), ())),
        precision=precision,
        preferred_element_type=jnp.float32)            # (tq, tk), already / T

    if mask_ref is not None:
        # masked_fill happens BEFORE the /T in torch, so the constant is scaled.
        fill = mask_ref[...] != 0
        logits = jnp.where(fill, jnp.float32(MASK_FILL / TEMPERATURE), logits)

    # --- positive term: row r's positive column is r +/- N_pad, so it sits on
    # the LOCAL diagonal of exactly one key block per row sweep. ---
    pos_kj = (qi + half_blocks) % (2 * half_blocks)

    @pl.when(kj == pos_kj)
    def _positives():
        loc_diag = (jax.lax.broadcasted_iota(jnp.int32, (tq, tk), 0)
                    == jax.lax.broadcasted_iota(jnp.int32, (tq, tk), 1))
        # fill-applied value is used if the mask hits the positive, matching
        # torch's masked_fill-then-gather semantics.
        pos_acc[...] = jnp.sum(jnp.where(loc_diag, logits, jnp.float32(0.0)),
                               axis=1, keepdims=True)

    # --- online log-sum-exp over key blocks ---
    def lse_update(tile_logits):
        tile_max = jnp.max(tile_logits, axis=1, keepdims=True)
        m_new = jnp.maximum(m_acc[...], tile_max)
        alpha = jnp.exp(m_acc[...] - m_new)
        p_sum = jnp.sum(jnp.exp(tile_logits - m_new), axis=1, keepdims=True)
        l_acc[...] = alpha * l_acc[...] + p_sum
        m_acc[...] = m_new

    # Diagonal entries only live in the qi == kj tile; padded columns only in
    # the last key block of each view.  Only those tiles pay for the masking.
    needs_mask = qi == kj
    if has_pad:
        needs_mask = jnp.logical_or(needs_mask,
                                    (kj % half_blocks) == half_blocks - 1)

    @pl.when(needs_mask)
    def _masked_update():
        row = qi * tq + jax.lax.broadcasted_iota(jnp.int32, (tq, 1), 0)
        col = kj * tk + jax.lax.broadcasted_iota(jnp.int32, (1, tk), 1)
        invalid = row == col                           # self-similarity diagonal
        if has_pad:
            col_in_view = ((kj % half_blocks) * tk
                           + jax.lax.broadcasted_iota(jnp.int32, (1, tk), 1))
            invalid = jnp.logical_or(invalid, col_in_view >= n_real)
        # M_INIT > NEG_BIG + 104 guarantees exp(NEG_BIG - m_new) == 0 exactly,
        # even for tiles whose rows are fully masked.
        lse_update(jnp.where(invalid, jnp.float32(NEG_BIG), logits))

    @pl.when(jnp.logical_not(needs_mask))
    def _plain_update():
        lse_update(logits)

    @pl.when(kj == n_k - 1)
    def _finalize():
        per_row = m_acc[...] + jnp.log(l_acc[...]) - pos_acc[...]    # (tq, 1)
        out_ref[...] = jnp.broadcast_to(per_row, out_ref.shape)      # lane-dense


def _make_kernel(has_mask, **static):
    if has_mask:
        def kernel(q_ref, k_ref, mask_ref, out_ref, qn_ref, m_acc, l_acc, pos_acc):
            _ntxent_body(q_ref, k_ref, mask_ref, out_ref, qn_ref,
                         m_acc, l_acc, pos_acc, **static)
    else:
        def kernel(q_ref, k_ref, out_ref, qn_ref, m_acc, l_acc, pos_acc):
            _ntxent_body(q_ref, k_ref, None, out_ref, qn_ref,
                         m_acc, l_acc, pos_acc, **static)
    return kernel


def _pick_tile(n, d_pad):
    """Largest tile (512/256/128) with <=25% row-padding waste and a VMEM
    footprint that fits comfortably under the default scoped limit."""
    for t in (512, 256, 128):
        n_pad = -(-n // t) * t
        waste = (n_pad - n) / max(n, 1)
        # double-buffered q/k/mask input blocks + out block + q-norm scratch
        vmem = 2 * (2 * t * d_pad * 4 + t * t) + 2 * t * 128 * 4 + t * d_pad * 4
        if waste <= 0.25 and vmem <= 10 * 1024 * 1024:
            return t
    return 128


def ntxent_loss(z1, z2, batch_mask=None, *, tile=None, use_bf16_matmul=False):
    """NT-Xent forward (matches NTXentLoss.forward)."""
    n, d = z1.shape
    d_pad = pl.cdiv(d, 128) * 128
    if tile is None:
        tile = _pick_tile(n, d_pad)
    n_pad = pl.cdiv(n, tile) * tile
    two_n_pad = 2 * n_pad
    half_blocks = n_pad // tile

    # Zero-padding D does not change norms or dot products; padded rows/cols
    # are excluded in-kernel (columns) and in the wrapper mean (rows).
    z1p = jnp.pad(z1.astype(jnp.float32), ((0, n_pad - n), (0, d_pad - d)))
    z2p = jnp.pad(z2.astype(jnp.float32), ((0, n_pad - n), (0, d_pad - d)))
    feats = jnp.concatenate([z1p, z2p], axis=0)            # (2*n_pad, d_pad)

    has_mask = batch_mask is not None
    feat_dtype = jnp.bfloat16 if use_bf16_matmul else jnp.float32

    in_specs = [
        # query rows of the feature matrix (resident across the kj sweep)
        pl.BlockSpec((tile, d_pad), lambda qi, kj: (qi, 0)),
        # key rows of the feature matrix
        pl.BlockSpec((tile, d_pad), lambda qi, kj: (kj, 0)),
    ]
    args = [feats, feats]
    if has_mask:
        core = jnp.asarray(batch_mask).astype(bool).astype(jnp.int8)
        mask = jnp.pad(core, ((0, n_pad - n), (0, n_pad - n)))
        # batch_mask tile: repeat(2, 2) realized via modular block indexing
        in_specs.append(pl.BlockSpec(
            (tile, tile), lambda qi, kj: (qi % half_blocks, kj % half_blocks)))
        args.append(mask)

    kernel = _make_kernel(has_mask, n_real=n, n_half=n_pad,
                          half_blocks=half_blocks, use_bf16=use_bf16_matmul)

    per_row = pl.pallas_call(
        kernel,
        out_shape=jax.ShapeDtypeStruct((two_n_pad, 128), jnp.float32),
        grid=(two_n_pad // tile, two_n_pad // tile),
        in_specs=in_specs,
        out_specs=pl.BlockSpec((tile, 128), lambda qi, kj: (qi, 0)),
        scratch_shapes=[
            pltpu.VMEM((tile, d_pad), feat_dtype),   # normalized query rows
            pltpu.VMEM((tile, 1), jnp.float32),      # running max
            pltpu.VMEM((tile, 1), jnp.float32),      # running sum
            pltpu.VMEM((tile, 1), jnp.float32),      # positive logit
        ],
        compiler_params=pltpu.CompilerParams(
            dimension_semantics=("parallel", "arbitrary")),
    )(*args)

    per_row = per_row[:, 0]
    total = jnp.sum(per_row[:n]) + jnp.sum(per_row[n_pad:n_pad + n])
    return total / jnp.float32(2 * n)


def ntxent_loss_ref(z1, z2, batch_mask=None):
    """Pure-JAX reference mirroring the PyTorch module, for validation."""
    n = z1.shape[0]
    feats = jnp.concatenate([z1, z2], axis=0).astype(jnp.float32)
    norm = jnp.sqrt(jnp.sum(feats * feats, axis=1, keepdims=True))
    feats = feats / jnp.maximum(norm, EPS)
    sim = jnp.matmul(feats, feats.T, precision=jax.lax.Precision.HIGHEST)
    if batch_mask is not None:
        expanded = jnp.tile(jnp.asarray(batch_mask).astype(bool), (2, 2))
        sim = jnp.where(expanded, MASK_FILL, sim)
    two_n = 2 * n
    idx = jnp.arange(two_n)
    diag = idx[:, None] == idx[None, :]
    pos_mask = jnp.logical_and((idx[:, None] % n) == (idx[None, :] % n),
                               jnp.logical_not(diag))
    logits = sim / TEMPERATURE
    masked = jnp.where(diag, -jnp.inf, logits)
    lse = jax.scipy.special.logsumexp(masked, axis=1)
    pos = jnp.sum(jnp.where(pos_mask, logits, 0.0), axis=1)
    return jnp.mean(lse - pos)


if __name__ == "__main__":
    key = jax.random.PRNGKey(0)
    keys = jax.random.split(key, 9)

    # small case matching the module's (N, D) inputs
    N, D = 8, 32
    z1 = jax.random.normal(keys[0], (N, D), dtype=jnp.float32)
    z2 = jax.random.normal(keys[1], (N, D), dtype=jnp.float32)

    # no-mask case
    loss = ntxent_loss(z1, z2)
    jax.block_until_ready(loss)
    ref = ntxent_loss_ref(z1, z2)
    assert jnp.allclose(loss, ref, atol=2e-3, rtol=2e-3), (loss, ref)

    # with a batch_mask (spatial-loss path)
    batch_mask = jax.random.uniform(keys[2], (N, N)) > 0.7
    loss_m = ntxent_loss(z1, z2, batch_mask)
    jax.block_until_ready(loss_m)
    ref_m = ntxent_loss_ref(z1, z2, batch_mask)
    assert jnp.allclose(loss_m, ref_m, atol=2e-3, rtol=2e-3), (loss_m, ref_m)

    # odd, unaligned sizes: padding + multi-block online-LSE + mask tiling,
    # exercises both masked and plain LSE-update paths.
    N2, D2 = 200, 96
    z1b = jax.random.normal(keys[3], (N2, D2), dtype=jnp.float32)
    z2b = jax.random.normal(keys[4], (N2, D2), dtype=jnp.float32)
    mask_b = jax.random.uniform(keys[5], (N2, N2)) > 0.8
    loss_b = ntxent_loss(z1b, z2b, mask_b)
    jax.block_until_ready(loss_b)
    ref_b = ntxent_loss_ref(z1b, z2b, mask_b)
    assert jnp.allclose(loss_b, ref_b, atol=2e-3, rtol=2e-3), (loss_b, ref_b)

    # same sizes without a mask (mask operand dropped entirely)
    loss_b0 = ntxent_loss(z1b, z2b)
    jax.block_until_ready(loss_b0)
    ref_b0 = ntxent_loss_ref(z1b, z2b)
    assert jnp.allclose(loss_b0, ref_b0, atol=2e-3, rtol=2e-3), (loss_b0, ref_b0)

    # aligned size exercising the larger adaptive tile (no-padding path)
    N3, D3 = 256, 128
    z1c = jax.random.normal(keys[6], (N3, D3), dtype=jnp.float32)
    z2c = jax.random.normal(keys[7], (N3, D3), dtype=jnp.float32)
    mask_c = jax.random.uniform(keys[8], (N3, N3)) > 0.9
    loss_c = ntxent_loss(z1c, z2c, mask_c)
    jax.block_until_ready(loss_c)
    ref_c = ntxent_loss_ref(z1c, z2c, mask_c)
    assert jnp.allclose(loss_c, ref_c, atol=2e-3, rtol=2e-3), (loss_c, ref_c)

    print("KERNEL_OK")
</pallas_src>

<mosaic_0001>
module attributes {stable_mosaic.version = 11 : i64} {
  func.func @kernel(%arg0: i32, %arg1: i32, %arg2: memref<128x128xf32, #tpu.memory_space<vmem>>, %arg3: memref<128x128xf32, #tpu.memory_space<vmem>>, %arg4: memref<128x128xf32, #tpu.memory_space<vmem>>, %arg5: memref<128x128xf32, #tpu.memory_space<vmem>>, %arg6: memref<128x1xf32, #tpu.memory_space<vmem>>, %arg7: memref<128x1xf32, #tpu.memory_space<vmem>>, %arg8: memref<128x1xf32, #tpu.memory_space<vmem>>) attributes {dimension_semantics = [#tpu.dimension_semantics<parallel>, #tpu.dimension_semantics<arbitrary>], iteration_bounds = array<i64: 2, 2>, scalar_prefetch = 0 : i64, scratch_operands = 4 : i64, tpu.core_type = #tpu.core_type<tc>, window_params = [{transform_indices = @transform_0, window_bounds = array<i64: 128, 128>}, {transform_indices = @transform_1, window_bounds = array<i64: 128, 128>}, {transform_indices = @transform_2, window_bounds = array<i64: 128, 128>}]} {
    %c0_i32 = arith.constant 0 : i32
    %0 = arith.cmpi eq, %arg1, %c0_i32 : i32
    %1 = arith.extui %0 : i1 to i32
    %cst = arith.constant 1.000000e-24 : f32
    %cst_0 = arith.constant 14.2857141 : f32
    %c0_i32_1 = arith.constant 0 : i32
    %2 = arith.cmpi ne, %1, %c0_i32_1 : i32
    scf.if %2 {
      %c0_25 = arith.constant 0 : index
      %c0_26 = arith.constant 0 : index
      %49 = vector.load %arg2[%c0_25, %c0_26] : memref<128x128xf32, #tpu.memory_space<vmem>>, vector<128x128xf32>
      %50 = arith.mulf %49, %49 : vector<128x128xf32>
      %cst_27 = arith.constant dense<0.000000e+00> : vector<128xf32>
      %51 = vector.multi_reduction <add>, %50, %cst_27 [1] : vector<128x128xf32> to vector<128xf32>
      %52 = vector.shape_cast %51 : vector<128xf32> to vector<128x1xf32>
      %53 = vector.broadcast %cst : f32 to vector<128x1xf32>
      %54 = arith.maximumf %52, %53 : vector<128x1xf32>
      %55 = math.rsqrt %54 : vector<128x1xf32>
      %56 = vector.broadcast %cst_0 : f32 to vector<128x1xf32>
      %57 = arith.mulf %55, %56 : vector<128x1xf32>
      %58 = vector.broadcast %57 : vector<128x1xf32> to vector<128x128xf32>
      %59 = arith.mulf %49, %58 : vector<128x128xf32>
      %c0_28 = arith.constant 0 : index
      %c0_29 = arith.constant 0 : index
      %60 = vector.load %arg5[%c0_28, %c0_29] : memref<128x128xf32, #tpu.memory_space<vmem>>, vector<128x128xf32>
      tpu.vector_store %arg5[%c0_28, %c0_29], %59 {strides = array<i32>} : memref<128x128xf32, #tpu.memory_space<vmem>>, vector<128x128xf32>,
      %cst_30 = arith.constant -1.000000e+04 : f32
      %61 = vector.broadcast %cst_30 : f32 to vector<128x1xf32>
      %c0_31 = arith.constant 0 : index
      %c0_32 = arith.constant 0 : index
      %62 = vector.load %arg6[%c0_31, %c0_32] : memref<128x1xf32, #tpu.memory_space<vmem>>, vector<128x1xf32>
      tpu.vector_store %arg6[%c0_31, %c0_32], %61 {strides = array<i32>} : memref<128x1xf32, #tpu.memory_space<vmem>>, vector<128x1xf32>,
      %cst_33 = arith.constant 0.000000e+00 : f32
      %63 = vector.broadcast %cst_33 : f32 to vector<128x1xf32>
      %c0_34 = arith.constant 0 : index
      %c0_35 = arith.constant 0 : index
      %64 = vector.load %arg7[%c0_34, %c0_35] : memref<128x1xf32, #tpu.memory_space<vmem>>, vector<128x1xf32>
      tpu.vector_store %arg7[%c0_34, %c0_35], %63 {strides = array<i32>} : memref<128x1xf32, #tpu.memory_space<vmem>>, vector<128x1xf32>,
      %cst_36 = arith.constant 0.000000e+00 : f32
      %65 = vector.broadcast %cst_36 : f32 to vector<128x1xf32>
      %c0_37 = arith.constant 0 : index
      %c0_38 = arith.constant 0 : index
      %66 = vector.load %arg8[%c0_37, %c0_38] : memref<128x1xf32, #tpu.memory_space<vmem>>, vector<128x1xf32>
      tpu.vector_store %arg8[%c0_37, %c0_38], %65 {strides = array<i32>} : memref<128x1xf32, #tpu.memory_space<vmem>>, vector<128x1xf32>,
    } else {
    }
    %c0 = arith.constant 0 : index
    %c0_2 = arith.constant 0 : index
    %3 = vector.load %arg3[%c0, %c0_2] : memref<128x128xf32, #tpu.memory_space<vmem>>, vector<128x128xf32>
    %4 = arith.mulf %3, %3 : vector<128x128xf32>
    %cst_3 = arith.constant dense<0.000000e+00> : vector<128xf32>
    %5 = vector.multi_reduction <add>, %4, %cst_3 [1] : vector<128x128xf32> to vector<128xf32>
    %6 = vector.shape_cast %5 : vector<128xf32> to vector<128x1xf32>
    %cst_4 = arith.constant 1.000000e-24 : f32
    %7 = vector.broadcast %cst_4 : f32 to vector<128x1xf32>
    %8 = arith.maximumf %6, %7 : vector<128x1xf32>
    %9 = math.rsqrt %8 : vector<128x1xf32>
    %10 = vector.broadcast %9 : vector<128x1xf32> to vector<128x128xf32>
    %11 = arith.mulf %3, %10 : vector<128x128xf32>
    %c0_5 = arith.constant 0 : index
    %c0_6 = arith.constant 0 : index
    %12 = vector.load %arg5[%c0_5, %c0_6] : memref<128x128xf32, #tpu.memory_space<vmem>>, vector<128x128xf32>
    %cst_7 = arith.constant dense<0.000000e+00> : vector<128x128xf32>
    %13 = tpu.matmul %12, %11, %cst_7 {dimension_numbers = #tpu.dot_dimension_numbers<[1], [1], [0], [0], [0, 0, 1, 0], [], []>, precision = #tpu.contract_precision<fp32>} : vector<128x128xf32>, vector<128x128xf32>, vector<128x128xf32> -> vector<128x128xf32>
    %c1_i32 = arith.constant 1 : i32
    %14 = arith.addi %arg0, %c1_i32 : i32
    %c2_i32 = arith.constant 2 : i32
    %c0_i32_8 = arith.constant 0 : i32
    %15 = arith.cmpi eq, %c2_i32, %c0_i32_8 : i32
    %c1_i32_9 = arith.constant 1 : i32
    %16 = arith.select %15, %c1_i32_9, %c2_i32 : i32
    %17 = arith.remsi %14, %16 : i32
    %c0_i32_10 = arith.constant 0 : i32
    %18 = arith.cmpi ne, %17, %c0_i32_10 : i32
    %c0_i32_11 = arith.constant 0 : i32
    %19 = arith.cmpi slt, %17, %c0_i32_11 : i32
    %c0_i32_12 = arith.constant 0 : i32
    %20 = arith.cmpi slt, %16, %c0_i32_12 : i32
    %21 = arith.xori %19, %20 : i1
    %22 = arith.andi %21, %18 : i1
    %23 = arith.addi %17, %16 : i32
    %24 = arith.select %22, %23, %17 : i32
    %25 = arith.cmpi eq, %arg1, %24 : i32
    %26 = arith.extui %25 : i1 to i32
    %c0_i32_13 = arith.constant 0 : i32
    %27 = arith.cmpi ne, %26, %c0_i32_13 : i32
    scf.if %27 {
      %49 = tpu.iota {dimensions = array<i32: 0>} : vector<128x128xi32>
      %50 = tpu.iota {dimensions = array<i32: 1>} : vector<128x128xi32>
      %51 = arith.cmpi eq, %49, %50 : vector<128x128xi32>
      %cst_25 = arith.constant 0.000000e+00 : f32
      %52 = vector.broadcast %cst_25 : f32 to vector<128x128xf32>
      %53 = arith.select %51, %13, %52 : vector<128x128xi1>, vector<128x128xf32>
      %cst_26 = arith.constant dense<0.000000e+00> : vector<128xf32>
      %54 = vector.multi_reduction <add>, %53, %cst_26 [1] : vector<128x128xf32> to vector<128xf32>
      %55 = vector.shape_cast %54 : vector<128xf32> to vector<128x1xf32>
      %c0_27 = arith.constant 0 : index
      %c0_28 = arith.constant 0 : index
      %56 = vector.load %arg8[%c0_27, %c0_28] : memref<128x1xf32, #tpu.memory_space<vmem>>, vector<128x1xf32>
      tpu.vector_store %arg8[%c0_27, %c0_28], %55 {strides = array<i32>} : memref<128x1xf32, #tpu.memory_space<vmem>>, vector<128x1xf32>,
    } else {
    }
    %28 = arith.cmpi eq, %arg0, %arg1 : i32
    %c1_i32_14 = arith.constant 1 : i32
    %c0_i32_15 = arith.constant 0 : i32
    %29 = arith.cmpi eq, %c1_i32_14, %c0_i32_15 : i32
    %c1_i32_16 = arith.constant 1 : i32
    %30 = arith.select %29, %c1_i32_16, %c1_i32_14 : i32
    %31 = arith.remsi %arg1, %30 : i32
    %c0_i32_17 = arith.constant 0 : i32
    %32 = arith.cmpi ne, %31, %c0_i32_17 : i32
    %c0_i32_18 = arith.constant 0 : i32
    %33 = arith.cmpi slt, %31, %c0_i32_18 : i32
    %c0_i32_19 = arith.constant 0 : i32
    %34 = arith.cmpi slt, %30, %c0_i32_19 : i32
    %35 = arith.xori %33, %34 : i1
    %36 = arith.andi %35, %32 : i1
    %37 = arith.addi %31, %30 : i32
    %38 = arith.select %36, %37, %31 : i32
    %c0_i32_20 = arith.constant 0 : i32
    %39 = arith.cmpi eq, %38, %c0_i32_20 : i32
    %40 = arith.ori %28, %39 : i1
    %41 = arith.extui %40 : i1 to i32
    %c0_i32_21 = arith.constant 0 : i32
    %42 = arith.cmpi ne, %41, %c0_i32_21 : i32
    scf.if %42 {
      %c128_i32 = arith.constant 128 : i32
      %49 = arith.muli %arg0, %c128_i32 : i32
      %50 = tpu.iota {dimensions = array<i32: 0>} : vector<128x1xi32>
      %51 = vector.broadcast %49 : i32 to vector<128x1xi32>
      %52 = arith.addi %51, %50 : vector<128x1xi32>
      %c128_i32_25 = arith.constant 128 : i32
      %53 = arith.muli %arg1, %c128_i32_25 : i32
      %54 = tpu.iota {dimensions = array<i32: 1>} : vector<1x128xi32>
      %55 = vector.broadcast %53 : i32 to vector<1x128xi32>
      %56 = arith.addi %55, %54 : vector<1x128xi32>
      %57 = vector.broadcast %52 : vector<128x1xi32> to vector<128x128xi32>
      %58 = vector.broadcast %56 : vector<1x128xi32> to vector<128x128xi32>
      %59 = arith.cmpi eq, %57, %58 : vector<128x128xi32>
      %c1_i32_26 = arith.constant 1 : i32
      %c0_i32_27 = arith.constant 0 : i32
      %60 = arith.cmpi eq, %c1_i32_26, %c0_i32_27 : i32
      %c1_i32_28 = arith.constant 1 : i32
      %61 = arith.select %60, %c1_i32_28, %c1_i32_26 : i32
      %62 = arith.remsi %arg1, %61 : i32
      %c0_i32_29 = arith.constant 0 : i32
      %63 = arith.cmpi ne, %62, %c0_i32_29 : i32
      %c0_i32_30 = arith.constant 0 : i32
      %64 = arith.cmpi slt, %62, %c0_i32_30 : i32
      %c0_i32_31 = arith.constant 0 : i32
      %65 = arith.cmpi slt, %61, %c0_i32_31 : i32
      %66 = arith.xori %64, %65 : i1
      %67 = arith.andi %66, %63 : i1
      %68 = arith.addi %62, %61 : i32
      %69 = arith.select %67, %68, %62 : i32
      %c128_i32_32 = arith.constant 128 : i32
      %70 = arith.muli %69, %c128_i32_32 : i32
      %71 = tpu.iota {dimensions = array<i32: 1>} : vector<1x128xi32>
      %72 = vector.broadcast %70 : i32 to vector<1x128xi32>
      %73 = arith.addi %72, %71 : vector<1x128xi32>
      %c8_i32 = arith.constant 8 : i32
      %74 = vector.broadcast %c8_i32 : i32 to vector<1x128xi32>
      %75 = arith.cmpi sge, %73, %74 : vector<1x128xi32>
      %76 = vector.broadcast %75 : vector<1x128xi1> to vector<128x128xi1>
      %77 = arith.ori %59, %76 : vector<128x128xi1>
      %cst_33 = arith.constant -1.000000e+09 : f32
      %78 = vector.broadcast %cst_33 : f32 to vector<128x128xf32>
      %79 = arith.select %77, %78, %13 : vector<128x128xi1>, vector<128x128xf32>
      %cst_34 = arith.constant dense<0xFF800000> : vector<128xf32>
      %80 = vector.multi_reduction <maximumf>, %79, %cst_34 [1] : vector<128x128xf32> to vector<128xf32>
      %81 = vector.shape_cast %80 : vector<128xf32> to vector<128x1xf32>
      %c0_35 = arith.constant 0 : index
      %c0_36 = arith.constant 0 : index
      %82 = vector.load %arg6[%c0_35, %c0_36] : memref<128x1xf32, #tpu.memory_space<vmem>>, vector<128x1xf32>
      %83 = arith.maximumf %82, %81 : vector<128x1xf32>
      %c0_37 = arith.constant 0 : index
      %c0_38 = arith.constant 0 : index
      %84 = vector.load %arg6[%c0_37, %c0_38] : memref<128x1xf32, #tpu.memory_space<vmem>>, vector<128x1xf32>
      %85 = arith.subf %84, %83 : vector<128x1xf32>
      %86 = math.exp %85 : vector<128x1xf32>
      %87 = vector.broadcast %83 : vector<128x1xf32> to vector<128x128xf32>
      %88 = arith.subf %79, %87 : vector<128x128xf32>
      %89 = math.exp %88 : vector<128x128xf32>
      %cst_39 = arith.constant dense<0.000000e+00> : vector<128xf32>
      %90 = vector.multi_reduction <add>, %89, %cst_39 [1] : vector<128x128xf32> to vector<128xf32>
      %91 = vector.shape_cast %90 : vector<128xf32> to vector<128x1xf32>
      %c0_40 = arith.constant 0 : index
      %c0_41 = arith.constant 0 : index
      %92 = vector.load %arg7[%c0_40, %c0_41] : memref<128x1xf32, #tpu.memory_space<vmem>>, vector<128x1xf32>
      %93 = arith.mulf %86, %92 : vector<128x1xf32>
      %94 = arith.addf %93, %91 : vector<128x1xf32>
      %c0_42 = arith.constant 0 : index
      %c0_43 = arith.constant 0 : index
      %95 = vector.load %arg7[%c0_42, %c0_43] : memref<128x1xf32, #tpu.memory_space<vmem>>, vector<128x1xf32>
      tpu.vector_store %arg7[%c0_42, %c0_43], %94 {strides = array<i32>} : memref<128x1xf32, #tpu.memory_space<vmem>>, vector<128x1xf32>,
      %c0_44 = arith.constant 0 : index
      %c0_45 = arith.constant 0 : index
      %96 = vector.load %arg6[%c0_44, %c0_45] : memref<128x1xf32, #tpu.memory_space<vmem>>, vector<128x1xf32>
      tpu.vector_store %arg6[%c0_44, %c0_45], %83 {strides = array<i32>} : memref<128x1xf32, #tpu.memory_space<vmem>>, vector<128x1xf32>,
    } else {
    }
    %true = arith.constant true
    %43 = arith.xori %40, %true : i1
    %44 = arith.extui %43 : i1 to i32
    %c0_i32_22 = arith.constant 0 : i32
    %45 = arith.cmpi ne, %44, %c0_i32_22 : i32
    scf.if %45 {
      %cst_25 = arith.constant dense<0xFF800000> : vector<128xf32>
      %49 = vector.multi_reduction <maximumf>, %13, %cst_25 [1] : vector<128x128xf32> to vector<128xf32>
      %50 = vector.shape_cast %49 : vector<128xf32> to vector<128x1xf32>
      %c0_26 = arith.constant 0 : index
      %c0_27 = arith.constant 0 : index
      %51 = vector.load %arg6[%c0_26, %c0_27] : memref<128x1xf32, #tpu.memory_space<vmem>>, vector<128x1xf32>
      %52 = arith.maximumf %51, %50 : vector<128x1xf32>
      %c0_28 = arith.constant 0 : index
      %c0_29 = arith.constant 0 : index
      %53 = vector.load %arg6[%c0_28, %c0_29] : memref<128x1xf32, #tpu.memory_space<vmem>>, vector<128x1xf32>
      %54 = arith.subf %53, %52 : vector<128x1xf32>
      %55 = math.exp %54 : vector<128x1xf32>
      %56 = vector.broadcast %52 : vector<128x1xf32> to vector<128x128xf32>
      %57 = arith.subf %13, %56 : vector<128x128xf32>
      %58 = math.exp %57 : vector<128x128xf32>
      %cst_30 = arith.constant dense<0.000000e+00> : vector<128xf32>
      %59 = vector.multi_reduction <add>, %58, %cst_30 [1] : vector<128x128xf32> to vector<128xf32>
      %60 = vector.shape_cast %59 : vector<128xf32> to vector<128x1xf32>
      %c0_31 = arith.constant 0 : index
      %c0_32 = arith.constant 0 : index
      %61 = vector.load %arg7[%c0_31, %c0_32] : memref<128x1xf32, #tpu.memory_space<vmem>>, vector<128x1xf32>
      %62 = arith.mulf %55, %61 : vector<128x1xf32>
      %63 = arith.addf %62, %60 : vector<128x1xf32>
      %c0_33 = arith.constant 0 : index
      %c0_34 = arith.constant 0 : index
      %64 = vector.load %arg7[%c0_33, %c0_34] : memref<128x1xf32, #tpu.memory_space<vmem>>, vector<128x1xf32>
      tpu.vector_store %arg7[%c0_33, %c0_34], %63 {strides = array<i32>} : memref<128x1xf32, #tpu.memory_space<vmem>>, vector<128x1xf32>,
      %c0_35 = arith.constant 0 : index
      %c0_36 = arith.constant 0 : index
      %65 = vector.load %arg6[%c0_35, %c0_36] : memref<128x1xf32, #tpu.memory_space<vmem>>, vector<128x1xf32>
      tpu.vector_store %arg6[%c0_35, %c0_36], %52 {strides = array<i32>} : memref<128x1xf32, #tpu.memory_space<vmem>>, vector<128x1xf32>,
    } else {
    }
    %c1_i32_23 = arith.constant 1 : i32
    %46 = arith.cmpi eq, %arg1, %c1_i32_23 : i32
    %47 = arith.extui %46 : i1 to i32
    %c0_i32_24 = arith.constant 0 : i32
    %48 = arith.cmpi ne, %47, %c0_i32_24 : i32
    scf.if %48 {
      %c0_25 = arith.constant 0 : index
      %c0_26 = arith.constant 0 : index
      %49 = vector.load %arg6[%c0_25, %c0_26] : memref<128x1xf32, #tpu.memory_space<vmem>>, vector<128x1xf32>
      %c0_27 = arith.constant 0 : index
      %c0_28 = arith.constant 0 : index
      %50 = vector.load %arg7[%c0_27, %c0_28] : memref<128x1xf32, #tpu.memory_space<vmem>>, vector<128x1xf32>
      %51 = math.log %50 : vector<128x1xf32>
      %52 = arith.addf %49, %51 : vector<128x1xf32>
      %c0_29 = arith.constant 0 : index
      %c0_30 = arith.constant 0 : index
      %53 = vector.load %arg8[%c0_29, %c0_30] : memref<128x1xf32, #tpu.memory_space<vmem>>, vector<128x1xf32>
      %54 = arith.subf %52, %53 : vector<128x1xf32>
      %55 = vector.shape_cast %54 : vector<128x1xf32> to vector<128x1xf32>
      %56 = vector.broadcast %55 : vector<128x1xf32> to vector<128x128xf32>
      %c0_31 = arith.constant 0 : index
      %c0_32 = arith.constant 0 : index
      %57 = vector.load %arg4[%c0_31, %c0_32] : memref<128x128xf32, #tpu.memory_space<vmem>>, vector<128x128xf32>
      tpu.vector_store %arg4[%c0_31, %c0_32], %56 {strides = array<i32>} : memref<128x128xf32, #tpu.memory_space<vmem>>, vector<128x128xf32>,
    } else {
    }
    return
  }
  func.func @transform_0(%arg0: i32, %arg1: i32) -> (i32, i32) {
    %c0_i32 = arith.constant 0 : i32
    %c0_i32_0 = arith.constant 0 : i32
    return %arg0, %c0_i32 : i32, i32
  }
  func.func @transform_1(%arg0: i32, %arg1: i32) -> (i32, i32) {
    %c0_i32 = arith.constant 0 : i32
    %c0_i32_0 = arith.constant 0 : i32
    return %arg1, %c0_i32 : i32, i32
  }
  func.func @transform_2(%arg0: i32, %arg1: i32) -> (i32, i32) {
    %c0_i32 = arith.constant 0 : i32
    %c0_i32_0 = arith.constant 0 : i32
    return %arg0, %c0_i32 : i32, i32
  }
}

</mosaic_0001>

<bundles_post_ra>
// kernel: tpu_custom_call.1
= control target key start
LH: loop header
LB: loop body
LE: loop exit
PB: predicated region body
PF: predicated region fallthrough
CT: control target
= control target key end

     0   :  { %s5496_s0 = inlined_call_operand.hbm [shape: f32[256,128], index: 0, kind: input, shape index: {}]   ;;  %s5497_s1 = inlined_call_operand.hbm [shape: f32[256,128], index: 1, kind: input, shape index: {}]   ;;  %s5498_s2 = inlined_call_operand.hbm [shape: f32[256,128], index: 2, kind: output, shape index: {}]  }
   0x1   :  { %5536 = sst [smem:[#allocation37_spill]] %s5496_s0 }
   0x2   :  { %7 = vsyncpa [#allocation7], 0 }
   0x3   :  { %9 = vsyncpa [#allocation7 + $0x1], 0 }
   0x4   :  { %10 = vsyncpa [#allocation10], 0 }
   0x5   :  { %12 = vsyncpa [#allocation10 + $0x1], 0 }
   0x6   :  { %13 = vsyncpa [#allocation8], 0 }
   0x7   :  { %15 = vsyncpa [#allocation8 + $0x1], 0  ;;  %s4045_s9 = smov 0   ;;  %s4047_s10 = smov 0  }
   0x8   :  { %s4049_s11 = smov 0   ;;  %s4051_s12 = smov 0  }
   0x9   :  { %s4053_s13 = smov 0   ;;  %s4055_s14 = smov 0  }
   0xa   :  { %s4057_s15 = smov 0   ;;  %s4059_s16 = smov 0  }
   0xb   :  { %s4061_s17 = smov 0   ;;  %s4063_s18 = smov 0  }
   0xc   :  { %s4065_s19 = smov 0  }
   0xd LB: > { %s2722_s20 = sadd.s32 4294967295, %s4017_s19   ;;  %s2723_s21 = sadd.s32 4294967294, %s4017_s19   ;;  %s4017_s19 = sphi %s4065_s19, %s21_s19   ;;  %s4013_s18 = sphi %s4063_s18, %s5631_s18   ;;  %s4009_s17 = sphi %s4061_s17, %s5630_s17   ;;  %s4005_s16 = sphi %s4059_s16, %s5629_s16   ;;  %s4001_s15 = sphi %s4057_s15, %s5628_s15   ;;  %s3997_s14 = sphi %s4055_s14, %s5627_s14   ;;  %s3993_s13 = sphi %s4053_s13, %s5626_s13   ;;  %s3989_s12 = sphi %s4051_s12, %s5625_s12   ;;  %s3985_s11 = sphi %s4049_s11, %s5624_s11   ;;  %s3981_s10 = sphi %s4047_s10, %s5623_s10   ;;  %s3977_s9 = sphi %s4045_s9, %s5622_s9  }
   0xe   : > { %s33_s22 = sadd.s32 1, %s4013_s18  ;;  %s40_s23 = sadd.s32 1, %s3997_s14 }
   0xf   : > { %p47_p0 = scmp.ne.s32.totalorder %s3997_s14, %s3993_s13  ;;  %p5500_p1 = scmp.eq.s32.totalorder %s4017_s19, 0 }
  0x10   : > { %p53_p2 = scmp.ne.s32.totalorder %s3993_s13, %s3989_s12  ;;  %p4109_p3 = scmp.eq.s32.totalorder %s2722_s20, 0 }
  0x11   : > { %p4115_p4 = por %p5500_p1, %p47_p0  ;;  %p103_p5 = scmp.eq.s32.totalorder %s2722_s20, 3 }
  0x12   : > { %p4121_p6 = por %p4109_p3, %p53_p2  ;;  %p109_p7 = scmp.eq.s32.totalorder %s2723_s21, 3 }
  0x13   : > { %p4125_p8 = por %p103_p5, %p47_p0  ;;  %p5499_p10 = scmp.lt.s32.totalorder %s4017_s19, 4 }
  0x14   : > { %s5539_s26 = scalar_select %p4121_p6, 1, 0 }
  0x15   : > { %s5540_s27 = scalar_select %p4125_p8, 1, 0 }
  0x16   : > { %p4129_p9 = por %p109_p7, %p53_p2  ;;  %s129_s29 = sand.u32 1, %s3997_s14  }
  0x17   : > { %s2749_s30 = sshll.u32 %s4013_s18, 11  ;;  %s2726_s3 = sshll.u32 %s129_s29, 7 }
  0x18   : > { %s5541_s28 = scalar_select %p4129_p9, 1, 0 }
  0x19   : > { %s5543_s0 = sld [smem:[#allocation37_spill]]  ;;  %s133_s7 = scalar_lea.vmem [#allocation6], %s2726_s3 }
  0x1a   : > { %5542 = sst [smem:[#allocation15_spill]] %s5541_s28  ;;  %s140_s8 = sshll.u32 %s133_s7, 4  ;;  %s4149_s8 = int_to_ptr.vmem [resolvable:$true] %s140_s8 }
  0x1b   : > { %p4145_p11 = pnand %p5499_p10, %p4115_p4  ;;  %s4151_s21 = scalar_lea.sflag [#allocation7], %s129_s29 }
  0x1d   : > { %p3833_p13 = pneg %p4145_p11 }
  0x1f   : > { %s4139_s6 = scalar_lea.hbm %s5543_s0, %s2749_s30  ;;  %s3836_s4 = scalar_lea.hbm %s5543_s0, 4096 }
  0x20   : > { %s3831_s30 = scalar_lea.hbm %s4139_s6, 2048  ;;  %p3837_p4 = scmp.lt.u32.totalorder %s4139_s6, %s5543_s0 }
  0x21   : > { %p3832_p12 = scmp.ne.s32.totalorder %s4139_s6, %s3831_s30  ;;  %p3838_p5 = scmp.lt.u32.totalorder %s3836_s4, %s3831_s30 }
  0x22   : > { %p3840_p10 = scmp.lt.u32.totalorder %s3831_s30, %s4139_s6 }
  0x23   : > { %p3834_p0 = pnand %p3833_p13, %p3832_p12  ;;  %p3839_p7 = por %p3838_p5, %p3837_p4 }
  0x25   : > { %p3835_p2 = pneg %p3834_p0  ;;  %p3841_p1 = por %p3840_p10, %p3839_p7 }
  0x27   : > { %p3842_p9 = pnand %p3841_p1, %p3835_p2 }
  0x29   : > { %3845 = shalt.err (!%p3842_p9)
}
  0x2a   : > { %s3846_s29 = scalar_lea.vmem %s4149_s8, 2048  ;;  %s4019_s25 = smov [#allocation6]  }
  0x2b   : > { %p3847_p12 = scmp.ne.s32.totalorder %s4149_s8, %s3846_s29  ;;  %s3851_s3 = sshll.u32 %s4019_s25, 4  ;;  %s3852_s3 = int_to_ptr.vmem [resolvable:$false] %s3851_s3 }
  0x2c   : > { %s3853_s5 = scalar_lea.vmem %s3852_s3, 4096  ;;  %p3854_p6 = scmp.lt.s32.totalorder %s4149_s8, %s3852_s3 }
  0x2d   : > { %p3849_p0 = pnand %p3847_p12, %p3833_p13  ;;  %p3855_p4 = scmp.lt.s32.totalorder %s3853_s5, %s3846_s29 }
  0x2f   : > { %p3850_p8 = pneg %p3849_p0  ;;  %p3856_p5 = por %p3855_p4, %p3854_p6 }
  0x31   : > { %p3857_p10 = pnand %p3856_p5, %p3850_p8 }
  0x33   : > { %3860 = shalt.err (!%p3857_p10)
}
  0x34   : > { %s5503_s30 = smov 128   ;;  %s5504_s4 = smov 8  }
  0x35   : > { %3561 = dma.hbm_to_vmem [thread:$0]  (!%p4145_p11), %s4139_s6, 2048, %s4149_s8, %s4151_s21, %s5503_s30, %s5503_s30, %s5504_s4  }
  0x36   : > { %p2732_p1 = scmp.ge.s32.totalorder %s4017_s19, 1  ;;  %p169_p6 = scmp.lt.s32.totalorder %s4017_s19, 5 }
  0x37   : > { %s30_s29 = sadd.s32 1, %s4009_s17  ;;  %s66_s25 = sadd.s32 1, %s3985_s11 }
  0x38   : > { %p4184_p8 = pnand %p2732_p1, %p169_p6  ;;  %p31_p9 = scmp.ge.s32.totalorder %s30_s29, 2 }
  0x39   : > { %p73_p13 = scmp.ne.s32.totalorder %s3985_s11, %s3981_s10  ;;  %p79_p2 = scmp.ne.s32.totalorder %s3981_s10, %s3977_s9 }
  0x3a   : > { %s5633_s29 = smov (%p31_p9, %s30_s29), 0  ;;  %s5635_s22 = smov (!%p31_p9, %s33_s22), %s4013_s18 }
  0x3b   : > { %5546 = sst [smem:[#allocation16_spill]] %s5633_s29  ;;  %s63_s6 = ssub.s32 %s4009_s17, %s5633_s29 }
  0x3c   : > { %p5547_p11 = scmp.eq.s32.totalorder %s4017_s19, 0  ;;  %p35_p12 = scmp.ge.s32.totalorder %s5635_s22, 2 }
  0x3d   : > { %p64_p0 = scmp.eq.s32.totalorder %s63_s6, 0  ;;  %p4209_p4 = por %p79_p2, %p4109_p3 }
  0x3e   : > { %p4203_p7 = por %p73_p13, %p5547_p11  ;;  %s150_s9 = sand.u32 1, %s3985_s11  }
  0x3f   : > { %s5549_s20 = scalar_select %p4209_p4, 1, 0 }
  0x40   : > { %s5637_s22 = smov (%p35_p12, %s5635_s22), 0  ;;  %s2729_s5 = sshll.u32 %s150_s9, 7 }
  0x41   : > { %s4217_s21 = scalar_select %p64_p0, %s3985_s11, %s66_s25  }
  0x42   : > { %s37_s3 = ssub.s32 %s4013_s18, %s5637_s22  ;;  %s2750_s30 = sshll.u32 %s4009_s17, 11 }
  0x43   : > { %p38_p5 = scmp.eq.s32.totalorder %s37_s3, 0  ;;  %s4230_s24 = scalar_lea.hbm %s5497_s1, %s2750_s30 }
  0x44   : > { %s154_s29 = scalar_lea.vmem [#allocation9], %s2729_s5  ;;  %p5550_p3 = scmp.lt.s32.totalorder %s4017_s19, 4 }
  0x45   : > { %s4225_s4 = scalar_select %p38_p5, %s3997_s14, %s40_s23  }
  0x46   : > { %s161_s28 = sshll.u32 %s154_s29, 4  ;;  %p4238_p10 = pnand %p5550_p3, %p4203_p7  ;;  %s4232_s28 = int_to_ptr.vmem [resolvable:$true] %s161_s28 }
  0x47   : > { %s4242_s23 = scalar_lea.sflag [#allocation10], %s150_s9  ;;  %s3861_s0 = scalar_lea.hbm %s4230_s24, 2048 }
  0x48   : > { %p3862_p1 = scmp.ne.s32.totalorder %s4230_s24, %s3861_s0  ;;  %p3863_p6 = pneg %p4238_p10 }
  0x49   : > { %s3866_s8 = scalar_lea.hbm %s5497_s1, 4096  ;;  %p3867_p2 = scmp.lt.u32.totalorder %s4230_s24, %s5497_s1 }
  0x4a   : > { %p3864_p9 = pnand %p3863_p6, %p3862_p1  ;;  %p3868_p11 = scmp.lt.u32.totalorder %s3866_s8, %s3861_s0 }
  0x4b   : > { %p3870_p12 = scmp.lt.u32.totalorder %s3861_s0, %s4230_s24 }
  0x4c   : > { %p3865_p13 = pneg %p3864_p9  ;;  %p3869_p7 = por %p3868_p11, %p3867_p2 }
  0x4e   : > { %p3871_p0 = por %p3870_p12, %p3869_p7 }
  0x50   : > { %p3872_p5 = pnand %p3871_p0, %p3865_p13 }
  0x52   : > { %3875 = shalt.err (!%p3872_p5)
}
  0x53   : > { %s3876_s9 = scalar_lea.vmem %s4232_s28, 2048  ;;  %s4022_s6 = smov [#allocation9]  }
  0x54   : > { %p3877_p3 = scmp.ne.s32.totalorder %s4232_s28, %s3876_s9  ;;  %s3881_s30 = sshll.u32 %s4022_s6, 4  ;;  %s3882_s30 = int_to_ptr.vmem [resolvable:$false] %s3881_s30 }
  0x55   : > { %s3883_s29 = scalar_lea.vmem %s3882_s30, 4096  ;;  %p3884_p4 = scmp.lt.s32.totalorder %s4232_s28, %s3882_s30 }
  0x56   : > { %p3879_p1 = pnand %p3877_p3, %p3863_p6  ;;  %p3885_p2 = scmp.lt.s32.totalorder %s3883_s29, %s3876_s9 }
  0x58   : > { %p3880_p9 = pneg %p3879_p1  ;;  %p3886_p11 = por %p3885_p2, %p3884_p4 }
  0x5a   : > { %p3887_p7 = pnand %p3886_p11, %p3880_p9 }
  0x5c   : > { %3890 = shalt.err (!%p3887_p7)
}
  0x5d   : > { %s5552_s0 = smov 8   ;;  %s5553_s8 = smov 128  }
  0x5e   : > { %3564 = dma.hbm_to_vmem [thread:$0]  (!%p4238_p10), %s4230_s24, 2048, %s4232_s28, %s4242_s23, %s5553_s8, %s5553_s8, %s5552_s0  }
  0x5f   : > { %173 = sbr.rel (%p4184_p8) target bundleno = 1720 (0x6b8), region = 28 }
  0x66   : > { %s4276_s3 = sand.u32 1, %s3993_s13   ;;  %p5554_p4 = scmp.ne.s32.totalorder %s5539_s26, 0 }
  0x67   : > { %s2733_s5 = sshll.u32 %s4276_s3, 7  ;;  %s176_s9 = scalar_lea.sflag [#allocation7], %s4276_s3 }
  0x68   : > { %s4280_s6 = scalar_lea.vmem [#allocation6], %s2733_s5 }
  0x69   : > { %3964 = dma.done.wait (%p5554_p4), %s176_s9, 2048  }
  0x6a   : > { %3966 = vsyncadd (%p5554_p4), %s176_s9, 4294965248  ;;  %s184_s28 = sand.u32 1, %s3981_s10   ;;  %p5555_p8 = scmp.ne.s32.totalorder %s5549_s20, 0 }
  0x6b   : > { %s2734_s7 = sshll.u32 %s184_s28, 7  ;;  %s185_s24 = scalar_lea.sflag [#allocation10], %s184_s28 }
  0x6c   : > { %s4287_s25 = scalar_lea.vmem [#allocation9], %s2734_s7 }
  0x6d   : > { %3968 = dma.done.wait (%p5555_p8), %s185_s24, 2048  }
  0x6e   : > { %3970 = vsyncadd (%p5555_p8), %s185_s24, 4294965248  ;;  %s4293_s23 = scalar_lea.vmem [#allocation11], %s2733_s5  ;;  %p2736_p10 = scmp.ne.s32.totalorder %s4001_s15, 0 }
  0x6f   : > { %v4297_v0 = vld [vmem:[%s4280_s6 + $0x10] sm:$0xff] (!%p2736_p10)  ;;  %v4300_v1 = vld [vmem:[%s4280_s6] sm:$0xff] (!%p2736_p10)  ;;  %v4303_v2 = vld [vmem:[%s4280_s6 + $0x18] sm:$0xff] (!%p2736_p10)  ;;  %vm365_vm0 = vcmask (!%p2736_p10), 7168   ;;  %v4023_v32 = vmov (!%p2736_p10), -10000.0   ;;  %v4024_v33 = vmov (!%p2736_p10), 0.0  }
  0x70   : > { %220 = sbr.rel (%p2736_p10) target bundleno = 303 (0x12f), region = 40  ;;  %v239_v3 = vmul.f32 (!%p2736_p10), %v4297_v0, %v4297_v0  ;;  %v237_v4 = vmul.f32 (!%p2736_p10), %v4300_v1, %v4300_v1  ;;  %v4310_v5 = vld [vmem:[%s4280_s6 + $0x8] sm:$0xff] (!%p2736_p10)  ;;  %v240_v6 = vmul.f32 (!%p2736_p10), %v4303_v2, %v4303_v2  ;;  %v4320_v9 = vld [vmem:[%s4280_s6 + $0x20] sm:$0xff] (!%p2736_p10)  ;;  %v4327_v12 = vld [vmem:[%s4280_s6 + $0x38] sm:$0xff] (!%p2736_p10)  ;;  %366 = vst.msk [vmem:[#allocation3] sm:$0xff] (!%p2736_p10), %vm365_vm0, %v4023_v32 }
  0x71   : > { %v238_v7 = vmul.f32 (!%p2736_p10), %v4310_v5, %v4310_v5  ;;  %v4317_v8 = vld [vmem:[%s4280_s6 + $0x28] sm:$0xff] (!%p2736_p10)  ;;  %v241_v11 = vmul.f32 (!%p2736_p10), %v4320_v9, %v4320_v9  ;;  %v4330_v13 = vld [vmem:[%s4280_s6 + $0x30] sm:$0xff] (!%p2736_p10)  ;;  %v244_v14 = vmul.f32 (!%p2736_p10), %v4327_v12, %v4327_v12  ;;  %v4340_v17 = vld [vmem:[%s4280_s6 + $0x40] sm:$0xff] (!%p2736_p10)  ;;  %367 = vst.msk [vmem:[#allocation3 + $0x8] sm:$0xff] (!%p2736_p10), %vm365_vm0, %v4023_v32 }
  0x72   : > { %257 = vadd.xlane.f32.xlu1 (!%p2736_p10), %v239_v3  ;;  %253 = vadd.xlane.f32.xlu0 (!%p2736_p10), %v237_v4  ;;  %v242_v10 = vmul.f32 (!%p2736_p10), %v4317_v8, %v4317_v8  ;;  %v243_v15 = vmul.f32 (!%p2736_p10), %v4330_v13, %v4330_v13  ;;  %v4337_v16 = vld [vmem:[%s4280_s6 + $0x48] sm:$0xff] (!%p2736_p10)  ;;  %v245_v19 = vmul.f32 (!%p2736_p10), %v4340_v17, %v4340_v17  ;;  %v4347_v20 = vld [vmem:[%s4280_s6 + $0x58] sm:$0xff] (!%p2736_p10)  ;;  %v4350_v21 = vld [vmem:[%s4280_s6 + $0x50] sm:$0xff] (!%p2736_p10) }
  0x73   : > { %v246_v18 = vmul.f32 (!%p2736_p10), %v4337_v16, %v4337_v16  ;;  %v248_v22 = vmul.f32 (!%p2736_p10), %v4347_v20, %v4347_v20  ;;  %v247_v23 = vmul.f32 (!%p2736_p10), %v4350_v21, %v4350_v21  ;;  %v4357_v24 = vld [vmem:[%s4280_s6 + $0x68] sm:$0xff] (!%p2736_p10)  ;;  %v4360_v25 = vld [vmem:[%s4280_s6 + $0x60] sm:$0xff] (!%p2736_p10)  ;;  %v4367_v28 = vld [vmem:[%s4280_s6 + $0x78] sm:$0xff] (!%p2736_p10)  ;;  %368 = vst.msk [vmem:[#allocation3 + $0x10] sm:$0xff] (!%p2736_p10), %vm365_vm0, %v4023_v32 }
  0x74   : > { %v250_v26 = vmul.f32 (!%p2736_p10), %v4357_v24, %v4357_v24  ;;  %v249_v27 = vmul.f32 (!%p2736_p10), %v4360_v25, %v4360_v25  ;;  %v4370_v29 = vld [vmem:[%s4280_s6 + $0x70] sm:$0xff] (!%p2736_p10)  ;;  %v252_v30 = vmul.f32 (!%p2736_p10), %v4367_v28, %v4367_v28  ;;  %369 = vst.msk [vmem:[#allocation3 + $0x18] sm:$0xff] (!%p2736_p10), %vm365_vm0, %v4023_v32  ;;  %370 = vst.msk [vmem:[#allocation3 + $0x20] sm:$0xff] (!%p2736_p10), %vm365_vm0, %v4023_v32 }
  0x75   : > { %v251_v31 = vmul.f32 (!%p2736_p10), %v4370_v29, %v4370_v29  ;;  %371 = vst.msk [vmem:[#allocation3 + $0x28] sm:$0xff] (!%p2736_p10), %vm365_vm0, %v4023_v32  ;;  %372 = vst.msk [vmem:[#allocation3 + $0x30] sm:$0xff] (!%p2736_p10), %vm365_vm0, %v4023_v32 }
  0x76   : > { %259 = vadd.xlane.f32.xlu1 (!%p2736_p10), %v240_v6  ;;  %255 = vadd.xlane.f32.xlu0 (!%p2736_p10), %v238_v7  ;;  %373 = vst.msk [vmem:[#allocation3 + $0x38] sm:$0xff] (!%p2736_p10), %vm365_vm0, %v4023_v32  ;;  %374 = vst.msk [vmem:[#allocation3 + $0x40] sm:$0xff] (!%p2736_p10), %vm365_vm0, %v4023_v32 }
  0x77   : > { %375 = vst.msk [vmem:[#allocation3 + $0x48] sm:$0xff] %vm365_vm0, %v4023_v32  ;;  %376 = vst.msk [vmem:[#allocation3 + $0x50] sm:$0xff] %vm365_vm0, %v4023_v32 }
  0x78   : > { %377 = vst.msk [vmem:[#allocation3 + $0x58] sm:$0xff] %vm365_vm0, %v4023_v32  ;;  %378 = vst.msk [vmem:[#allocation3 + $0x60] sm:$0xff] %vm365_vm0, %v4023_v32 }
  0x79   : > { %379 = vst.msk [vmem:[#allocation3 + $0x68] sm:$0xff] %vm365_vm0, %v4023_v32  ;;  %380 = vst.msk [vmem:[#allocation3 + $0x70] sm:$0xff] %vm365_vm0, %v4023_v32 }
  0x7a   : > { %263 = vadd.xlane.f32.xlu1 %v242_v10  ;;  %261 = vadd.xlane.f32.xlu0 %v241_v11  ;;  %381 = vst.msk [vmem:[#allocation3 + $0x78] sm:$0xff] %vm365_vm0, %v4023_v32  ;;  %382 = vst.msk [vmem:[#allocation4] sm:$0xff] %vm365_vm0, %v4024_v33 }
  0x7b   : > { %383 = vst.msk [vmem:[#allocation4 + $0x8] sm:$0xff] %vm365_vm0, %v4024_v33  ;;  %384 = vst.msk [vmem:[#allocation4 + $0x10] sm:$0xff] %vm365_vm0, %v4024_v33 }
  0x7c   : > { %385 = vst.msk [vmem:[#allocation4 + $0x18] sm:$0xff] %vm365_vm0, %v4024_v33  ;;  %386 = vst.msk [vmem:[#allocation4 + $0x20] sm:$0xff] %vm365_vm0, %v4024_v33 }
  0x7d   : > { %387 = vst.msk [vmem:[#allocation4 + $0x28] sm:$0xff] %vm365_vm0, %v4024_v33  ;;  %388 = vst.msk [vmem:[#allocation4 + $0x30] sm:$0xff] %vm365_vm0, %v4024_v33 }
  0x7e   : > { %267 = vadd.xlane.f32.xlu1 %v244_v14  ;;  %265 = vadd.xlane.f32.xlu0 %v243_v15  ;;  %389 = vst.msk [vmem:[#allocation4 + $0x38] sm:$0xff] %vm365_vm0, %v4024_v33  ;;  %390 = vst.msk [vmem:[#allocation4 + $0x40] sm:$0xff] %vm365_vm0, %v4024_v33 }
  0x7f   : > { %391 = vst.msk [vmem:[#allocation4 + $0x48] sm:$0xff] %vm365_vm0, %v4024_v33  ;;  %392 = vst.msk [vmem:[#allocation4 + $0x50] sm:$0xff] %vm365_vm0, %v4024_v33 }
  0x80   : > { %393 = vst.msk [vmem:[#allocation4 + $0x58] sm:$0xff] %vm365_vm0, %v4024_v33  ;;  %394 = vst.msk [vmem:[#allocation4 + $0x60] sm:$0xff] %vm365_vm0, %v4024_v33 }
  0x81   : > { %395 = vst.msk [vmem:[#allocation4 + $0x68] sm:$0xff] %vm365_vm0, %v4024_v33  ;;  %396 = vst.msk [vmem:[#allocation4 + $0x70] sm:$0xff] %vm365_vm0, %v4024_v33 }
  0x82   : > { %271 = vadd.xlane.f32.xlu1 %v246_v18  ;;  %269 = vadd.xlane.f32.xlu0 %v245_v19  ;;  %397 = vst.msk [vmem:[#allocation4 + $0x78] sm:$0xff] %vm365_vm0, %v4024_v33  ;;  %398 = vst.msk [vmem:[#allocation5] sm:$0xff] %vm365_vm0, %v4024_v33 }
  0x83   : > { %399 = vst.msk [vmem:[#allocation5 + $0x8] sm:$0xff] %vm365_vm0, %v4024_v33  ;;  %400 = vst.msk [vmem:[#allocation5 + $0x10] sm:$0xff] %vm365_vm0, %v4024_v33 }
  0x84   : > { %401 = vst.msk [vmem:[#allocation5 + $0x18] sm:$0xff] %vm365_vm0, %v4024_v33  ;;  %402 = vst.msk [vmem:[#allocation5 + $0x20] sm:$0xff] %vm365_vm0, %v4024_v33 }
  0x85   : > { %403 = vst.msk [vmem:[#allocation5 + $0x28] sm:$0xff] %vm365_vm0, %v4024_v33  ;;  %404 = vst.msk [vmem:[#allocation5 + $0x30] sm:$0xff] %vm365_vm0, %v4024_v33 }
  0x86   : > { %275 = vadd.xlane.f32.xlu1 %v248_v22  ;;  %273 = vadd.xlane.f32.xlu0 %v247_v23  ;;  %405 = vst.msk [vmem:[#allocation5 + $0x38] sm:$0xff] %vm365_vm0, %v4024_v33  ;;  %406 = vst.msk [vmem:[#allocation5 + $0x40] sm:$0xff] %vm365_vm0, %v4024_v33 }
  0x87   : > { %407 = vst.msk [vmem:[#allocation5 + $0x48] sm:$0xff] %vm365_vm0, %v4024_v33  ;;  %408 = vst.msk [vmem:[#allocation5 + $0x50] sm:$0xff] %vm365_vm0, %v4024_v33 }
  0x88   : > { %409 = vst.msk [vmem:[#allocation5 + $0x58] sm:$0xff] %vm365_vm0, %v4024_v33  ;;  %410 = vst.msk [vmem:[#allocation5 + $0x60] sm:$0xff] %vm365_vm0, %v4024_v33 }
  0x89   : > { %411 = vst.msk [vmem:[#allocation5 + $0x68] sm:$0xff] %vm365_vm0, %v4024_v33  ;;  %412 = vst.msk [vmem:[#allocation5 + $0x70] sm:$0xff] %vm365_vm0, %v4024_v33 }
  0x8a   : > { %279 = vadd.xlane.f32.xlu1 %v250_v26  ;;  %277 = vadd.xlane.f32.xlu0 %v249_v27  ;;  %413 = vst.msk [vmem:[#allocation5 + $0x78] sm:$0xff] %vm365_vm0, %v4024_v33 }
  0x8e   : > { %283 = vadd.xlane.f32.xlu1 %v252_v30  ;;  %281 = vadd.xlane.f32.xlu0 %v251_v31 }
  0xff   : > { %v258_v34 = vpop.xlane.xlu1 %257  ;;  %v254_v35 = vpop.xlane.xlu0 %253 }
 0x100   : > { %v287_v36 = vmax.f32 %v258_v34, 1e-24  ;;  %v285_v37 = vmax.f32 %v254_v35, 1e-24 }
 0x102   : > { %3667 = vrsqrt.f32 %v287_v36 }
 0x103   : > { %3669 = vrsqrt.f32 %v285_v37  ;;  %v260_v38 = vpop.xlane.xlu1 %259  ;;  %v256_v39 = vpop.xlane.xlu0 %255 }
 0x104   : > { %v288_v40 = vmax.f32 %v260_v38, 1e-24  ;;  %v286_v41 = vmax.f32 %v256_v39, 1e-24 }
 0x106   : > { %3671 = vrsqrt.f32 %v288_v40 }
 0x107   : > { %3673 = vrsqrt.f32 %v286_v41  ;;  %v264_v42 = vpop.xlane.xlu1 %263  ;;  %v262_v43 = vpop.xlane.xlu0 %261 }
 0x108   : > { %v290_v44 = vmax.f32 %v264_v42, 1e-24  ;;  %v289_v45 = vmax.f32 %v262_v43, 1e-24 }
 0x10a   : > { %3675 = vrsqrt.f32 %v290_v44 }
 0x10b   : > { %3677 = vrsqrt.f32 %v289_v45  ;;  %v268_v46 = vpop.xlane.xlu1 %267  ;;  %v266_v47 = vpop.xlane.xlu0 %265 }
 0x10c   : > { %v3668_v48 = vpop.eup %3667  ;;  %v292_v49 = vmax.f32 %v268_v46, 1e-24  ;;  %v291_v50 = vmax.f32 %v266_v47, 1e-24 }
 0x10d   : > { %v3670_v51 = vpop.eup %3669  ;;  %v319_v52 = vmul.f32 14.285714, %v3668_v48 }
 0x10e   : > { %v317_v53 = vmul.f32 14.285714, %v3670_v51  ;;  %3679 = vrsqrt.f32 %v292_v49 }
 0x10f   : > { %v335_v54 = vmul.f32 %v319_v52, %v4297_v0  ;;  %3681 = vrsqrt.f32 %v291_v50  ;;  %v272_v55 = vpop.xlane.xlu1 %271  ;;  %v270_v56 = vpop.xlane.xlu0 %269 }
 0x110   : > { %v3672_v57 = vpop.eup %3671  ;;  %v333_v58 = vmul.f32 %v317_v53, %v4300_v1  ;;  %v294_v59 = vmax.f32 %v272_v55, 1e-24  ;;  %v293_v60 = vmax.f32 %v270_v56, 1e-24 }
 0x111   : > { %v3674_v61 = vpop.eup %3673  ;;  %351 = vst [vmem:[#allocation2 + $0x10] sm:$0xff] %v335_v54  ;;  %v320_v62 = vmul.f32 14.285714, %v3672_v57 }
 0x112   : > { %349 = vst [vmem:[#allocation2] sm:$0xff] %v333_v58  ;;  %v318_v63 = vmul.f32 14.285714, %v3674_v61  ;;  %3683 = vrsqrt.f32 %v294_v59 }
 0x113   : > { %v336_v3 = vmul.f32 %v320_v62, %v4303_v2  ;;  %3685 = vrsqrt.f32 %v293_v60  ;;  %v276_v4 = vpop.xlane.xlu1 %275  ;;  %v274_v6 = vpop.xlane.xlu0 %273 }
 0x114   : > { %v3676_v0 = vpop.eup %3675  ;;  %v334_v7 = vmul.f32 %v318_v63, %v4310_v5  ;;  %v296_v10 = vmax.f32 %v276_v4, 1e-24  ;;  %v295_v11 = vmax.f32 %v274_v6, 1e-24 }
 0x115   : > { %v3678_v14 = vpop.eup %3677  ;;  %352 = vst [vmem:[#allocation2 + $0x18] sm:$0xff] %v336_v3  ;;  %v322_v1 = vmul.f32 14.285714, %v3676_v0 }
 0x116   : > { %350 = vst [vmem:[#allocation2 + $0x8] sm:$0xff] %v334_v7  ;;  %v321_v15 = vmul.f32 14.285714, %v3678_v14  ;;  %3687 = vrsqrt.f32 %v296_v10 }
 0x117   : > { %v338_v18 = vmul.f32 %v322_v1, %v4317_v8  ;;  %3689 = vrsqrt.f32 %v295_v11  ;;  %v280_v19 = vpop.xlane.xlu1 %279  ;;  %v278_v22 = vpop.xlane.xlu0 %277 }
 0x118   : > { %v3680_v2 = vpop.eup %3679  ;;  %v337_v23 = vmul.f32 %v321_v15, %v4320_v9  ;;  %v298_v26 = vmax.f32 %v280_v19, 1e-24  ;;  %v297_v27 = vmax.f32 %v278_v22, 1e-24 }
 0x119   : > { %v3682_v30 = vpop.eup %3681  ;;  %354 = vst [vmem:[#allocation2 + $0x28] sm:$0xff] %v338_v18  ;;  %v324_v5 = vmul.f32 14.285714, %v3680_v2 }
 0x11a   : > { %353 = vst [vmem:[#allocation2 + $0x20] sm:$0xff] %v337_v23  ;;  %v323_v31 = vmul.f32 14.285714, %v3682_v30  ;;  %3691 = vrsqrt.f32 %v298_v26 }
 0x11b   : > { %v340_v32 = vmul.f32 %v324_v5, %v4327_v12  ;;  %3693 = vrsqrt.f32 %v297_v27  ;;  %v284_v33 = vpop.xlane.xlu1 %283  ;;  %v282_v34 = vpop.xlane.xlu0 %281 }
 0x11c   : > { %v3684_v8 = vpop.eup %3683  ;;  %v339_v35 = vmul.f32 %v323_v31, %v4330_v13  ;;  %v300_v36 = vmax.f32 %v284_v33, 1e-24  ;;  %v299_v37 = vmax.f32 %v282_v34, 1e-24 }
 0x11d   : > { %v3686_v38 = vpop.eup %3685  ;;  %356 = vst [vmem:[#allocation2 + $0x38] sm:$0xff] %v340_v32  ;;  %v326_v9 = vmul.f32 14.285714, %v3684_v8 }
 0x11e   : > { %355 = vst [vmem:[#allocation2 + $0x30] sm:$0xff] %v339_v35  ;;  %v325_v39 = vmul.f32 14.285714, %v3686_v38  ;;  %3695 = vrsqrt.f32 %v300_v36 }
 0x11f   : > { %v342_v40 = vmul.f32 %v326_v9, %v4337_v16  ;;  %3697 = vrsqrt.f32 %v299_v37 }
 0x120   : > { %v3688_v41 = vpop.eup %3687  ;;  %v341_v12 = vmul.f32 %v325_v39, %v4340_v17 }
 0x121   : > { %v3690_v42 = vpop.eup %3689  ;;  %358 = vst [vmem:[#allocation2 + $0x48] sm:$0xff] %v342_v40  ;;  %v328_v43 = vmul.f32 14.285714, %v3688_v41 }
 0x122   : > { %357 = vst [vmem:[#allocation2 + $0x40] sm:$0xff] %v341_v12  ;;  %v327_v44 = vmul.f32 14.285714, %v3690_v42 }
 0x123   : > { %v344_v13 = vmul.f32 %v328_v43, %v4347_v20 }
 0x124   : > { %v3692_v45 = vpop.eup %3691  ;;  %v343_v46 = vmul.f32 %v327_v44, %v4350_v21 }
 0x125   : > { %v3694_v47 = vpop.eup %3693  ;;  %360 = vst [vmem:[#allocation2 + $0x58] sm:$0xff] %v344_v13  ;;  %v330_v48 = vmul.f32 14.285714, %v3692_v45 }
 0x126   : > { %359 = vst [vmem:[#allocation2 + $0x50] sm:$0xff] %v343_v46  ;;  %v329_v49 = vmul.f32 14.285714, %v3694_v47 }
 0x127   : > { %v346_v16 = vmul.f32 %v330_v48, %v4357_v24 }
 0x128   : > { %v3696_v50 = vpop.eup %3695  ;;  %v345_v17 = vmul.f32 %v329_v49, %v4360_v25 }
 0x129   : > { %v3698_v51 = vpop.eup %3697  ;;  %362 = vst [vmem:[#allocation2 + $0x68] sm:$0xff] %v346_v16  ;;  %v332_v52 = vmul.f32 14.285714, %v3696_v50 }
 0x12a   : > { %361 = vst [vmem:[#allocation2 + $0x60] sm:$0xff] %v345_v17  ;;  %v331_v53 = vmul.f32 14.285714, %v3698_v51 }
 0x12b   : > { %v348_v20 = vmul.f32 %v332_v52, %v4367_v28 }
 0x12c   : > { %v347_v54 = vmul.f32 %v331_v53, %v4370_v29 }
 0x12d   : > { %364 = vst [vmem:[#allocation2 + $0x78] sm:$0xff] %v348_v20 }
 0x12e   : > { %363 = vst [vmem:[#allocation2 + $0x70] sm:$0xff] %v347_v54 }
 0x12f PF: > { %v4441_v21 = vld [vmem:[%s4287_s25 + $0x10] sm:$0xff]  ;;  %v4444_v24 = vld [vmem:[%s4287_s25] sm:$0xff]  ;;  %v4447_v25 = vld [vmem:[%s4287_s25 + $0x18] sm:$0xff]  ;;  %s1828_s26 = sadd.s32 1, %s4005_s16 }
 0x130   : > { %v432_v28 = vmul.f32 %v4441_v21, %v4441_v21  ;;  %v430_v29 = vmul.f32 %v4444_v24, %v4444_v24  ;;  %v4454_v55 = vld [vmem:[%s4287_s25 + $0x8] sm:$0xff]  ;;  %v433_v56 = vmul.f32 %v4447_v25, %v4447_v25  ;;  %v4464_v59 = vld [vmem:[%s4287_s25 + $0x20] sm:$0xff]  ;;  %v4471_v62 = vld [vmem:[%s4287_s25 + $0x38] sm:$0xff]  ;;  %p1829_p6 = scmp.lt.s32.totalorder %s1828_s26, 0  ;;  %s1830_s20 = ssub.s32 0, %s1828_s26 }
 0x131   : > { %v431_v57 = vmul.f32 %v4454_v55, %v4454_v55  ;;  %v4461_v58 = vld [vmem:[%s4287_s25 + $0x28] sm:$0xff]  ;;  %v434_v61 = vmul.f32 %v4464_v59, %v4464_v59  ;;  %v4474_v63 = vld [vmem:[%s4287_s25 + $0x30] sm:$0xff]  ;;  %v437_v3 = vmul.f32 %v4471_v62, %v4471_v62  ;;  %v4484_v0 = vld [vmem:[%s4287_s25 + $0x40] sm:$0xff]  ;;  %s2737_s30 = smin.u32 %s1830_s20, %s1828_s26 }
 0x132   : > { %450 = vadd.xlane.f32.xlu1 %v432_v28  ;;  %446 = vadd.xlane.f32.xlu0 %v430_v29  ;;  %v435_v60 = vmul.f32 %v4461_v58, %v4461_v58  ;;  %v436_v4 = vmul.f32 %v4474_v63, %v4474_v63  ;;  %v4481_v6 = vld [vmem:[%s4287_s25 + $0x48] sm:$0xff]  ;;  %v438_v10 = vmul.f32 %v4484_v0, %v4484_v0  ;;  %v4491_v11 = vld [vmem:[%s4287_s25 + $0x58] sm:$0xff]  ;;  %v4494_v14 = vld [vmem:[%s4287_s25 + $0x50] sm:$0xff]  ;;  %s1832_s29 = sand.u32 1, %s2737_s30  }
 0x133   : > { %v439_v7 = vmul.f32 %v4481_v6, %v4481_v6  ;;  %v441_v1 = vmul.f32 %v4491_v11, %v4491_v11  ;;  %v440_v15 = vmul.f32 %v4494_v14, %v4494_v14  ;;  %v4501_v18 = vld [vmem:[%s4287_s25 + $0x68] sm:$0xff]  ;;  %v4504_v19 = vld [vmem:[%s4287_s25 + $0x60] sm:$0xff]  ;;  %v4511_v23 = vld [vmem:[%s4287_s25 + $0x78] sm:$0xff]  ;;  %s1833_s0 = ssub.s32 0, %s1832_s29 }
 0x134   : > { %v443_v22 = vmul.f32 %v4501_v18, %v4501_v18  ;;  %v442_v2 = vmul.f32 %v4504_v19, %v4504_v19  ;;  %v4514_v26 = vld [vmem:[%s4287_s25 + $0x70] sm:$0xff]  ;;  %v445_v27 = vmul.f32 %v4511_v23, %v4511_v23  ;;  %v526_v5 = vld [vmem:[#allocation2] sm:$0xff]  ;;  %s5639_s0 = smov (!%p1829_p6, %s1833_s0), %s1832_s29 }
 0x135   : > { %v444_v30 = vmul.f32 %v4514_v26, %v4514_v26  ;;  %v4520_v31 = vand.u32 4294901760, %v526_v5  ;;  %p2739_p13 = scmp.lt.s32.totalorder %s5639_s0, 0  ;;  %s1839_s8 = sadd.s32 2, %s5639_s0 }
 0x136   : > { %452 = vadd.xlane.f32.xlu1 %v433_v56  ;;  %448 = vadd.xlane.f32.xlu0 %v431_v57 }
 0x137   : > { %v4523_v32 = vsub.f32 %v526_v5, %v4520_v31  ;;  %s5641_s8 = smov (!%p2739_p13, %s1839_s8), %s5639_s0 }
 0x138   : > { %p2740_p12 = scmp.ne.s32.totalorder %s4001_s15, %s5641_s8 }
 0x139   : > { %5556 = vst [vmem:[#allocation17_spill] sm:$0xff] %v4523_v32  ;;  %v625_v33 = vand.u32 4294901760, %v4523_v32 }
 0x13a   : > { %456 = vadd.xlane.f32.xlu1 %v435_v60  ;;  %454 = vadd.xlane.f32.xlu0 %v434_v61 }
 0x13b   : > { %v626_v34 = vsub.f32 %v4523_v32, %v625_v33  ;;  %3144 = vmatprep.mubr.f32.mxu0 %v625_v33 }
 0x13d   : > { %v627_v8 = vand.u32 4294901760, %v626_v34 }
 0x13e   : > { %460 = vadd.xlane.f32.xlu1 %v437_v3  ;;  %458 = vadd.xlane.f32.xlu0 %v436_v4 }
 0x13f   : > { %2976 = vmatprep.mubr.f32.mxu1 %v627_v8 }
 0x142   : > { %464 = vadd.xlane.f32.xlu1 %v439_v7  ;;  %462 = vadd.xlane.f32.xlu0 %v438_v10 }
 0x146   : > { %468 = vadd.xlane.f32.xlu1 %v441_v1  ;;  %466 = vadd.xlane.f32.xlu0 %v440_v15 }
 0x14a   : > { %472 = vadd.xlane.f32.xlu1 %v443_v22  ;;  %470 = vadd.xlane.f32.xlu0 %v442_v2 }
 0x14e   : > { %476 = vadd.xlane.f32.xlu1 %v445_v27  ;;  %474 = vadd.xlane.f32.xlu0 %v444_v30 }
 0x1bf   : > { %v451_v35 = vpop.xlane.xlu1 %450  ;;  %v447_v36 = vpop.xlane.xlu0 %446 }
 0x1c0   : > { %v480_v37 = vmax.f32 %v451_v35, 1e-24  ;;  %v478_v38 = vmax.f32 %v447_v36, 1e-24 }
 0x1c2   : > { %3699 = vrsqrt.f32 %v480_v37 }
 0x1c3   : > { %3701 = vrsqrt.f32 %v478_v38  ;;  %v453_v9 = vpop.xlane.xlu1 %452  ;;  %v449_v39 = vpop.xlane.xlu0 %448 }
 0x1c4   : > { %v481_v40 = vmax.f32 %v453_v9, 1e-24  ;;  %v479_v41 = vmax.f32 %v449_v39, 1e-24 }
 0x1c6   : > { %3703 = vrsqrt.f32 %v481_v40 }
 0x1c7   : > { %3705 = vrsqrt.f32 %v479_v41  ;;  %v457_v12 = vpop.xlane.xlu1 %456  ;;  %v455_v42 = vpop.xlane.xlu0 %454 }
 0x1c8   : > { %v483_v43 = vmax.f32 %v457_v12, 1e-24  ;;  %v482_v44 = vmax.f32 %v455_v42, 1e-24 }
 0x1ca   : > { %3707 = vrsqrt.f32 %v483_v43 }
 0x1cb   : > { %3709 = vrsqrt.f32 %v482_v44  ;;  %v461_v13 = vpop.xlane.xlu1 %460  ;;  %v459_v45 = vpop.xlane.xlu0 %458 }
 0x1cc   : > { %v3700_v46 = vpop.eup %3699  ;;  %v485_v48 = vmax.f32 %v461_v13, 1e-24  ;;  %v484_v16 = vmax.f32 %v459_v45, 1e-24 }
 0x1cd   : > { %v3702_v47 = vpop.eup %3701  ;;  %v4528_v49 = vmul.f32 %v3700_v46, %v4441_v21 }
 0x1ce   : > { %v4531_v52 = vmul.f32 %v3702_v47, %v4444_v24  ;;  %3711 = vrsqrt.f32 %v485_v48 }
 0x1cf   : > { %v465_v50 = vpop.xlane.xlu1 %464  ;;  %v463_v17 = vpop.xlane.xlu0 %462  ;;  %v549_v28 = vand.u32 4294901760, %v4528_v49  ;;  %3713 = vrsqrt.f32 %v484_v16 }
 0x1d0   : > { %v3704_v51 = vpop.eup %3703  ;;  %v543_v57 = vand.u32 4294901760, %v4531_v52  ;;  %v487_v61 = vmax.f32 %v465_v50, 1e-24 }
 0x1d1   : > { %v3706_v53 = vpop.eup %3705  ;;  %v4534_v20 = vmul.f32 %v3704_v51, %v4447_v25  ;;  %v486_v25 = vmax.f32 %v463_v17, 1e-24 }
 0x1d2   : > { %v4537_v54 = vmul.f32 %v3706_v53, %v4454_v55  ;;  %3715 = vrsqrt.f32 %v487_v61  ;;  %v4595_v51 = vsub.f32 %v4531_v52, %v543_v57 }
 0x1d3   : > { %v469_v21 = vpop.xlane.xlu1 %468  ;;  %v467_v29 = vpop.xlane.xlu0 %466  ;;  %v552_v60 = vand.u32 4294901760, %v4534_v20  ;;  %3717 = vrsqrt.f32 %v486_v25 }
 0x1d4   : > { %v3708_v56 = vpop.eup %3707  ;;  %v546_v24 = vand.u32 4294901760, %v4537_v54  ;;  %v489_v7 = vmax.f32 %v469_v21, 1e-24  ;;  %v488_v1 = vmax.f32 %v467_v29, 1e-24 }
 0x1d5   : > { %v3710_v3 = vpop.eup %3709  ;;  %v4547_v55 = vpack.c.bf16 %v552_v60, %v549_v28  ;;  %v4554_v10 = vmul.f32 %v3708_v56, %v4461_v58 }
 0x1d6   : > { %v4551_v4 = vpack.c.bf16 %v546_v24, %v543_v57  ;;  %v4557_v2 = vmul.f32 %v3710_v3, %v4464_v59  ;;  %3719 = vrsqrt.f32 %v489_v7  ;;  %v4583_v16 = vsub.f32 %v4537_v54, %v546_v24 }
 0x1d7   : > { %v473_v15 = vpop.xlane.xlu1 %472  ;;  %v471_v22 = vpop.xlane.xlu0 %470  ;;  %v558_v58 = vand.u32 4294901760, %v4554_v10  ;;  %3721 = vrsqrt.f32 %v488_v1  ;;  %v4611_v57 = vsub.f32 %v4534_v20, %v552_v60 }
 0x1d8   : > { %3281 = vmatprep.subr.bf16.mxu1 %v4551_v4  ;;  %3377 = vmatprep.subr.bf16.mxu0 %v4551_v4  ;;  %v491_v27 = vmax.f32 %v473_v15, 1e-24  ;;  %v490_v30 = vmax.f32 %v471_v22, 1e-24  ;;  %v3712_v33 = vpop.eup %3711  ;;  %v555_v34 = vand.u32 4294901760, %v4557_v2 }
 0x1d9   : > { %3283 = vmatpush3.bf16.xpose.msra.mxu1 %v4551_v4  ;;  %3379 = vmatpush3.bf16.xpose.msra.mxu0 %v4551_v4  ;;  %v3714_v36 = vpop.eup %3713  ;;  %v517_v38 = vmul.f32 %v3712_v33, %v4471_v62  ;;  %v4614_v24 = vsub.f32 %v4554_v10, %v558_v58 }
 0x1da   : > { %3285 = vmatprep.subr.bf16.mxu1 %v4547_v55  ;;  %3381 = vmatprep.subr.bf16.mxu0 %v4547_v55  ;;  %3723 = vrsqrt.f32 %v491_v27  ;;  %v4567_v37 = vpack.c.bf16 %v558_v58, %v555_v34  ;;  %v516_v9 = vmul.f32 %v3714_v36, %v4474_v63  ;;  %v793_v36 = vand.u32 4294901760, %v4583_v16 }
 0x1db   : > { %v477_v59 = vpop.xlane.xlu1 %476  ;;  %v475_v5 = vpop.xlane.xlu0 %474  ;;  %3725 = vrsqrt.f32 %v490_v30  ;;  %v564_v12 = vand.u32 4294901760, %v517_v38 }
 0x1dc   : > { %v493_v8 = vmax.f32 %v477_v59, 1e-24  ;;  %v492_v35 = vmax.f32 %v475_v5, 1e-24  ;;  %v3716_v39 = vpop.eup %3715  ;;  %v561_v42 = vand.u32 4294901760, %v516_v9 }
 0x1dd   : > { %v3718_v40 = vpop.eup %3717  ;;  %v519_v63 = vmul.f32 %v3716_v39, %v4481_v6  ;;  %v4621_v61 = vsub.f32 %v517_v38, %v564_v12  ;;  %v528_v38 = vld [vmem:[#allocation2 + $0x10] sm:$0xff] }
 0x1de   : > { %3727 = vrsqrt.f32 %v493_v8  ;;  %v4575_v13 = vpack.c.bf16 %v564_v12, %v561_v42  ;;  %v518_v46 = vmul.f32 %v3718_v40, %v4484_v0  ;;  %v527_v8 = vld [vmem:[#allocation2 + $0x8] sm:$0xff]  ;;  %v786_v40 = vand.u32 4294901760, %v4595_v51 }
 0x1df   : > { %3729 = vrsqrt.f32 %v492_v35  ;;  %v570_v53 = vand.u32 4294901760, %v519_v63  ;;  %v4683_v35 = vand.u32 4294901760, %v527_v8 }
 0x1e0   : > { %v3720_v41 = vpop.eup %3719  ;;  %5557 = vst [vmem:[#allocation18_spill] sm:$0xff] %v4575_v13  ;;  %v567_v54 = vand.u32 4294901760, %v518_v46 }
 0x1e1   : > { %3287 = vmatpush3.bf16.xpose.msra.mxu1 %v4547_v55  ;;  %3383 = vmatpush3.bf16.xpose.msra.mxu0 %v4547_v55  ;;  %v3722_v43 = vpop.eup %3721  ;;  %v521_v50 = vmul.f32 %v3720_v41, %v4491_v11  ;;  %v4623_v3 = vsub.f32 %v519_v63, %v570_v53  ;;  %v530_v41 = vld [vmem:[#allocation2 + $0x20] sm:$0xff]  ;;  %v4690_v12 = vsub.f32 %v527_v8, %v4683_v35  ;;  %v535_v8 = vld [vmem:[#allocation2 + $0x48] sm:$0xff] }
 0x1e2   : > { %3289 = vmatprep.subr.bf16.mxu1 %v4567_v37  ;;  %3385 = vmatprep.subr.bf16.mxu0 %v4567_v37  ;;  %v520_v48 = vmul.f32 %v3722_v43, %v4494_v14  ;;  %v4627_v25 = vsub.f32 %v518_v46, %v567_v54  ;;  %v787_v63 = vsub.f32 %v4595_v51, %v786_v40 }
 0x1e3   : > { %5567 = vst [vmem:[#allocation28_spill] sm:$0xff] %v4690_v12  ;;  %v635_v46 = vand.u32 4294901760, %v4690_v12 }
 0x1e4   : > { %v3724_v44 = vpop.eup %3723  ;;  %v573_v11 = vand.u32 4294901760, %v520_v48  ;;  %v4657_v30 = vpack.c.bf16 %v4623_v3, %v4627_v25 }
 0x1e5   : > { %v3726_v62 = vpop.eup %3725  ;;  %v523_v17 = vmul.f32 %v3724_v44, %v4501_v18  ;;  %v4600_v18 = vsub.f32 %v4528_v49, %v549_v28  ;;  %v4617_v49 = vsub.f32 %v4557_v2, %v555_v34  ;;  %v4619_v28 = vsub.f32 %v516_v9, %v561_v42  ;;  %v529_v9 = vld [vmem:[#allocation2 + $0x18] sm:$0xff] }
 0x1e6   : > { %v522_v6 = vmul.f32 %v3726_v62, %v4504_v19  ;;  %v4604_v19 = vpack.c.bf16 %v4583_v16, %v4595_v51  ;;  %v4629_v20 = vsub.f32 %v520_v48, %v573_v11  ;;  %5560 = vst [vmem:[#allocation21_spill] sm:$0xff] %v4657_v30  ;;  %v4692_v42 = vand.u32 4294901760, %v528_v38  ;;  %v531_v62 = vld [vmem:[#allocation2 + $0x28] sm:$0xff] }
 0x1e7   : > { %v582_v21 = vand.u32 4294901760, %v523_v17  ;;  %v4633_v60 = vpack.c.bf16 %v4611_v57, %v4600_v18  ;;  %v4649_v2 = vpack.c.bf16 %v4614_v24, %v4617_v49  ;;  %v4653_v27 = vpack.c.bf16 %v4621_v61, %v4619_v28 }
 0x1e8   : > { %v3728_v45 = vpop.eup %3727  ;;  %v579_v29 = vand.u32 4294901760, %v522_v6  ;;  %v4694_v43 = vand.u32 4294901760, %v529_v9  ;;  %v794_v44 = vsub.f32 %v4583_v16, %v793_v36  ;;  %v4711_v16 = vand.u32 4294901760, %v531_v62 }
 0x1e9   : > { %v3730_v47 = vpop.eup %3729  ;;  %3291 = vmatpush3.bf16.xpose.msra.mxu1 %v4567_v37  ;;  %3387 = vmatpush3.bf16.xpose.msra.mxu0 %v4567_v37  ;;  %v525_v0 = vmul.f32 %v3728_v45, %v4511_v23  ;;  %v4606_v23 = vpack.c.bf16 %v570_v53, %v567_v54  ;;  %v4641_v1 = vsub.f32 %v523_v17, %v582_v21  ;;  %v4699_v45 = vand.u32 4294901760, %v530_v41  ;;  %v533_v17 = vld [vmem:[#allocation2 + $0x38] sm:$0xff] }
 0x1ea   : > { %3293 = vmatprep.subr.bf16.mxu1 %v4575_v13  ;;  %3389 = vmatprep.subr.bf16.mxu0 %v4575_v13  ;;  %v524_v14 = vmul.f32 %v3730_v47, %v4514_v26  ;;  %v576_v26 = vand.u32 4294901760, %v521_v50  ;;  %v4639_v10 = vsub.f32 %v522_v6, %v579_v29  ;;  %5559 = vst [vmem:[#allocation20_spill] sm:$0xff] %v4653_v27  ;;  %v795_v6 = vand.u32 4294901760, %v794_v44 }
 0x1eb   : > { %5558 = vst [vmem:[#allocation19_spill] sm:$0xff] %v4606_v23  ;;  %v588_v56 = vand.u32 4294901760, %v525_v0  ;;  %v4677_v34 = vpack.c.bf16 %v582_v21, %v579_v29  ;;  %v4706_v47 = vsub.f32 %v528_v38, %v4692_v42  ;;  %v4709_v48 = vsub.f32 %v529_v9, %v4694_v43 }
 0x1ec   : > { %v585_v52 = vand.u32 4294901760, %v524_v14  ;;  %v4637_v7 = vsub.f32 %v521_v50, %v576_v26  ;;  %v4665_v59 = vpack.c.bf16 %v4641_v1, %v4639_v10  ;;  %v4671_v33 = vpack.c.bf16 %v576_v26, %v573_v11  ;;  %v532_v50 = vld [vmem:[#allocation2 + $0x30] sm:$0xff]  ;;  %v534_v26 = vld [vmem:[#allocation2 + $0x40] sm:$0xff] }
 0x1ed   : > { %v4645_v22 = vsub.f32 %v525_v0, %v588_v56  ;;  %5565 = vst [vmem:[#allocation26_spill] sm:$0xff] %v4677_v34  ;;  %5568 = vst [vmem:[#allocation29_spill] sm:$0xff] %v4706_v47  ;;  %v800_v0 = vand.u32 4294901760, %v4600_v18  ;;  %v4716_v53 = vsub.f32 %v530_v41, %v4699_v45  ;;  %v788_v51 = vand.u32 4294901760, %v787_v63 }
 0x1ee   : > { %v4643_v15 = vsub.f32 %v524_v14, %v585_v52  ;;  %v4661_v58 = vpack.c.bf16 %v4637_v7, %v4629_v20  ;;  %5562 = vst [vmem:[#allocation23_spill] sm:$0xff] %v4665_v59  ;;  %5564 = vst [vmem:[#allocation25_spill] sm:$0xff] %v4671_v33  ;;  %v4686_v39 = vpack.c.bf16 %v588_v56, %v585_v52  ;;  %v807_v14 = vand.u32 4294901760, %v4611_v57 }
 0x1ef   : > { %5569 = vst [vmem:[#allocation30_spill] sm:$0xff] %v4716_v53  ;;  %v4718_v54 = vand.u32 4294901760, %v532_v50  ;;  %v4720_v11 = vand.u32 4294901760, %v533_v17  ;;  %v636_v21 = vsub.f32 %v4690_v12, %v635_v46  ;;  %v645_v29 = vand.u32 4294901760, %v4706_v47 }
 0x1f0   : > { %5561 = vst [vmem:[#allocation22_spill] sm:$0xff] %v4661_v58  ;;  %v4669_v5 = vpack.c.bf16 %v4645_v22, %v4643_v15  ;;  %5566 = vst [vmem:[#allocation27_spill] sm:$0xff] %v4686_v39  ;;  %v5519_v56 = vand.u32 4294901760, %v4709_v48  ;;  %v4726_v52 = vsub.f32 %v531_v62, %v4711_v16  ;;  %v3312_v38 = vpack.c.bf16 %v795_v6, %v788_v51 }
 0x1f1   : > { %3295 = vmatpush3.bf16.xpose.msra.mxu1 %v4575_v13  ;;  %3391 = vmatpush3.bf16.xpose.msra.mxu0 %v4575_v13  ;;  %v3408_v9 = vpack.c.bf16 %v793_v36, %v786_v40  ;;  %v801_v41 = vsub.f32 %v4600_v18, %v800_v0  ;;  %v808_v44 = vsub.f32 %v4611_v57, %v807_v14  ;;  %v665_v63 = vand.u32 4294901760, %v4716_v53  ;;  %v539_v13 = vld [vmem:[#allocation2 + $0x68] sm:$0xff] }
 0x1f2   : > { %3297 = vmatprep.subr.bf16.mxu1 %v4606_v23  ;;  %3393 = vmatprep.subr.bf16.mxu0 %v4606_v23  ;;  %5563 = vst [vmem:[#allocation24_spill] sm:$0xff] %v4669_v5  ;;  %v4733_v12 = vand.u32 4294901760, %v534_v26  ;;  %v4736_v62 = vsub.f32 %v532_v50, %v4718_v54  ;;  %v4739_v6 = vsub.f32 %v533_v17, %v4720_v11  ;;  %v4741_v36 = vand.u32 4294901760, %v535_v8  ;;  %v537_v17 = vld [vmem:[#allocation2 + $0x58] sm:$0xff] }
 0x1f3   : > { %v637_v18 = vand.u32 4294901760, %v636_v21  ;;  %v646_v57 = vsub.f32 %v4706_v47, %v645_v29  ;;  %v656_v40 = vsub.f32 %v4709_v48, %v5519_v56  ;;  %v802_v5 = vand.u32 4294901760, %v801_v41  ;;  %v538_v41 = vld [vmem:[#allocation2 + $0x60] sm:$0xff] }
 0x1f4   : > { %5570 = vst [vmem:[#allocation31_spill] sm:$0xff] %v4736_v62  ;;  %5571 = vst [vmem:[#allocation32_spill] sm:$0xff] %v4739_v6  ;;  %v814_v50 = vand.u32 4294901760, %v4617_v49  ;;  %v821_v59 = vand.u32 4294901760, %v4614_v24  ;;  %v4752_v21 = vsub.f32 %v534_v26, %v4733_v12  ;;  %v4757_v56 = vsub.f32 %v535_v8, %v4741_v36 }
 0x1f5   : > { %v647_v32 = vand.u32 4294901760, %v646_v57  ;;  %v657_v8 = vand.u32 4294901760, %v656_v40  ;;  %v828_v40 = vand.u32 4294901760, %v4619_v28 }
 0x1f6   : > { %5572 = vst [vmem:[#allocation33_spill] sm:$0xff] %v4752_v21  ;;  %v815_v47 = vsub.f32 %v4617_v49, %v814_v50  ;;  %v822_v58 = vsub.f32 %v4614_v24, %v821_v59  ;;  %v5531_v24 = vand.u32 4294901760, %v4757_v56 }
 0x1f8   : > { %v823_v57 = vand.u32 4294901760, %v822_v58  ;;  %v716_v58 = vsub.f32 %v4757_v56, %v5531_v24 }
 0x1f9   : > { %3299 = vmatpush3.bf16.xpose.msra.mxu1 %v4606_v23  ;;  %3395 = vmatpush3.bf16.xpose.msra.mxu0 %v4606_v23  ;;  %v5573_v23 = vand.u32 4294901760, %v4726_v52 }
 0x1fa   : > { %3301 = vmatprep.subr.bf16.mxu1 %v4671_v33  ;;  %3397 = vmatprep.subr.bf16.mxu0 %v4671_v33 }
 0x1fb   : > { %v676_v30 = vsub.f32 %v4726_v52, %v5573_v23  ;;  %v5575_v23 = vand.u32 4294901760, %v4736_v62 }
 0x201   : > { %3303 = vmatpush3.bf16.xpose.msra.mxu1 %v4671_v33  ;;  %3399 = vmatpush3.bf16.xpose.msra.mxu0 %v4671_v33  ;;  %v666_v33 = vsub.f32 %v4716_v53, %v665_v63  ;;  %v4764_v53 = vand.u32 4294901760, %v537_v17 }
 0x202   : > { %3305 = vmatprep.subr.bf16.mxu1 %v4677_v34  ;;  %3401 = vmatprep.subr.bf16.mxu0 %v4677_v34 }
 0x203   : > { %5574 = vst [vmem:[#allocation34_spill] sm:$0xff] %v4764_v53  ;;  %v667_v27 = vand.u32 4294901760, %v666_v33  ;;  %v677_v33 = vand.u32 4294901760, %v676_v30 }
 0x209   : > { %3307 = vmatpush3.bf16.xpose.msra.mxu1 %v4677_v34  ;;  %3403 = vmatpush3.bf16.xpose.msra.mxu0 %v4677_v34  ;;  %v809_v34 = vand.u32 4294901760, %v808_v44  ;;  %v3412_v44 = vpack.c.bf16 %v807_v14, %v800_v0  ;;  %v705_v0 = vand.u32 4294901760, %v4752_v21  ;;  %v4769_v14 = vand.u32 4294901760, %v538_v41 }
 0x20a   : > { %3309 = vmatprep.subr.bf16.mxu1 %v4686_v39  ;;  %3405 = vmatprep.subr.bf16.mxu0 %v4686_v39 }
 0x20b   : > { %v3316_v26 = vpack.c.bf16 %v809_v34, %v802_v5  ;;  %v5576_v5 = vand.u32 4294901760, %v4739_v6  ;;  %v4792_v30 = vsub.f32 %v538_v41, %v4769_v14  ;;  %v829_v41 = vsub.f32 %v4619_v28, %v828_v40 }
 0x20c   : > { %v842_v28 = vand.u32 4294901760, %v4627_v25 }
 0x20d   : > { %v696_v49 = vsub.f32 %v4739_v6, %v5576_v5  ;;  %v5579_v5 = vand.u32 4294901760, %v4709_v48 }
 0x211   : > { %3311 = vmatpush3.bf16.xpose.msra.mxu1 %v4686_v39  ;;  %3407 = vmatpush3.bf16.xpose.msra.mxu0 %v4686_v39  ;;  %v536_v39 = vld [vmem:[#allocation2 + $0x50] sm:$0xff] }
 0x212   : > { %3313 = vmatprep.subr.bf16.mxu1 %v3312_v38  ;;  %3409 = vmatprep.subr.bf16.mxu0 %v3408_v9  ;;  %v4759_v51 = vand.u32 4294901760, %v536_v39 }
 0x214   : > { %v4779_v34 = vsub.f32 %v536_v39, %v4759_v51  ;;  %v540_v39 = vld [vmem:[#allocation2 + $0x70] sm:$0xff] }
 0x216   : > { %5577 = vst [vmem:[#allocation35_spill] sm:$0xff] %v4779_v34 }
 0x218   : > { %2977 = vmatmul.mubr.f32.vlgmr.msra.gmra.mrb[0].mxu1 %v637_v18  ;;  %3145 = vmatmul.mubr.f32.vlgmr.msra.gmra.mrb[0].mxu0 %v635_v46  ;;  %v686_v46 = vsub.f32 %v4736_v62, %v5575_v23  ;;  %v816_v18 = vand.u32 4294901760, %v815_v47  ;;  %v835_v23 = vand.u32 4294901760, %v4621_v61  ;;  %v697_v47 = vand.u32 4294901760, %v696_v49 }
 0x219   : > { %3315 = vmatpush3.bf16.xpose.msra.mxu1 %v3312_v38  ;;  %3411 = vmatpush3.bf16.xpose.msra.mxu0 %v3408_v9  ;;  %v4782_v38 = vsub.f32 %v537_v17, %v4764_v53  ;;  %v4784_v9 = vand.u32 4294901760, %v539_v13  ;;  %v3416_v53 = vpack.c.bf16 %v821_v59, %v814_v50  ;;  %v5580_v49 = vand.u32 4294901760, %v4726_v52 }
 0x21a   : > { %3317 = vmatprep.subr.bf16.mxu1 %v3316_v26  ;;  %3413 = vmatprep.subr.bf16.mxu0 %v3412_v44  ;;  %v687_v17 = vand.u32 4294901760, %v686_v46  ;;  %v836_v46 = vsub.f32 %v4621_v61, %v835_v23  ;;  %v745_v50 = vand.u32 4294901760, %v4792_v30  ;;  %v5581_v61 = vand.u32 4294901760, %v4736_v62 }
 0x21b   : > { %2979 = vmatprep.mubr.f32.mxu1 %v647_v32  ;;  %3147 = vmatprep.mubr.f32.mxu0 %v645_v29  ;;  %5578 = vst [vmem:[#allocation36_spill] sm:$0xff] %v4782_v38  ;;  %v706_v32 = vsub.f32 %v4752_v21, %v705_v0  ;;  %v541_v29 = vld [vmem:[#allocation2 + $0x78] sm:$0xff]  ;;  %v3320_v21 = vpack.c.bf16 %v823_v57, %v816_v18 }
 0x21c   : > { %2980 = vmatmul.mubr.f32.gmra.mrb[2].mxu1 %v657_v8  ;;  %3148 = vmatmul.mubr.f32.gmra.mrb[2].mxu0 %v5579_v5  ;;  %v725_v8 = vand.u32 4294901760, %v4779_v34  ;;  %v735_v5 = vand.u32 4294901760, %v4782_v38  ;;  %v4808_v24 = vand.u32 4294901760, %v541_v29 }
 0x21d   : > { %2982 = vmatprep.mubr.f32.mxu1 %v667_v27  ;;  %3150 = vmatprep.mubr.f32.mxu0 %v665_v63  ;;  %v4800_v27 = vsub.f32 %v539_v13, %v4784_v9  ;;  %v4802_v63 = vand.u32 4294901760, %v540_v39  ;;  %v707_v59 = vand.u32 4294901760, %v706_v32  ;;  %v717_v13 = vand.u32 4294901760, %v716_v58 }
 0x21e   : > { %v726_v18 = vsub.f32 %v4779_v34, %v725_v8  ;;  %v837_v32 = vand.u32 4294901760, %v836_v46  ;;  %v5582_v58 = vand.u32 4294901760, %v4739_v6  ;;  %v843_v34 = vsub.f32 %v4627_v25, %v842_v28 }
 0x21f   : > { %v755_v57 = vand.u32 4294901760, %v4800_v27 }
 0x220   : > { %2983 = vmatmul.mubr.f32.gmra.mrb[4].mxu1 %v677_v33  ;;  %3151 = vmatmul.mubr.f32.gmra.mrb[4].mxu0 %v5580_v49  ;;  %v736_v33 = vsub.f32 %v4782_v38, %v735_v5  ;;  %v849_v49 = vand.u32 4294901760, %v4623_v3  ;;  %v727_v38 = vand.u32 4294901760, %v726_v18  ;;  %v844_v25 = vand.u32 4294901760, %v843_v34 }
 0x221   : > { %3319 = vmatpush3.bf16.xpose.msra.mxu1 %v3316_v26  ;;  %3415 = vmatpush3.bf16.xpose.msra.mxu0 %v3412_v44  ;;  %v4818_v44 = vsub.f32 %v540_v39, %v4802_v63  ;;  %v830_v26 = vand.u32 4294901760, %v829_v41  ;;  %v756_v41 = vsub.f32 %v4800_v27, %v755_v57 }
 0x222   : > { %3321 = vmatprep.subr.bf16.mxu1 %v3320_v21  ;;  %3417 = vmatprep.subr.bf16.mxu0 %v3416_v53  ;;  %v737_v39 = vand.u32 4294901760, %v736_v33  ;;  %v850_v6 = vsub.f32 %v4623_v3, %v849_v49  ;;  %v856_v3 = vand.u32 4294901760, %v4629_v20 }
 0x223   : > { %2985 = vmatprep.mubr.f32.mxu1 %v687_v17  ;;  %3153 = vmatprep.mubr.f32.mxu0 %v5581_v61  ;;  %v4824_v17 = vsub.f32 %v541_v29, %v4808_v24  ;;  %v746_v61 = vsub.f32 %v4792_v30, %v745_v50  ;;  %v765_v46 = vand.u32 4294901760, %v4818_v44  ;;  %v3324_v62 = vpack.c.bf16 %v837_v32, %v830_v26 }
 0x224   : > { %2986 = vmatmul.mubr.f32.gmra.mrb[6].mxu1 %v697_v47  ;;  %3154 = vmatmul.mubr.f32.gmra.mrb[6].mxu0 %v5582_v58  ;;  %v3420_v47 = vpack.c.bf16 %v835_v23, %v828_v40  ;;  %v5583_v29 = vand.u32 4294901760, %v4757_v56  ;;  %v757_v18 = vand.u32 4294901760, %v756_v41  ;;  %v851_v40 = vand.u32 4294901760, %v850_v6 }
 0x225   : > { %2988 = vmatprep.mubr.f32.mxu1 %v707_v59  ;;  %3156 = vmatprep.mubr.f32.mxu0 %v705_v0  ;;  %v775_v0 = vand.u32 4294901760, %v4824_v17  ;;  %v747_v59 = vand.u32 4294901760, %v746_v61  ;;  %v766_v33 = vsub.f32 %v4818_v44, %v765_v46  ;;  %v863_v23 = vand.u32 4294901760, %v4637_v7 }
 0x226   : > { %v3328_v26 = vpack.c.bf16 %v851_v40, %v844_v25  ;;  %v857_v34 = vsub.f32 %v4629_v20, %v856_v3  ;;  %v884_v58 = vand.u32 4294901760, %v4643_v15  ;;  %v891_v61 = vand.u32 4294901760, %v4645_v22  ;;  %v5593_v25 = vld [vmem:[#allocation26_spill] sm:$0xff]  ;;  %v5597_v40 = vld [vmem:[#allocation29_spill] sm:$0xff] }
 0x228   : > { %2989 = vmatmul.mubr.f32.gmra.mrb[8].mxu1 %v717_v13  ;;  %3157 = vmatmul.mubr.f32.gmra.mrb[8].mxu0 %v5583_v29  ;;  %v776_v13 = vsub.f32 %v4824_v17, %v775_v0 }
 0x229   : > { %3323 = vmatpush3.bf16.xpose.msra.mxu1 %v3320_v21  ;;  %3419 = vmatpush3.bf16.xpose.msra.mxu0 %v3416_v53  ;;  %v3424_v53 = vpack.c.bf16 %v849_v49, %v842_v28  ;;  %v767_v21 = vand.u32 4294901760, %v766_v33  ;;  %v877_v28 = vand.u32 4294901760, %v4641_v1  ;;  %v5596_v33 = vld [vmem:[#allocation28_spill] sm:$0xff] }
 0x22a   : > { %3325 = vmatprep.subr.bf16.mxu1 %v3324_v62  ;;  %3421 = vmatprep.subr.bf16.mxu0 %v3420_v47  ;;  %v777_v6 = vand.u32 4294901760, %v776_v13 }
 0x22b   : > { %2991 = vmatprep.mubr.f32.mxu1 %v727_v38  ;;  %3159 = vmatprep.mubr.f32.mxu0 %v725_v8  ;;  %v864_v38 = vsub.f32 %v4637_v7, %v863_v23  ;;  %v858_v8 = vand.u32 4294901760, %v857_v34  ;;  %v3428_v7 = vpack.c.bf16 %v863_v23, %v856_v3  ;;  %v5598_v3 = vld [vmem:[#allocation30_spill] sm:$0xff]  ;;  %v5599_v23 = vld [vmem:[#allocation31_spill] sm:$0xff] }
 0x22c   : > { %2992 = vmatmul.mubr.f32.gmra.mrb[10].mxu1 %v737_v39  ;;  %3160 = vmatmul.mubr.f32.gmra.mrb[10].mxu0 %v735_v5 }
 0x22d   : > { %2994 = vmatprep.mubr.f32.mxu1 %v747_v59  ;;  %3162 = vmatprep.mubr.f32.mxu0 %v745_v50  ;;  %v865_v5 = vand.u32 4294901760, %v864_v38  ;;  %v870_v50 = vand.u32 4294901760, %v4639_v10  ;;  %v5592_v59 = vld [vmem:[#allocation23_spill] sm:$0xff] }
 0x22f   : > { %v3332_v20 = vpack.c.bf16 %v865_v5, %v858_v8  ;;  %v3432_v41 = vpack.c.bf16 %v877_v28, %v870_v50 }
 0x230   : > { %2995 = vmatmul.mubr.f32.gmra.mrb[12].mxu1 %v757_v18  ;;  %3163 = vmatmul.mubr.f32.gmra.mrb[12].mxu0 %v755_v57  ;;  %v878_v57 = vsub.f32 %v4641_v1, %v877_v28  ;;  %v5595_v18 = vld [vmem:[#allocation27_spill] sm:$0xff] }
 0x231   : > { %3327 = vmatpush3.bf16.xpose.msra.mxu1 %v3324_v62  ;;  %3423 = vmatpush3.bf16.xpose.msra.mxu0 %v3420_v47  ;;  %v871_v62 = vsub.f32 %v4639_v10, %v870_v50  ;;  %v892_v47 = vsub.f32 %v4645_v22, %v891_v61  ;;  %v5590_v22 = vld [vmem:[#allocation22_spill] sm:$0xff] }
 0x232   : > { %3329 = vmatprep.subr.bf16.mxu1 %v3328_v26  ;;  %3425 = vmatprep.subr.bf16.mxu0 %v3424_v53  ;;  %v879_v49 = vand.u32 4294901760, %v878_v57 }
 0x233   : > { %2997 = vmatprep.mubr.f32.mxu1 %v767_v21  ;;  %3165 = vmatprep.mubr.f32.mxu0 %v765_v46  ;;  %v872_v32 = vand.u32 4294901760, %v871_v62  ;;  %v885_v46 = vsub.f32 %v4643_v15, %v884_v58  ;;  %v893_v1 = vand.u32 4294901760, %v892_v47  ;;  %v5589_v15 = vld [vmem:[#allocation17_spill] sm:$0xff] }
 0x234   : > { %2998 = vmatmul.mubr.f32.gmra.mrb[14].mxu1 %v777_v6  ;;  %3166 = vmatmul.mubr.f32.gmra.mrb[14].mxu0 %v775_v0  ;;  %v3436_v0 = vpack.c.bf16 %v891_v61, %v884_v58 }
 0x235   : > { %3032 = vmatprep.mubr.f32.mxu1 %v4520_v31  ;;  %3200 = vmatprep.mubr.f32.mxu0 %v4520_v31  ;;  %v3336_v39 = vpack.c.bf16 %v879_v49, %v872_v32  ;;  %v886_v10 = vand.u32 4294901760, %v885_v46 }
 0x237   : > { %v3340_v29 = vpack.c.bf16 %v893_v1, %v886_v10 }
 0x239   : > { %3331 = vmatpush3.bf16.xpose.msra.mxu1 %v3328_v26  ;;  %3427 = vmatpush3.bf16.xpose.msra.mxu0 %v3424_v53 }
 0x23a   : > { %3333 = vmatprep.subr.bf16.mxu1 %v3332_v20  ;;  %3429 = vmatprep.subr.bf16.mxu0 %v3428_v7 }
 0x241   : > { %3335 = vmatpush3.bf16.xpose.msra.mxu1 %v3332_v20  ;;  %3431 = vmatpush3.bf16.xpose.msra.mxu0 %v3428_v7 }
 0x242   : > { %3337 = vmatprep.subr.bf16.mxu1 %v3336_v39  ;;  %3433 = vmatprep.subr.bf16.mxu0 %v3432_v41 }
 0x249   : > { %3339 = vmatpush3.bf16.xpose.msra.mxu1 %v3336_v39  ;;  %3435 = vmatpush3.bf16.xpose.msra.mxu0 %v3432_v41 }
 0x24a   : > { %3341 = vmatprep.subr.bf16.mxu1 %v3340_v29  ;;  %3437 = vmatprep.subr.bf16.mxu0 %v3436_v0 }
 0x251   : > { %3343 = vmatpush3.bf16.xpose.msra.mxu1 %v3340_v29  ;;  %3439 = vmatpush3.bf16.xpose.msra.mxu0 %v3436_v0 }
 0x252   : > { %3345 = vmatprep.subr.bf16.mxu1 %v4604_v19  ;;  %3441 = vmatprep.subr.bf16.mxu0 %v4551_v4 }
 0x258   : > { %3033 = vmatmul.mubr.f32.vlgmr.msra.gmra.mrb[0].mxu1 %v4683_v35  ;;  %3201 = vmatmul.mubr.f32.vlgmr.msra.gmra.mrb[0].mxu0 %v4683_v35 }
 0x259   : > { %3347 = vmatpush3.bf16.xpose.msra.mxu1 %v4604_v19  ;;  %3443 = vmatpush3.bf16.xpose.msra.mxu0 %v4551_v4  ;;  %v5585_v4 = vld [vmem:[#allocation18_spill] sm:$0xff] }
 0x25a   : > { %3349 = vmatprep.subr.bf16.mxu1 %v4633_v60  ;;  %3445 = vmatprep.subr.bf16.mxu0 %v4547_v55  ;;  %v5586_v19 = vld [vmem:[#allocation34_spill] sm:$0xff] }
 0x25b   : > { %3035 = vmatprep.mubr.f32.mxu1 %v4692_v42  ;;  %3203 = vmatprep.mubr.f32.mxu0 %v4692_v42 }
 0x25c   : > { %3036 = vmatmul.mubr.f32.gmra.mrb[2].mxu1 %v4694_v43  ;;  %3204 = vmatmul.mubr.f32.gmra.mrb[2].mxu0 %v4694_v43 }
 0x25d   : > { %3038 = vmatprep.mubr.f32.mxu1 %v4699_v45  ;;  %3206 = vmatprep.mubr.f32.mxu0 %v4699_v45 }
 0x260   : > { %3039 = vmatmul.mubr.f32.gmra.mrb[4].mxu1 %v4711_v16  ;;  %3207 = vmatmul.mubr.f32.gmra.mrb[4].mxu0 %v4711_v16 }
 0x261   : > { %3351 = vmatpush3.bf16.xpose.msra.mxu1 %v4633_v60  ;;  %3447 = vmatpush3.bf16.xpose.msra.mxu0 %v4547_v55  ;;  %v5584_v55 = vld [vmem:[#allocation20_spill] sm:$0xff]  ;;  %v5588_v60 = vld [vmem:[#allocation19_spill] sm:$0xff] }
 0x262   : > { %3353 = vmatprep.subr.bf16.mxu1 %v4649_v2  ;;  %3449 = vmatprep.subr.bf16.mxu0 %v4567_v37 }
 0x263   : > { %3041 = vmatprep.mubr.f32.mxu1 %v4718_v54  ;;  %3209 = vmatprep.mubr.f32.mxu0 %v4718_v54 }
 0x264   : > { %3042 = vmatmul.mubr.f32.gmra.mrb[6].mxu1 %v4720_v11  ;;  %3210 = vmatmul.mubr.f32.gmra.mrb[6].mxu0 %v4720_v11 }
 0x265   : > { %3044 = vmatprep.mubr.f32.mxu1 %v4733_v12  ;;  %3212 = vmatprep.mubr.f32.mxu0 %v4733_v12 }
 0x268   : > { %3045 = vmatmul.mubr.f32.gmra.mrb[8].mxu1 %v4741_v36  ;;  %3213 = vmatmul.mubr.f32.gmra.mrb[8].mxu0 %v4741_v36 }
 0x269   : > { %3355 = vmatpush3.bf16.xpose.msra.mxu1 %v4649_v2  ;;  %3451 = vmatpush3.bf16.xpose.msra.mxu0 %v4567_v37  ;;  %v5587_v37 = vld [vmem:[#allocation21_spill] sm:$0xff] }
 0x26a   : > { %3357 = vmatprep.subr.bf16.mxu1 %v5584_v55  ;;  %3453 = vmatprep.subr.bf16.mxu0 %v5585_v4  ;;  %v5591_v2 = vld [vmem:[#allocation25_spill] sm:$0xff] }
 0x26b   : > { %3047 = vmatprep.mubr.f32.mxu1 %v4759_v51  ;;  %3215 = vmatprep.mubr.f32.mxu0 %v4759_v51 }
 0x26c   : > { %3048 = vmatmul.mubr.f32.gmra.mrb[10].mxu1 %v5586_v19  ;;  %3216 = vmatmul.mubr.f32.gmra.mrb[10].mxu0 %v5586_v19 }
 0x26d   : > { %3050 = vmatprep.mubr.f32.mxu1 %v4769_v14  ;;  %3218 = vmatprep.mubr.f32.mxu0 %v4769_v14 }
 0x270   : > { %3051 = vmatmul.mubr.f32.gmra.mrb[12].mxu1 %v4784_v9  ;;  %3219 = vmatmul.mubr.f32.gmra.mrb[12].mxu0 %v4784_v9 }
 0x271   : > { %3359 = vmatpush3.bf16.xpose.msra.mxu1 %v5584_v55  ;;  %3455 = vmatpush3.bf16.xpose.msra.mxu0 %v5585_v4 }
 0x272   : > { %3361 = vmatprep.subr.bf16.mxu1 %v5587_v37  ;;  %3457 = vmatprep.subr.bf16.mxu0 %v5588_v60 }
 0x273   : > { %3053 = vmatprep.mubr.f32.mxu1 %v4802_v63  ;;  %3221 = vmatprep.mubr.f32.mxu0 %v4802_v63 }
 0x274   : > { %3054 = vmatmul.mubr.f32.gmra.mrb[14].mxu1 %v4808_v24  ;;  %3222 = vmatmul.mubr.f32.gmra.mrb[14].mxu0 %v4808_v24 }
 0x275   : > { %3088 = vmatprep.mubr.f32.mxu1 %v5589_v15  ;;  %3256 = vmatprep.mubr.f32.mxu0 %v4520_v31  ;;  %v5594_v31 = vld [vmem:[#allocation24_spill] sm:$0xff] }
 0x279   : > { %3363 = vmatpush3.bf16.xpose.msra.mxu1 %v5587_v37  ;;  %3459 = vmatpush3.bf16.xpose.msra.mxu0 %v5588_v60  ;;  %v1845_v60 = vlaneseq (!%p2740_p12) }
 0x27a   : > { %3365 = vmatprep.subr.bf16.mxu1 %v5590_v22  ;;  %3461 = vmatprep.subr.bf16.mxu0 %v5591_v2 }
 0x27b   : > { %v1846_v15 = vshrl.u32 (!%p2740_p12), %v1845_v60, 7 }
 0x281   : > { %3367 = vmatpush3.bf16.xpose.msra.mxu1 %v5590_v22  ;;  %3463 = vmatpush3.bf16.xpose.msra.mxu0 %v5591_v2  ;;  %v1863_v22 = vand.u32 (!%p2740_p12), 127, %v1845_v60  ;;  %v1848_v2 = vadd.s32 (!%p2740_p12), 16, %v1846_v15 }
 0x282   : > { %3369 = vmatprep.subr.bf16.mxu1 %v5592_v59  ;;  %3465 = vmatprep.subr.bf16.mxu0 %v5593_v25 }
 0x283   : > { %vm1864_vm1 = vcmp.eq.s32.totalorder (!%p2740_p12), %v1846_v15, %v1863_v22  ;;  %vm1866_vm2 = vcmp.eq.s32.totalorder (!%p2740_p12), %v1848_v2, %v1863_v22 }
 0x289   : > { %3371 = vmatpush3.bf16.xpose.msra.mxu1 %v5592_v59  ;;  %3467 = vmatpush3.bf16.xpose.msra.mxu0 %v5593_v25  ;;  %v1849_v59 = vadd.s32 (!%p2740_p12), 24, %v1846_v15  ;;  %v1847_v25 = vadd.s32 (!%p2740_p12), 8, %v1846_v15 }
 0x28a   : > { %3373 = vmatprep.subr.bf16.mxu1 %v5594_v31  ;;  %3469 = vmatprep.subr.bf16.mxu0 %v5595_v18 }
 0x28b   : > { %vm1867_vm3 = vcmp.eq.s32.totalorder (!%p2740_p12), %v1849_v59, %v1863_v22  ;;  %vm1865_vm4 = vcmp.eq.s32.totalorder (!%p2740_p12), %v1847_v25, %v1863_v22 }
 0x291   : > { %3375 = vmatpush3.bf16.xpose.msra.mxu1 %v5594_v31  ;;  %3471 = vmatpush3.bf16.xpose.msra.mxu0 %v5595_v18  ;;  %v1850_v18 = vadd.s32 (!%p2740_p12), 32, %v1846_v15 }
 0x293   : > { %vm1868_vm5 = vcmp.eq.s32.totalorder (!%p2740_p12), %v1850_v18, %v1863_v22 }
 0x298   : > { %3089 = vmatmul.mubr.f32.vlgmr.msra.gmra.mrb[0].mxu1 %v5596_v33  ;;  %3257 = vmatmul.mubr.f32.vlgmr.msra.gmra.mrb[0].mxu0 %v4683_v35  ;;  %v5600_v35 = vld [vmem:[#allocation32_spill] sm:$0xff]  ;;  %v1851_v33 = vadd.s32 (!%p2740_p12), 40, %v1846_v15 }
 0x299   : > { %3091 = vmatprep.mubr.f32.mxu1 %v5597_v40  ;;  %3259 = vmatprep.mubr.f32.mxu0 %v4692_v42  ;;  %v5601_v42 = vld [vmem:[#allocation33_spill] sm:$0xff] }
 0x29a   : > { %vm1869_vm6 = vcmp.eq.s32.totalorder (!%p2740_p12), %v1851_v33, %v1863_v22 }
 0x29c   : > { %3092 = vmatmul.mubr.f32.gmra.mrb[2].mxu1 %v4709_v48  ;;  %3260 = vmatmul.mubr.f32.gmra.mrb[2].mxu0 %v4694_v43  ;;  %v5602_v43 = vld [vmem:[#allocation35_spill] sm:$0xff] }
 0x29d   : > { %3094 = vmatprep.mubr.f32.mxu1 %v5598_v3  ;;  %3262 = vmatprep.mubr.f32.mxu0 %v4699_v45  ;;  %v5603_v45 = vld [vmem:[#allocation36_spill] sm:$0xff] }
 0x2a0   : > { %3095 = vmatmul.mubr.f32.gmra.mrb[4].mxu1 %v4726_v52  ;;  %3263 = vmatmul.mubr.f32.gmra.mrb[4].mxu0 %v4711_v16 }
 0x2a1   : > { %3097 = vmatprep.mubr.f32.mxu1 %v5599_v23  ;;  %3265 = vmatprep.mubr.f32.mxu0 %v4718_v54  ;;  %v1852_v23 = vadd.s32 (!%p2740_p12), 48, %v1846_v15 }
 0x2a3   : > { %vm1870_vm7 = vcmp.eq.s32.totalorder (!%p2740_p12), %v1852_v23, %v1863_v22 }
 0x2a4   : > { %3098 = vmatmul.mubr.f32.gmra.mrb[6].mxu1 %v5600_v35  ;;  %3266 = vmatmul.mubr.f32.gmra.mrb[6].mxu0 %v4720_v11 }
 0x2a5   : > { %3100 = vmatprep.mubr.f32.mxu1 %v5601_v42  ;;  %3268 = vmatprep.mubr.f32.mxu0 %v4733_v12  ;;  %v1853_v42 = vadd.s32 (!%p2740_p12), 56, %v1846_v15 }
 0x2a7   : > { %vm1871_vm8 = vcmp.eq.s32.totalorder (!%p2740_p12), %v1853_v42, %v1863_v22 }
 0x2a8   : > { %3101 = vmatmul.mubr.f32.gmra.mrb[8].mxu1 %v4757_v56  ;;  %3269 = vmatmul.mubr.f32.gmra.mrb[8].mxu0 %v4741_v36 }
 0x2a9   : > { %3103 = vmatprep.mubr.f32.mxu1 %v5602_v43  ;;  %3271 = vmatprep.mubr.f32.mxu0 %v4759_v51 }
 0x2ac   : > { %3104 = vmatmul.mubr.f32.gmra.mrb[10].mxu1 %v5603_v45  ;;  %3272 = vmatmul.mubr.f32.gmra.mrb[10].mxu0 %v5586_v19  ;;  %v1854_v45 = vadd.s32 (!%p2740_p12), 64, %v1846_v15 }
 0x2ad   : > { %3106 = vmatprep.mubr.f32.mxu1 %v4792_v30  ;;  %3274 = vmatprep.mubr.f32.mxu0 %v4769_v14 }
 0x2ae   : > { %vm1872_vm9 = vcmp.eq.s32.totalorder (!%p2740_p12), %v1854_v45, %v1863_v22 }
 0x2b0   : > { %3107 = vmatmul.mubr.f32.gmra.mrb[12].mxu1 %v4800_v27  ;;  %3275 = vmatmul.mubr.f32.gmra.mrb[12].mxu0 %v4784_v9 }
 0x2b1   : > { %3109 = vmatprep.mubr.f32.mxu1 %v4818_v44  ;;  %3277 = vmatprep.mubr.f32.mxu0 %v4802_v63 }
 0x2b4   : > { %3110 = vmatmul.mubr.f32.gmra.mrb[14].mxu1 %v4824_v17  ;;  %3278 = vmatmul.mubr.f32.gmra.mrb[14].mxu0 %v4808_v24 }
 0x36b   : > { %v3090_v12 = vpop.f32.mrb[0].mxu1  ;;  %v3258_v48 = vpop.f32.mrb[0].mxu0 }
 0x36c   : > { %v4947_v16 = vadd.f32 %v3258_v48, %v3090_v12  ;;  %v1124_v54 = vpop.f32.mrb[1].mxu1  ;;  %v1734_v11 = vpop.f32.mrb[1].mxu0  ;;  %v1855_v48 = vadd.s32 (!%p2740_p12), 72, %v1846_v15 }
 0x36d   : > { %v4949_v56 = vadd.f32 %v1734_v11, %v1124_v54  ;;  %v1856_v11 = vadd.s32 (!%p2740_p12), 80, %v1846_v15 }
 0x36e   : > { %v1881_v3 = vsel (!%p2740_p12), %vm1865_vm4, %v4947_v16, 0.0  ;;  %vm1873_vm10 = vcmp.eq.s32.totalorder (!%p2740_p12), %v1855_v48, %v1863_v22 }
 0x36f   : > { %v3093_v52 = vpop.f32.mrb[2].mxu1  ;;  %v3261_v36 = vpop.f32.mrb[2].mxu0  ;;  %v1880_v31 = vsel (!%p2740_p12), %vm1864_vm1, %v4949_v56, 0.0  ;;  %vm1874_vm11 = vcmp.eq.s32.totalorder (!%p2740_p12), %v1856_v11, %v1863_v22  ;;  %vm1928_vm1 = vcmask (!%p2740_p12), 7168  }
 0x370   : > { %v4951_v51 = vadd.f32 %v3261_v36, %v3093_v52  ;;  %v1138_v14 = vpop.f32.mrb[3].mxu1  ;;  %v1746_v24 = vpop.f32.mrb[3].mxu0  ;;  %1896 = vadd.xlane.f32.xlu0 (!%p2740_p12), %v1880_v31  ;;  %v1857_v36 = vadd.s32 (!%p2740_p12), 88, %v1846_v15 }
 0x371   : > { %v4953_v9 = vadd.f32 %v1746_v24, %v1138_v14  ;;  %v1858_v24 = vadd.s32 (!%p2740_p12), 96, %v1846_v15 }
 0x372   : > { %v1883_v35 = vsel (!%p2740_p12), %vm1867_vm3, %v4951_v51, 0.0  ;;  %vm1875_vm12 = vcmp.eq.s32.totalorder (!%p2740_p12), %v1857_v36, %v1863_v22 }
 0x373   : > { %v3096_v30 = vpop.f32.mrb[4].mxu1  ;;  %v3264_v27 = vpop.f32.mrb[4].mxu0  ;;  %v1882_v40 = vsel (!%p2740_p12), %vm1866_vm2, %v4953_v9, 0.0  ;;  %vm1876_vm13 = vcmp.eq.s32.totalorder (!%p2740_p12), %v1858_v24, %v1863_v22 }
 0x374   : > { %v4955_v63 = vadd.f32 %v3264_v27, %v3096_v30  ;;  %v1152_v44 = vpop.f32.mrb[5].mxu1  ;;  %v1758_v17 = vpop.f32.mrb[5].mxu0  ;;  %1900 = vadd.xlane.f32.xlu1 (!%p2740_p12), %v1882_v40  ;;  %1898 = vadd.xlane.f32.xlu0 (!%p2740_p12), %v1881_v3  ;;  %v1859_v27 = vadd.s32 (!%p2740_p12), 104, %v1846_v15 }
 0x375   : > { %v4957_v13 = vadd.f32 %v1758_v17, %v1152_v44  ;;  %v1860_v17 = vadd.s32 (!%p2740_p12), 112, %v1846_v15 }
 0x376   : > { %v1885_v12 = vsel (!%p2740_p12), %vm1869_vm6, %v4955_v63, 0.0  ;;  %vm1877_vm14 = vcmp.eq.s32.totalorder (!%p2740_p12), %v1859_v27, %v1863_v22 }
 0x377   : > { %v3099_v53 = vpop.f32.mrb[6].mxu1  ;;  %v3267_v21 = vpop.f32.mrb[6].mxu0  ;;  %v1884_v43 = vsel (!%p2740_p12), %vm1868_vm5, %v4957_v13, 0.0  ;;  %vm1878_vm15 = vcmp.eq.s32.totalorder (!%p2740_p12), %v1860_v17, %v1863_v22 }
 0x378   : > { %v4959_v26 = vadd.f32 %v3267_v21, %v3099_v53  ;;  %v1166_v34 = vpop.f32.mrb[7].mxu1  ;;  %v1770_v38 = vpop.f32.mrb[7].mxu0  ;;  %1902 = vadd.xlane.f32.xlu1 (!%p2740_p12), %v1883_v35  ;;  %1904 = vadd.xlane.f32.xlu0 (!%p2740_p12), %v1884_v43  ;;  %v1861_v21 = vadd.s32 (!%p2740_p12), 120, %v1846_v15 }
 0x379   : > { %v4961_v6 = vadd.f32 %v1770_v38, %v1166_v34 }
 0x37a   : > { %v1887_v52 = vsel (!%p2740_p12), %vm1871_vm8, %v4959_v26, 0.0  ;;  %vm1879_vm0 = vcmp.eq.s32.totalorder (!%p2740_p12), %v1861_v21, %v1863_v22 }
 0x37b   : > { %v3102_v8 = vpop.f32.mrb[8].mxu1  ;;  %v3270_v5 = vpop.f32.mrb[8].mxu0  ;;  %v1886_v54 = vsel (!%p2740_p12), %vm1870_vm7, %v4961_v6, 0.0 }
 0x37c   : > { %v4963_v50 = vadd.f32 %v3270_v5, %v3102_v8  ;;  %v1180_v28 = vpop.f32.mrb[9].mxu1  ;;  %v1782_v20 = vpop.f32.mrb[9].mxu0  ;;  %1906 = vadd.xlane.f32.xlu1 (!%p2740_p12), %v1885_v12  ;;  %1908 = vadd.xlane.f32.xlu0 (!%p2740_p12), %v1886_v54 }
 0x37d   : > { %v4965_v7 = vadd.f32 %v1782_v20, %v1180_v28 }
 0x37e   : > { %v1889_v30 = vsel (!%p2740_p12), %vm1873_vm10, %v4963_v50, 0.0 }
 0x37f   : > { %v3105_v62 = vpop.f32.mrb[10].mxu1  ;;  %v3273_v57 = vpop.f32.mrb[10].mxu0  ;;  %v1888_v14 = vsel (!%p2740_p12), %vm1872_vm9, %v4965_v7, 0.0 }
 0x380   : > { %v4967_v32 = vadd.f32 %v3273_v57, %v3105_v62  ;;  %v1194_v49 = vpop.f32.mrb[11].mxu1  ;;  %v1794_v58 = vpop.f32.mrb[11].mxu0  ;;  %1910 = vadd.xlane.f32.xlu1 (!%p2740_p12), %v1887_v52  ;;  %1912 = vadd.xlane.f32.xlu0 (!%p2740_p12), %v1888_v14 }
 0x381   : > { %v4969_v61 = vadd.f32 %v1794_v58, %v1194_v49 }
 0x382   : > { %v1891_v53 = vsel (!%p2740_p12), %vm1875_vm12, %v4967_v32, 0.0 }
 0x383   : > { %v3108_v39 = vpop.f32.mrb[12].mxu1  ;;  %v3276_v41 = vpop.f32.mrb[12].mxu0  ;;  %1844 = sbr.rel (%p2740_p12) target bundleno = 1055 (0x41f), region = 44  ;;  %v1890_v44 = vsel (!%p2740_p12), %vm1874_vm11, %v4969_v61, 0.0 }
 0x384   : > { %v4971_v46 = vadd.f32 %v3276_v41, %v3108_v39  ;;  %v1208_v47 = vpop.f32.mrb[13].mxu1  ;;  %v1806_v10 = vpop.f32.mrb[13].mxu0  ;;  %1914 = vadd.xlane.f32.xlu1 (!%p2740_p12), %v1889_v30  ;;  %1916 = vadd.xlane.f32.xlu0 (!%p2740_p12), %v1890_v44 }
 0x385   : > { %v4973_v1 = vadd.f32 %v1806_v10, %v1208_v47 }
 0x386   : > { %v1893_v38 = vsel (!%p2740_p12), %vm1877_vm14, %v4971_v46, 0.0 }
 0x387   : > { %v3111_v29 = vpop.f32.mrb[14].mxu1  ;;  %v3279_v0 = vpop.f32.mrb[14].mxu0  ;;  %v1892_v34 = vsel (!%p2740_p12), %vm1876_vm13, %v4973_v1, 0.0 }
 0x388   : > { %v4975_v55 = vadd.f32 %v3279_v0, %v3111_v29  ;;  %v1222_v4 = vpop.f32.mrb[15].mxu1  ;;  %v1818_v19 = vpop.f32.mrb[15].mxu0  ;;  %1918 = vadd.xlane.f32.xlu1 (!%p2740_p12), %v1891_v53  ;;  %1920 = vadd.xlane.f32.xlu0 (!%p2740_p12), %v1892_v34 }
 0x389   : > { %v4977_v37 = vadd.f32 %v1818_v19, %v1222_v4 }
 0x38a   : > { %v1895_v5 = vsel %vm1879_vm0, %v4975_v55, 0.0 }
 0x38b   : > { %v1894_v8 = vsel %vm1878_vm15, %v4977_v37, 0.0 }
 0x38c   : > { %1922 = vadd.xlane.f32.xlu1 %v1893_v38  ;;  %1924 = vadd.xlane.f32.xlu0 %v1894_v8 }
 0x390   : > { %1926 = vadd.xlane.f32.xlu1 %v1895_v5 }
 0x3fd   : > { %v1897_v28 = vpop.xlane.xlu0 %1896 }
 0x3fe   : > { %1929 = vst.msk [vmem:[#allocation5] sm:$0xff] %vm1928_vm1, %v1897_v28 }
 0x401   : > { %v1901_v20 = vpop.xlane.xlu1 %1900  ;;  %v1899_v62 = vpop.xlane.xlu0 %1898 }
 0x402   : > { %1931 = vst.msk [vmem:[#allocation5 + $0x10] sm:$0xff] %vm1928_vm1, %v1901_v20  ;;  %1930 = vst.msk [vmem:[#allocation5 + $0x8] sm:$0xff] %vm1928_vm1, %v1899_v62 }
 0x405   : > { %v1903_v57 = vpop.xlane.xlu1 %1902  ;;  %v1905_v49 = vpop.xlane.xlu0 %1904 }
 0x406   : > { %1932 = vst.msk [vmem:[#allocation5 + $0x18] sm:$0xff] %vm1928_vm1, %v1903_v57  ;;  %1933 = vst.msk [vmem:[#allocation5 + $0x20] sm:$0xff] %vm1928_vm1, %v1905_v49 }
 0x409   : > { %v1907_v58 = vpop.xlane.xlu1 %1906  ;;  %v1909_v39 = vpop.xlane.xlu0 %1908 }
 0x40a   : > { %1934 = vst.msk [vmem:[#allocation5 + $0x28] sm:$0xff] %vm1928_vm1, %v1907_v58  ;;  %1935 = vst.msk [vmem:[#allocation5 + $0x30] sm:$0xff] %vm1928_vm1, %v1909_v39 }
 0x40d   : > { %v1911_v41 = vpop.xlane.xlu1 %1910  ;;  %v1913_v47 = vpop.xlane.xlu0 %1912 }
 0x40e   : > { %1936 = vst.msk [vmem:[#allocation5 + $0x38] sm:$0xff] %vm1928_vm1, %v1911_v41  ;;  %1937 = vst.msk [vmem:[#allocation5 + $0x40] sm:$0xff] %vm1928_vm1, %v1913_v47 }
 0x411   : > { %v1915_v10 = vpop.xlane.xlu1 %1914  ;;  %v1917_v29 = vpop.xlane.xlu0 %1916 }
 0x412   : > { %1938 = vst.msk [vmem:[#allocation5 + $0x48] sm:$0xff] %vm1928_vm1, %v1915_v10  ;;  %1939 = vst.msk [vmem:[#allocation5 + $0x50] sm:$0xff] %vm1928_vm1, %v1917_v29 }
 0x415   : > { %v1919_v0 = vpop.xlane.xlu1 %1918  ;;  %v1921_v4 = vpop.xlane.xlu0 %1920 }
 0x416   : > { %1940 = vst.msk [vmem:[#allocation5 + $0x58] sm:$0xff] %vm1928_vm1, %v1919_v0  ;;  %1941 = vst.msk [vmem:[#allocation5 + $0x60] sm:$0xff] %vm1928_vm1, %v1921_v4 }
 0x419   : > { %v1923_v19 = vpop.xlane.xlu1 %1922  ;;  %v1925_v60 = vpop.xlane.xlu0 %1924 }
 0x41a   : > { %1942 = vst.msk [vmem:[#allocation5 + $0x68] sm:$0xff] %vm1928_vm1, %v1923_v19  ;;  %1943 = vst.msk [vmem:[#allocation5 + $0x70] sm:$0xff] %vm1928_vm1, %v1925_v60 }
 0x41d   : > { %v1927_v15 = vpop.xlane.xlu1 %1926 }
 0x41e   : > { %1944 = vst.msk [vmem:[#allocation5 + $0x78] sm:$0xff] %vm1928_vm1, %v1927_v15 }
 0x41f PF: > { %s2741_s5 = sshll.u32 %s4005_s16, 7  ;;  %v1946_v22 = vlaneseq  ;;  %s2742_s9 = sshll.u32 %s4001_s15, 7  ;;  %v4025_v39 = vmov 0   ;;  %v5169_v10 = vld [vmem:[#allocation3] sm:$0xff]  ;;  %v5171_v29 = vld [vmem:[#allocation3 + $0x10] sm:$0xff]  ;;  %v5176_v4 = vld [vmem:[#allocation3 + $0x8] sm:$0xff] }
 0x420   : > { %v5015_v2 = vstv %s2741_s5  ;;  %v1983_v59 = vstv %s2742_s9  ;;  %3731 = vset.pattern.permute.xlu0 %v4025_v39  ;;  %3732 = vset.pattern.permute.xlu1 %v4025_v39  ;;  %v5186_v15 = vld [vmem:[#allocation3 + $0x18] sm:$0xff]  ;;  %p2743_p0 = scmp.ne.s32.totalorder %s4001_s15, 1 }
 0x421   : > { %v5017_v25 = vshrl.u32 %v1946_v22, 7  ;;  %v5019_v31 = vand.u32 127, %v1946_v22 }
 0x423   : > { %v1964_v18 = vadd.s32 %v5015_v2, %v5017_v25  ;;  %v5024_v33 = vadd.s32 %v1983_v59, %v5019_v31  ;;  %vm2001_vm2 = vcmp.ge.s32.totalorder %v5019_v31, 8  ;;  %v1949_v40 = vadd.s32 16, %v5017_v25 }
 0x424   : > { %v1948_v3 = vadd.s32 8, %v5017_v25  ;;  %v1950_v23 = vadd.s32 24, %v5017_v25  ;;  %v1952_v35 = vadd.s32 40, %v5017_v25  ;;  %v1954_v42 = vadd.s32 56, %v5017_v25 }
 0x425   : > { %vm1985_vm3 = vcmp.eq.s32.totalorder %v1964_v18, %v5024_v33  ;;  %v1966_v43 = vadd.s32 %v5015_v2, %v1949_v40  ;;  %v1951_v45 = vadd.s32 32, %v5017_v25  ;;  %v1955_v27 = vadd.s32 64, %v5017_v25 }
 0x426   : > { %vm2004_vm4 = vmor %vm1985_vm3, %vm2001_vm2  ;;  %v1965_v12 = vadd.s32 %v5015_v2, %v1948_v3  ;;  %v1967_v48 = vadd.s32 %v5015_v2, %v1950_v23  ;;  %v1969_v54 = vadd.s32 %v5015_v2, %v1952_v35  ;;  %v1971_v36 = vadd.s32 %v5015_v2, %v1954_v42  ;;  %v5214_v42 = vld [vmem:[#allocation3 + $0x30] sm:$0xff] }
 0x427   : > { %v5041_v11 = vsel %vm2004_vm4, -1e+09, %v4949_v56  ;;  %vm1987_vm5 = vcmp.eq.s32.totalorder %v1966_v43, %v5024_v33  ;;  %v1968_v52 = vadd.s32 %v5015_v2, %v1951_v45  ;;  %v1956_v56 = vadd.s32 72, %v5017_v25 }
 0x428   : > { %2036 = vmax.xlane.f32.xlu0 %v5041_v11  ;;  %vm2006_vm6 = vmor %vm1987_vm5, %vm2001_vm2  ;;  %vm1986_vm7 = vcmp.eq.s32.totalorder %v1965_v12, %v5024_v33  ;;  %vm1988_vm8 = vcmp.eq.s32.totalorder %v1967_v48, %v5024_v33  ;;  %vm1990_vm10 = vcmp.eq.s32.totalorder %v1969_v54, %v5024_v33  ;;  %v1957_v44 = vadd.s32 80, %v5017_v25  ;;  %v5224_v12 = vld [vmem:[#allocation3 + $0x38] sm:$0xff] }
 0x429   : > { %v5052_v14 = vsel %vm2006_vm6, -1e+09, %v4953_v9  ;;  %vm2005_vm9 = vmor %vm1986_vm7, %vm2001_vm2  ;;  %vm1989_vm12 = vcmp.eq.s32.totalorder %v1968_v52, %v5024_v33  ;;  %v1953_v9 = vadd.s32 48, %v5017_v25  ;;  %vm1992_vm14 = vcmp.eq.s32.totalorder %v1971_v36, %v5024_v33 }
 0x42a   : > { %2040 = vmax.xlane.f32.xlu1 %v5052_v14  ;;  %v5060_v24 = vsel %vm2005_vm9, -1e+09, %v4947_v16  ;;  %vm2007_vm11 = vmor %vm1988_vm8, %vm2001_vm2  ;;  %v1973_v17 = vadd.s32 %v5015_v2, %v1956_v56  ;;  %v1972_v53 = vadd.s32 %v5015_v2, %v1955_v27  ;;  %v1974_v38 = vadd.s32 %v5015_v2, %v1957_v44  ;;  %v5233_v56 = vld [vmem:[#allocation3 + $0x40] sm:$0xff]  ;;  %v5243_v44 = vld [vmem:[#allocation3 + $0x48] sm:$0xff] }
 0x42b   : > { %v5067_v30 = vsel %vm2007_vm11, -1e+09, %v4951_v51  ;;  %vm2009_vm13 = vmor %vm1990_vm10, %vm2001_vm2  ;;  %v1970_v16 = vadd.s32 %v5015_v2, %v1953_v9  ;;  %v1958_v51 = vadd.s32 88, %v5017_v25  ;;  %v1959_v8 = vadd.s32 96, %v5017_v25 }
 0x42c   : > { %2038 = vmax.xlane.f32.xlu0 %v5060_v24  ;;  %vm2008_vm15 = vmor %vm1989_vm12, %vm2001_vm2  ;;  %v5087_v34 = vsel %vm2009_vm13, -1e+09, %v4955_v63  ;;  %vm1993_vm4 = vcmp.eq.s32.totalorder %v1972_v53, %v5024_v33  ;;  %vm1994_vm5 = vcmp.eq.s32.totalorder %v1973_v17, %v5024_v33  ;;  %v1960_v5 = vadd.s32 104, %v5017_v25 }
 0x42d   : > { %v5083_v21 = vsel %vm2008_vm15, -1e+09, %v4957_v13  ;;  %vm1991_vm0 = vcmp.eq.s32.totalorder %v1970_v16, %v5024_v33  ;;  %vm2011_vm1 = vmor %vm1992_vm14, %vm2001_vm2  ;;  %v1975_v13 = vadd.s32 %v5015_v2, %v1958_v51  ;;  %vm1995_vm7 = vcmp.eq.s32.totalorder %v1974_v38, %v5024_v33  ;;  %v5252_v38 = vld [vmem:[#allocation3 + $0x50] sm:$0xff] }
 0x42e   : > { %2042 = vmax.xlane.f32.xlu1 %v5067_v30  ;;  %vm2010_vm3 = vmor %vm1991_vm0, %vm2001_vm2  ;;  %v5105_v28 = vsel %vm2011_vm1, -1e+09, %v4959_v26  ;;  %v1976_v20 = vadd.s32 %v5015_v2, %v1959_v8  ;;  %v1961_v62 = vadd.s32 112, %v5017_v25  ;;  %v1962_v26 = vadd.s32 120, %v5017_v25  ;;  %v5195_v25 = vld [vmem:[#allocation3 + $0x20] sm:$0xff] }
 0x42f   : > { %v5100_v63 = vsel %vm2010_vm3, -1e+09, %v4961_v6  ;;  %vm2012_vm6 = vmor %vm1993_vm4, %vm2001_vm2  ;;  %vm1996_vm9 = vcmp.eq.s32.totalorder %v1975_v13, %v5024_v33  ;;  %v1977_v6 = vadd.s32 %v5015_v2, %v1960_v5  ;;  %v5262_v5 = vld [vmem:[#allocation3 + $0x58] sm:$0xff] }
 0x430   : > { %2044 = vmax.xlane.f32.xlu0 %v5083_v21  ;;  %vm2013_vm8 = vmor %vm1994_vm5, %vm2001_vm2  ;;  %v5119_v57 = vsel %vm2012_vm6, -1e+09, %v4965_v7  ;;  %vm1997_vm11 = vcmp.eq.s32.totalorder %v1976_v20, %v5024_v33  ;;  %v1978_v58 = vadd.s32 %v5015_v2, %v1961_v62  ;;  %v1979_v7 = vadd.s32 %v5015_v2, %v1962_v26 }
 0x431   : > { %vm2014_vm10 = vmor %vm1995_vm7, %vm2001_vm2  ;;  %v5125_v49 = vsel %vm2013_vm8, -1e+09, %v4963_v50  ;;  %vm1998_vm13 = vcmp.eq.s32.totalorder %v1977_v6, %v5024_v33  ;;  %vm2356_vm5 = vcmask 7168  }
 0x432   : > { %2046 = vmax.xlane.f32.xlu1 %v5087_v34  ;;  %vm2015_vm12 = vmor %vm1996_vm9, %vm2001_vm2  ;;  %v5135_v41 = vsel %vm2014_vm10, -1e+09, %v4969_v61  ;;  %vm1999_vm15 = vcmp.eq.s32.totalorder %v1978_v58, %v5024_v33  ;;  %vm2000_vm1 = vcmp.eq.s32.totalorder %v1979_v7, %v5024_v33  ;;  %v5205_v33 = vld [vmem:[#allocation3 + $0x28] sm:$0xff]  ;;  %v5272_v58 = vld [vmem:[#allocation3 + $0x60] sm:$0xff] }
 0x433   : > { %vm2016_vm14 = vmor %vm1997_vm11, %vm2001_vm2  ;;  %v5141_v50 = vsel %vm2015_vm12, -1e+09, %v4967_v32 }
 0x434   : > { %2048 = vmax.xlane.f32.xlu0 %v5100_v63  ;;  %vm2017_vm0 = vmor %vm1998_vm13, %vm2001_vm2  ;;  %v5149_v61 = vsel %vm2016_vm14, -1e+09, %v4973_v1 }
 0x435   : > { %vm2018_vm3 = vmor %vm1999_vm15, %vm2001_vm2  ;;  %v5155_v32 = vsel %vm2017_vm0, -1e+09, %v4971_v46 }
 0x436   : > { %2050 = vmax.xlane.f32.xlu1 %v5105_v28  ;;  %vm2019_vm4 = vmor %vm2000_vm1, %vm2001_vm2  ;;  %v5161_v47 = vsel %vm2018_vm3, -1e+09, %v4977_v37 }
 0x437   : > { %v5165_v1 = vsel %vm2019_vm4, -1e+09, %v4975_v55 }
 0x438   : > { %2052 = vmax.xlane.f32.xlu0 %v5119_v57 }
 0x43a   : > { %2054 = vmax.xlane.f32.xlu1 %v5125_v49 }
 0x43c   : > { %2056 = vmax.xlane.f32.xlu0 %v5135_v41 }
 0x43e   : > { %2058 = vmax.xlane.f32.xlu1 %v5141_v50 }
 0x440   : > { %2060 = vmax.xlane.f32.xlu0 %v5149_v61 }
 0x442   : > { %2062 = vmax.xlane.f32.xlu1 %v5155_v32 }
 0x444   : > { %2064 = vmax.xlane.f32.xlu0 %v5161_v47 }
 0x446   : > { %2066 = vmax.xlane.f32.xlu1 %v5165_v1 }
 0x4b5   : > { %v2037_v46 = vpop.xlane.xlu0 %2036 }
 0x4b6   : > { %v5174_v0 = vmax.f32 %v5169_v10, %v2037_v46  ;;  %v5282_v46 = vld [vmem:[#allocation3 + $0x68] sm:$0xff] }
 0x4b7   : > { %v2041_v37 = vpop.xlane.xlu1 %2040 }
 0x4b8   : > { %v2100_v55 = vsub.f32 %v5169_v10, %v5174_v0  ;;  %2373 = vst.msk [vmem:[#allocation3] sm:$0xff] %vm2356_vm5, %v5174_v0  ;;  %v5183_v19 = vmax.f32 %v5171_v29, %v2041_v37  ;;  %2150 = vperm.xlu0 %3731, %v5174_v0  }
 0x4b9   : > { %v2039_v60 = vpop.xlane.xlu0 %2038 }
 0x4ba   : > { %2375 = vst.msk [vmem:[#allocation3 + $0x10] sm:$0xff] %vm2356_vm5, %v5183_v19  ;;  %v5193_v2 = vmax.f32 %v5176_v4, %v2039_v60 }
 0x4bb   : > { %v2043_v59 = vpop.xlane.xlu1 %2042 }
 0x4bc   : > { %v2101_v31 = vsub.f32 %v5176_v4, %v5193_v2  ;;  %2374 = vst.msk [vmem:[#allocation3 + $0x8] sm:$0xff] %vm2356_vm5, %v5193_v2  ;;  %v5202_v18 = vmax.f32 %v5186_v15, %v2043_v59  ;;  %2155 = vperm.xlu1 %3732, %v5193_v2  }
 0x4bd   : > { %v2045_v40 = vpop.xlane.xlu0 %2044 }
 0x4be   : > { %2376 = vst.msk [vmem:[#allocation3 + $0x18] sm:$0xff] %vm2356_vm5, %v5202_v18  ;;  %v5212_v23 = vmax.f32 %v5195_v25, %v2045_v40 }
 0x4bf   : > { %v2047_v35 = vpop.xlane.xlu1 %2046 }
 0x4c0   : > { %v5217_v43 = vmax.f32 %v5205_v33, %v2047_v35  ;;  %2160 = vperm.xlu1 %3732, %v5183_v19   ;;  %2377 = vst.msk [vmem:[#allocation3 + $0x20] sm:$0xff] %vm2356_vm5, %v5212_v23  ;;  %v5292_v35 = vld [vmem:[#allocation3 + $0x70] sm:$0xff]  ;;  %v5606_v10 = vsub.f32 %v5195_v25, %v5212_v23 }
 0x4c1   : > { %v2049_v48 = vpop.xlane.xlu0 %2048 }
 0x4c2   : > { %2378 = vst.msk [vmem:[#allocation3 + $0x28] sm:$0xff] %vm2356_vm5, %v5217_v43  ;;  %v5231_v52 = vmax.f32 %v5214_v42, %v2049_v48  ;;  %v2124_v0 = vmul.f32 1.442695, %v5606_v10 }
 0x4c3   : > { %v2051_v36 = vpop.xlane.xlu1 %2050 }
 0x4c4   : > { %v5236_v9 = vmax.f32 %v5224_v12, %v2051_v36  ;;  %2165 = vperm.xlu1 %3732, %v5202_v18   ;;  %2379 = vst.msk [vmem:[#allocation3 + $0x30] sm:$0xff] %vm2356_vm5, %v5231_v52  ;;  %v5608_v25 = vsub.f32 %v5214_v42, %v5231_v52 }
 0x4c5   : > { %v2053_v16 = vpop.xlane.xlu0 %2052 }
 0x4c6   : > { %2380 = vst.msk [vmem:[#allocation3 + $0x38] sm:$0xff] %vm2356_vm5, %v5236_v9  ;;  %v5250_v51 = vmax.f32 %v5233_v56, %v2053_v16  ;;  %v5302_v16 = vld [vmem:[#allocation3 + $0x78] sm:$0xff] }
 0x4c7   : > { %v2055_v53 = vpop.xlane.xlu1 %2054 }
 0x4c8   : > { %v5255_v8 = vmax.f32 %v5243_v44, %v2055_v53  ;;  %2170 = vperm.xlu1 %3732, %v5212_v23   ;;  %2381 = vst.msk [vmem:[#allocation3 + $0x40] sm:$0xff] %vm2356_vm5, %v5250_v51  ;;  %v2128_v23 = vmul.f32 1.442695, %v5608_v25  ;;  %v5610_v42 = vsub.f32 %v5233_v56, %v5250_v51 }
 0x4c9   : > { %v2057_v20 = vpop.xlane.xlu0 %2056 }
 0x4ca   : > { %2382 = vst.msk [vmem:[#allocation3 + $0x48] sm:$0xff] %vm2356_vm5, %v5255_v8  ;;  %2195 = vperm.xlu0 %3731, %v5255_v8   ;;  %v5270_v6 = vmax.f32 %v5252_v38, %v2057_v20 }
 0x4cb   : > { %v2059_v26 = vpop.xlane.xlu1 %2058 }
 0x4cc   : > { %v5275_v39 = vmax.f32 %v5262_v5, %v2059_v26  ;;  %2175 = vperm.xlu1 %3732, %v5217_v43   ;;  %2383 = vst.msk [vmem:[#allocation3 + $0x50] sm:$0xff] %vm2356_vm5, %v5270_v6 }
 0x4cd   : > { %v2061_v37 = vpop.xlane.xlu0 %2060 }
 0x4ce   : > { %2384 = vst.msk [vmem:[#allocation3 + $0x58] sm:$0xff] %vm2356_vm5, %v5275_v39  ;;  %2205 = vperm.xlu0 %3731, %v5275_v39   ;;  %v5290_v59 = vmax.f32 %v5272_v58, %v2061_v37  ;;  %v5613_v56 = vsub.f32 %v5262_v5, %v5275_v39 }
 0x4cf   : > { %v2063_v40 = vpop.xlane.xlu1 %2062 }
 0x4d0   : > { %v5295_v48 = vmax.f32 %v5282_v46, %v2063_v40  ;;  %2180 = vperm.xlu1 %3732, %v5231_v52   ;;  %2385 = vst.msk [vmem:[#allocation3 + $0x60] sm:$0xff] %vm2356_vm5, %v5290_v59  ;;  %v2132_v52 = vmul.f32 1.442695, %v5610_v42 }
 0x4d1   : > { %v2065_v53 = vpop.xlane.xlu0 %2064 }
 0x4d2   : > { %2386 = vst.msk [vmem:[#allocation3 + $0x68] sm:$0xff] %vm2356_vm5, %v5295_v48  ;;  %2215 = vperm.xlu0 %3731, %v5295_v48   ;;  %v5310_v26 = vmax.f32 %v5292_v35, %v2065_v53 }
 0x4d3   : > { %v2067_v37 = vpop.xlane.xlu1 %2066 }
 0x4d4   : > { %v5313_v40 = vmax.f32 %v5302_v16, %v2067_v37  ;;  %2185 = vperm.xlu1 %3732, %v5236_v9   ;;  %2387 = vst.msk [vmem:[#allocation3 + $0x70] sm:$0xff] %vm2356_vm5, %v5310_v26 }
 0x4d6   : > { %2388 = vst.msk [vmem:[#allocation3 + $0x78] sm:$0xff] %vm2356_vm5, %v5313_v40  ;;  %2225 = vperm.xlu0 %3731, %v5313_v40  }
 0x4d8   : > { %2190 = vperm.xlu1 %3732, %v5250_v51   ;;  %v2138_v51 = vmul.f32 1.442695, %v5613_v56  ;;  %v4026_v56 = vmov (!%p2743_p0), 0  }
 0x4da   : > { %3797 = vset.pattern.permute.xlu0 (!%p2743_p0), %v4026_v56 }
 0x4dc   : > { %2200 = vperm.xlu1 %3732, %v5270_v6  }
 0x4e0   : > { %2210 = vperm.xlu1 %3732, %v5290_v59  }
 0x4e4   : > { %2220 = vperm.xlu1 %3732, %v5310_v26  }
 0x4e8   : > { %3798 = vset.pattern.permute.xlu1 (!%p2743_p0), %v4026_v56 }
 0x537   : > { %v2151_v53 = vpop.permute.xlu0 %2150 }
 0x538   : > { %v2228_v37 = vsub.f32 %v5041_v11, %v2151_v53 }
 0x53a   : > { %v2244_v36 = vmul.f32 1.442695, %v2228_v37 }
 0x53b   : > { %v2156_v60 = vpop.permute.xlu1 %2155 }
 0x53c   : > { %3733 = vpow2.f32 %v2244_v36  ;;  %v2229_v20 = vsub.f32 %v5060_v24, %v2156_v60 }
 0x53e   : > { %v2246_v7 = vmul.f32 1.442695, %v2229_v20 }
 0x53f   : > { %v2161_v62 = vpop.permute.xlu1 %2160 }
 0x540   : > { %3735 = vpow2.f32 %v2246_v7  ;;  %v2230_v13 = vsub.f32 %v5052_v14, %v2161_v62 }
 0x542   : > { %v2248_v17 = vmul.f32 1.442695, %v2230_v13 }
 0x543   : > { %v2166_v27 = vpop.permute.xlu1 %2165 }
 0x544   : > { %3737 = vpow2.f32 %v2248_v17  ;;  %v2231_v54 = vsub.f32 %v5067_v30, %v2166_v27 }
 0x546   : > { %v3734_v45 = vpop.eup %3733  ;;  %v2250_v3 = vmul.f32 1.442695, %v2231_v54 }
 0x547   : > { %v2171_v22 = vpop.permute.xlu1 %2170  ;;  %2276 = vadd.xlane.f32.xlu1 %v3734_v45 }
 0x548   : > { %3739 = vpow2.f32 %v2250_v3  ;;  %v2232_v11 = vsub.f32 %v5083_v21, %v2171_v22 }
 0x549   : > { %v2196_v24 = vpop.permute.xlu0 %2195 }
 0x54a   : > { %v3736_v36 = vpop.eup %3735  ;;  %v2252_v53 = vmul.f32 1.442695, %v2232_v11  ;;  %v2237_v21 = vsub.f32 %v5125_v49, %v2196_v24 }
 0x54b   : > { %2278 = vadd.xlane.f32.xlu0 %v3736_v36  ;;  %v2176_v60 = vpop.permute.xlu1 %2175 }
 0x54c   : > { %3741 = vpow2.f32 %v2252_v53  ;;  %v2233_v14 = vsub.f32 %v5087_v34, %v2176_v60  ;;  %v2262_v37 = vmul.f32 1.442695, %v2237_v21 }
 0x54d   : > { %v2206_v30 = vpop.permute.xlu0 %2205 }
 0x54e   : > { %v3738_v13 = vpop.eup %3737  ;;  %v2254_v62 = vmul.f32 1.442695, %v2233_v14  ;;  %v2239_v11 = vsub.f32 %v5141_v50, %v2206_v30 }
 0x54f   : > { %2280 = vadd.xlane.f32.xlu0 %v3738_v13  ;;  %v2181_v17 = vpop.permute.xlu1 %2180 }
 0x550   : > { %3743 = vpow2.f32 %v2254_v62  ;;  %v2234_v54 = vsub.f32 %v5100_v63, %v2181_v17  ;;  %v2266_v49 = vmul.f32 1.442695, %v2239_v11 }
 0x551   : > { %v2216_v20 = vpop.permute.xlu0 %2215 }
 0x552   : > { %v3740_v45 = vpop.eup %3739  ;;  %v2256_v3 = vmul.f32 1.442695, %v2234_v54  ;;  %v2241_v24 = vsub.f32 %v5155_v32, %v2216_v20 }
 0x553   : > { %v2186_v22 = vpop.permute.xlu1 %2185  ;;  %2282 = vadd.xlane.f32.xlu1 %v3740_v45 }
 0x554   : > { %3745 = vpow2.f32 %v2256_v3  ;;  %v2235_v27 = vsub.f32 %v5105_v28, %v2186_v22  ;;  %v2270_v50 = vmul.f32 1.442695, %v2241_v24 }
 0x555   : > { %v2226_v28 = vpop.permute.xlu0 %2225 }
 0x556   : > { %v3742_v7 = vpop.eup %3741  ;;  %v2258_v34 = vmul.f32 1.442695, %v2235_v27  ;;  %v2243_v30 = vsub.f32 %v5165_v1, %v2226_v28 }
 0x557   : > { %2284 = vadd.xlane.f32.xlu0 %v3742_v7  ;;  %v2191_v36 = vpop.permute.xlu1 %2190 }
 0x558   : > { %3747 = vpow2.f32 %v2258_v34  ;;  %v2236_v63 = vsub.f32 %v5119_v57, %v2191_v36  ;;  %v2274_v32 = vmul.f32 1.442695, %v2243_v30  ;;  %v2118_v36 = vmul.f32 1.442695, %v2101_v31  ;;  %v2309_v31 = vld [vmem:[#allocation4 + $0x8] sm:$0xff] }
 0x559   : > { %3749 = vpow2.f32 %v2262_v37 }
 0x55a   : > { %v3744_v53 = vpop.eup %3743  ;;  %v2260_v60 = vmul.f32 1.442695, %v2236_v63  ;;  %v5604_v63 = vsub.f32 %v5171_v29, %v5183_v19  ;;  %v5607_v29 = vsub.f32 %v5205_v33, %v5217_v43  ;;  %v2311_v33 = vld [vmem:[#allocation4 + $0x18] sm:$0xff] }
 0x55b   : > { %v2201_v14 = vpop.permute.xlu1 %2200  ;;  %2286 = vadd.xlane.f32.xlu1 %v3744_v53 }
 0x55c   : > { %3751 = vpow2.f32 %v2260_v60  ;;  %v2238_v13 = vsub.f32 %v5135_v41, %v2201_v14  ;;  %v2120_v53 = vmul.f32 1.442695, %v5604_v63  ;;  %v5605_v60 = vsub.f32 %v5186_v15, %v5202_v18  ;;  %v2308_v14 = vld [vmem:[#allocation4] sm:$0xff] }
 0x55d   : > { %3753 = vpow2.f32 %v2266_v49  ;;  %v2126_v19 = vmul.f32 1.442695, %v5607_v29 }
 0x55e   : > { %v3746_v62 = vpop.eup %3745  ;;  %v2264_v17 = vmul.f32 1.442695, %v2238_v13  ;;  %v2122_v49 = vmul.f32 1.442695, %v5605_v60 }
 0x55f   : > { %2288 = vadd.xlane.f32.xlu0 %v3746_v62  ;;  %v2211_v57 = vpop.permute.xlu1 %2210  ;;  %v2310_v62 = vld [vmem:[#allocation4 + $0x10] sm:$0xff] }
 0x560   : > { %3755 = vpow2.f32 %v2264_v17  ;;  %v2240_v54 = vsub.f32 %v5149_v61, %v2211_v57 }
 0x561   : > { %3757 = vpow2.f32 %v2270_v50 }
 0x562   : > { %v3748_v45 = vpop.eup %3747  ;;  %v2268_v3 = vmul.f32 1.442695, %v2240_v54  ;;  %v5609_v54 = vsub.f32 %v5224_v12, %v5236_v9 }
 0x563   : > { %v2221_v21 = vpop.permute.xlu1 %2220  ;;  %2290 = vadd.xlane.f32.xlu1 %v3748_v45  ;;  %v3750_v22 = vpop.eup %3749 }
 0x564   : > { %3759 = vpow2.f32 %v2268_v3  ;;  %v2242_v41 = vsub.f32 %v5161_v47, %v2221_v21  ;;  %v2116_v47 = vmul.f32 1.442695, %v2100_v55  ;;  %v2130_v45 = vmul.f32 1.442695, %v5609_v54 }
 0x565   : > { %3761 = vpow2.f32 %v2274_v32 }
 0x566   : > { %v3752_v27 = vpop.eup %3751  ;;  %v2272_v7 = vmul.f32 1.442695, %v2242_v41  ;;  %v2312_v41 = vld [vmem:[#allocation4 + $0x20] sm:$0xff] }
 0x567   : > { %2292 = vadd.xlane.f32.xlu0 %v3752_v27  ;;  %2294 = vadd.xlane.f32.xlu1 %v3750_v22  ;;  %v3754_v1 = vpop.eup %3753  ;;  %v5611_v27 = vsub.f32 %v5243_v44, %v5255_v8 }
 0x568   : > { %3763 = vpow2.f32 %v2272_v7 }
 0x569   : > { %3765 = vpow2.f32 %v2116_v47  ;;  %v2134_v7 = vmul.f32 1.442695, %v5611_v27  ;;  %v2314_v47 = vld [vmem:[#allocation4 + $0x30] sm:$0xff] }
 0x56a   : > { %v3756_v20 = vpop.eup %3755  ;;  %3767 = vpow2.f32 %v2118_v36  ;;  %v5614_v36 = vsub.f32 %v5272_v58, %v5290_v59  ;;  %v5617_v58 = vsub.f32 %v5302_v16, %v5313_v40  ;;  %v2319_v40 = vld [vmem:[#allocation4 + $0x58] sm:$0xff] }
 0x56b   : > { %2296 = vadd.xlane.f32.xlu0 %v3756_v20  ;;  %2298 = vadd.xlane.f32.xlu1 %v3754_v1  ;;  %v3758_v61 = vpop.eup %3757  ;;  %3769 = vpow2.f32 %v2120_v53  ;;  %v2313_v20 = vld [vmem:[#allocation4 + $0x28] sm:$0xff] }
 0x56c   : > { %3771 = vpow2.f32 %v2122_v49  ;;  %v2140_v63 = vmul.f32 1.442695, %v5614_v36  ;;  %v2315_v49 = vld [vmem:[#allocation4 + $0x38] sm:$0xff]  ;;  %v2146_v59 = vmul.f32 1.442695, %v5617_v58  ;;  %v2475_v58 = vld [vmem:[#allocation5 + $0x10] sm:$0xff] (!%p2743_p0) }
 0x56d   : > { %3773 = vpow2.f32 %v2124_v0 }
 0x56e   : > { %v3760_v34 = vpop.eup %3759  ;;  %3775 = vpow2.f32 %v2126_v19 }
 0x56f   : > { %2300 = vadd.xlane.f32.xlu0 %v3760_v34  ;;  %2302 = vadd.xlane.f32.xlu1 %v3758_v61  ;;  %v3762_v37 = vpop.eup %3761  ;;  %3777 = vpow2.f32 %v2128_v23  ;;  %v5612_v61 = vsub.f32 %v5252_v38, %v5270_v6  ;;  %v5615_v38 = vsub.f32 %v5282_v46, %v5295_v48 }
 0x570   : > { %3779 = vpow2.f32 %v2130_v45 }
 0x571   : > { %3781 = vpow2.f32 %v2132_v52  ;;  %v2136_v34 = vmul.f32 1.442695, %v5612_v61  ;;  %v2142_v6 = vmul.f32 1.442695, %v5615_v38  ;;  %v2323_v52 = vld [vmem:[#allocation4 + $0x78] sm:$0xff] }
 0x572   : > { %v3764_v11 = vpop.eup %3763  ;;  %3783 = vpow2.f32 %v2134_v7 }
 0x573   : > { %2304 = vadd.xlane.f32.xlu0 %v3764_v11  ;;  %2306 = vadd.xlane.f32.xlu1 %v3762_v37  ;;  %v3766_v24 = vpop.eup %3765  ;;  %3785 = vpow2.f32 %v2136_v34 }
 0x574   : > { %v2324_v55 = vmul.f32 %v3766_v24, %v2308_v14  ;;  %v3768_v4 = vpop.eup %3767  ;;  %3787 = vpow2.f32 %v2138_v51  ;;  %v5616_v24 = vsub.f32 %v5292_v35, %v5310_v26 }
 0x575   : > { %v2325_v15 = vmul.f32 %v3768_v4, %v2309_v31  ;;  %v3770_v18 = vpop.eup %3769  ;;  %3789 = vpow2.f32 %v2140_v63  ;;  %v2317_v4 = vld [vmem:[#allocation4 + $0x48] sm:$0xff] }
 0x576   : > { %v2326_v50 = vmul.f32 %v3770_v18, %v2310_v62  ;;  %v3772_v30 = vpop.eup %3771  ;;  %v2144_v14 = vmul.f32 1.442695, %v5616_v24  ;;  %3791 = vpow2.f32 %v2142_v6 }
 0x577   : > { %v2327_v3 = vmul.f32 %v3772_v30, %v2311_v33  ;;  %v3774_v32 = vpop.eup %3773  ;;  %v2320_v33 = vld [vmem:[#allocation4 + $0x60] sm:$0xff] }
 0x578   : > { %v2328_v12 = vmul.f32 %v3774_v32, %v2312_v41  ;;  %v3776_v9 = vpop.eup %3775  ;;  %3793 = vpow2.f32 %v2144_v14  ;;  %v2393_v14 = vld [vmem:[#allocation3] sm:$0xff] (!%p2743_p0) }
 0x579   : > { %v2329_v44 = vmul.f32 %v3776_v9, %v2313_v20  ;;  %v3778_v8 = vpop.eup %3777  ;;  %3795 = vpow2.f32 %v2146_v59 }
 0x57a   : > { %v2330_v5 = vmul.f32 %v3778_v8, %v2314_v47  ;;  %v3780_v39 = vpop.eup %3779 }
 0x57b   : > { %v3782_v0 = vpop.eup %3781  ;;  %v2331_v46 = vmul.f32 %v3780_v39, %v2315_v49  ;;  %v2395_v39 = vld [vmem:[#allocation3 + $0x10] sm:$0xff] (!%p2743_p0) }
 0x57c   : > { %v3784_v48 = vpop.eup %3783 }
 0x57d   : > { %v2333_v35 = vmul.f32 %v3784_v48, %v2317_v4 }
 0x5d4   : > { %v2277_v2 = vpop.xlane.xlu1 %2276 }
 0x5d5   : > { %v2340_v28 = vadd.f32 %v2324_v55, %v2277_v2  ;;  %v2316_v2 = vld [vmem:[#allocation4 + $0x40] sm:$0xff] }
 0x5d6   : > { %v2332_v26 = vmul.f32 %v3782_v0, %v2316_v2  ;;  %v2396_v0 = vld [vmem:[#allocation3 + $0x18] sm:$0xff] (!%p2743_p0)  ;;  %v2394_v2 = vld [vmem:[#allocation3 + $0x8] sm:$0xff] (!%p2743_p0) }
 0x5d7   : > { %2357 = vst.msk [vmem:[#allocation4] sm:$0xff] %vm2356_vm5, %v2340_v28  ;;  %v3786_v28 = vpop.eup %3785 }
 0x5d8   : > { %v2279_v13 = vpop.xlane.xlu0 %2278  ;;  %v3788_v29 = vpop.eup %3787 }
 0x5d9   : > { %v2341_v17 = vadd.f32 %v2325_v15, %v2279_v13  ;;  %v2318_v15 = vld [vmem:[#allocation4 + $0x50] sm:$0xff]  ;;  %v3790_v62 = vpop.eup %3789 }
 0x5da   : > { %v2334_v25 = vmul.f32 %v3786_v28, %v2318_v15  ;;  %v3792_v23 = vpop.eup %3791  ;;  %v2336_v32 = vmul.f32 %v3790_v62, %v2320_v33 }
 0x5db   : > { %2358 = vst.msk [vmem:[#allocation4 + $0x8] sm:$0xff] %vm2356_vm5, %v2341_v17  ;;  %v2335_v17 = vmul.f32 %v3788_v29, %v2319_v40  ;;  %v3794_v45 = vpop.eup %3793 }
 0x5dc   : > { %v2281_v57 = vpop.xlane.xlu0 %2280 }
 0x5dd   : > { %v2342_v43 = vadd.f32 %v2326_v50, %v2281_v57  ;;  %v2321_v57 = vld [vmem:[#allocation4 + $0x68] sm:$0xff] }
 0x5de   : > { %v2409_v51 = vld [vmem:[#allocation4] sm:$0xff] (!%p2743_p0) }
 0x5df   : > { %2359 = vst.msk [vmem:[#allocation4 + $0x10] sm:$0xff] %vm2356_vm5, %v2342_v43 }
 0x5e0   : > { %v2283_v21 = vpop.xlane.xlu1 %2282 }
 0x5e1   : > { %v2343_v22 = vadd.f32 %v2327_v3, %v2283_v21  ;;  %v2337_v3 = vmul.f32 %v3792_v23, %v2321_v57  ;;  %v3796_v21 = vpop.eup %3795 }
 0x5e2   : > { %v2410_v8 = vld [vmem:[#allocation4 + $0x8] sm:$0xff] (!%p2743_p0) }
 0x5e3   : > { %2360 = vst.msk [vmem:[#allocation4 + $0x18] sm:$0xff] %vm2356_vm5, %v2343_v22  ;;  %v2322_v22 = vld [vmem:[#allocation4 + $0x70] sm:$0xff] }
 0x5e4   : > { %v2285_v1 = vpop.xlane.xlu0 %2284  ;;  %v2338_v9 = vmul.f32 %v3794_v45, %v2322_v22 }
 0x5e5   : > { %v2344_v37 = vadd.f32 %v2328_v12, %v2285_v1  ;;  %v2339_v12 = vmul.f32 %v3796_v21, %v2323_v52  ;;  %v2478_v21 = vld [vmem:[#allocation5 + $0x28] sm:$0xff] (!%p2743_p0) }
 0x5e7   : > { %2361 = vst.msk [vmem:[#allocation4 + $0x20] sm:$0xff] %vm2356_vm5, %v2344_v37  ;;  %v2411_v37 = vld [vmem:[#allocation4 + $0x10] sm:$0xff] (!%p2743_p0) }
 0x5e8   : > { %v2287_v11 = vpop.xlane.xlu1 %2286  ;;  %3799 = vlog2.f32 (!%p2743_p0), %v2411_v37  ;;  %v2480_v37 = vld [vmem:[#allocation5 + $0x38] sm:$0xff] (!%p2743_p0) }
 0x5e9   : > { %v2345_v53 = vadd.f32 %v2329_v44, %v2287_v11  ;;  %3801 = vlog2.f32 (!%p2743_p0), %v2409_v51  ;;  %v2402_v51 = vld [vmem:[#allocation3 + $0x48] sm:$0xff] (!%p2743_p0) }
 0x5ea   : > { %v2412_v44 = vld [vmem:[#allocation4 + $0x18] sm:$0xff] (!%p2743_p0) }
 0x5eb   : > { %2362 = vst.msk [vmem:[#allocation4 + $0x28] sm:$0xff] %vm2356_vm5, %v2345_v53  ;;  %3803 = vlog2.f32 (!%p2743_p0), %v2412_v44 }
 0x5ec   : > { %v2289_v60 = vpop.xlane.xlu0 %2288  ;;  %3805 = vlog2.f32 (!%p2743_p0), %v2410_v8 }
 0x5ed   : > { %v2346_v10 = vadd.f32 %v2330_v5, %v2289_v60 }
 0x5ee   : > { %v2413_v47 = vld [vmem:[#allocation4 + $0x20] sm:$0xff] (!%p2743_p0) }
 0x5ef   : > { %2363 = vst.msk [vmem:[#allocation4 + $0x30] sm:$0xff] %vm2356_vm5, %v2346_v10 }
 0x5f0   : > { %v2291_v55 = vpop.xlane.xlu1 %2290 }
 0x5f1   : > { %v2347_v31 = vadd.f32 %v2331_v46, %v2291_v55  ;;  %v2473_v55 = vld [vmem:[#allocation5] sm:$0xff] (!%p2743_p0) }
 0x5f2   : > { %v2414_v11 = vld [vmem:[#allocation4 + $0x28] sm:$0xff] (!%p2743_p0)  ;;  %v3800_v5 = vpop.eup (!%p2743_p0), %3799 }
 0x5f3   : > { %2364 = vst.msk [vmem:[#allocation4 + $0x38] sm:$0xff] %vm2356_vm5, %v2347_v31  ;;  %3807 = vlog2.f32 (!%p2743_p0), %v2414_v11  ;;  %v3802_v49 = vpop.eup (!%p2743_p0), %3801  ;;  %v2430_v24 = vmul.f32 (!%p2743_p0), 0.6931472, %v3800_v5  ;;  %v2479_v11 = vld [vmem:[#allocation5 + $0x30] sm:$0xff] (!%p2743_p0)  ;;  %v2482_v5 = vld [vmem:[#allocation5 + $0x48] sm:$0xff] (!%p2743_p0) }
 0x5f4   : > { %v2295_v19 = vpop.xlane.xlu1 %2294  ;;  %v2293_v16 = vpop.xlane.xlu0 %2292  ;;  %3809 = vlog2.f32 (!%p2743_p0), %v2413_v47  ;;  %v2426_v59 = vmul.f32 (!%p2743_p0), 0.6931472, %v3802_v49  ;;  %v2401_v47 = vld [vmem:[#allocation3 + $0x40] sm:$0xff] (!%p2743_p0) }
 0x5f5   : > { %v2349_v18 = vadd.f32 %v2333_v35, %v2295_v19  ;;  %v2348_v13 = vadd.f32 %v2332_v26, %v2293_v16  ;;  %v3804_v10 = vpop.eup (!%p2743_p0), %3803  ;;  %v2459_v48 = vadd.f32 (!%p2743_p0), %v2430_v24, %v2395_v39  ;;  %v2476_v26 = vld [vmem:[#allocation5 + $0x18] sm:$0xff] (!%p2743_p0)  ;;  %v2398_v19 = vld [vmem:[#allocation3 + $0x28] sm:$0xff] (!%p2743_p0) }
 0x5f6   : > { %v2415_v63 = vld [vmem:[#allocation4 + $0x30] sm:$0xff] (!%p2743_p0)  ;;  %v3806_v46 = vpop.eup (!%p2743_p0), %3805  ;;  %v2432_v4 = vmul.f32 (!%p2743_p0), 0.6931472, %v3804_v10  ;;  %v2457_v35 = vadd.f32 (!%p2743_p0), %v2426_v59, %v2393_v14  ;;  %v2481_v14 = vld [vmem:[#allocation5 + $0x40] sm:$0xff] (!%p2743_p0) }
 0x5f7   : > { %2366 = vst.msk [vmem:[#allocation4 + $0x48] sm:$0xff] %vm2356_vm5, %v2349_v18  ;;  %2365 = vst.msk [vmem:[#allocation4 + $0x40] sm:$0xff] %vm2356_vm5, %v2348_v13  ;;  %v2428_v29 = vmul.f32 (!%p2743_p0), 0.6931472, %v3806_v46  ;;  %v2491_v15 = vsub.f32 (!%p2743_p0), %v2459_v48, %v2475_v58  ;;  %v2474_v13 = vld [vmem:[#allocation5 + $0x8] sm:$0xff] (!%p2743_p0)  ;;  %v2403_v10 = vld [vmem:[#allocation3 + $0x50] sm:$0xff] (!%p2743_p0) }
 0x5f8   : > { %v2299_v50 = vpop.xlane.xlu1 %2298  ;;  %v2297_v30 = vpop.xlane.xlu0 %2296  ;;  %v2460_v18 = vadd.f32 (!%p2743_p0), %v2432_v4, %v2396_v0  ;;  %v2489_v23 = vsub.f32 (!%p2743_p0), %v2457_v35, %v2473_v55  ;;  %v2484_v55 = vld [vmem:[#allocation5 + $0x58] sm:$0xff] (!%p2743_p0)  ;;  %v2483_v35 = vld [vmem:[#allocation5 + $0x50] sm:$0xff] (!%p2743_p0) }
 0x5f9   : > { %v2351_v43 = vadd.f32 %v2335_v17, %v2299_v50  ;;  %v2350_v54 = vadd.f32 %v2334_v25, %v2297_v30  ;;  %v2397_v17 = vld [vmem:[#allocation3 + $0x20] sm:$0xff] (!%p2743_p0)  ;;  %v2458_v50 = vadd.f32 (!%p2743_p0), %v2428_v29, %v2394_v2  ;;  %2517 = vperm.xlu1 (!%p2743_p0), %3798, %v2491_v15   ;;  %v2406_v2 = vld [vmem:[#allocation3 + $0x68] sm:$0xff] (!%p2743_p0) }
 0x5fa   : > { %v2416_v36 = vld [vmem:[#allocation4 + $0x38] sm:$0xff] (!%p2743_p0)  ;;  %v2492_v33 = vsub.f32 (!%p2743_p0), %v2460_v18, %v2476_v26  ;;  %2507 = vperm.xlu0 (!%p2743_p0), %3797, %v2489_v23   ;;  %v2405_v26 = vld [vmem:[#allocation3 + $0x60] sm:$0xff] (!%p2743_p0)  ;;  %v2486_v15 = vld [vmem:[#allocation5 + $0x68] sm:$0xff] (!%p2743_p0) }
 0x5fb   : > { %2368 = vst.msk [vmem:[#allocation4 + $0x58] sm:$0xff] %vm2356_vm5, %v2351_v43  ;;  %2367 = vst.msk [vmem:[#allocation4 + $0x50] sm:$0xff] %vm2356_vm5, %v2350_v54  ;;  %3811 = vlog2.f32 (!%p2743_p0), %v2416_v36 }
 0x5fc   : > { %v2303_v41 = vpop.xlane.xlu1 %2302  ;;  %v2301_v42 = vpop.xlane.xlu0 %2300  ;;  %3813 = vlog2.f32 (!%p2743_p0), %v2415_v63 }
 0x5fd   : > { %v2353_v27 = vadd.f32 %v2337_v3, %v2303_v41  ;;  %v2352_v7 = vadd.f32 %v2336_v32, %v2301_v42  ;;  %2392 = sbr.rel (%p2743_p0) target bundleno = 1694 (0x69e), region = 48  ;;  %v3808_v28 = vpop.eup (!%p2743_p0), %3807  ;;  %v2490_v32 = vsub.f32 (!%p2743_p0), %v2458_v50, %v2474_v13  ;;  %v2400_v42 = vld [vmem:[#allocation3 + $0x38] sm:$0xff] (!%p2743_p0)  ;;  %2522 = vperm.xlu1 (!%p2743_p0), %3798, %v2492_v33  }
 0x5fe   : > { %v2418_v53 = vld [vmem:[#allocation4 + $0x48] sm:$0xff] (!%p2743_p0)  ;;  %v2417_v38 = vld [vmem:[#allocation4 + $0x40] sm:$0xff] (!%p2743_p0)  ;;  %v3810_v40 = vpop.eup (!%p2743_p0), %3809  ;;  %v2436_v62 = vmul.f32 (!%p2743_p0), 0.6931472, %v3808_v28  ;;  %v2408_v13 = vld [vmem:[#allocation3 + $0x78] sm:$0xff] (!%p2743_p0) }
 0x5ff   : > { %2370 = vst.msk [vmem:[#allocation4 + $0x68] sm:$0xff] %vm2356_vm5, %v2353_v27  ;;  %2369 = vst.msk [vmem:[#allocation4 + $0x60] sm:$0xff] %vm2356_vm5, %v2352_v7  ;;  %3815 = vlog2.f32 (!%p2743_p0), %v2418_v53  ;;  %v2434_v30 = vmul.f32 (!%p2743_p0), 0.6931472, %v3810_v40  ;;  %v2477_v7 = vld [vmem:[#allocation5 + $0x20] sm:$0xff] (!%p2743_p0)  ;;  %2512 = vperm.xlu0 (!%p2743_p0), %3797, %v2490_v32  }
 0x600   : > { %v2307_v1 = vpop.xlane.xlu1 %2306  ;;  %v2305_v20 = vpop.xlane.xlu0 %2304  ;;  %3817 = vlog2.f32 (!%p2743_p0), %v2417_v38  ;;  %v2462_v43 = vadd.f32 (!%p2743_p0), %v2436_v62, %v2398_v19 }
 0x601   : > { %v2355_v61 = vadd.f32 %v2339_v12, %v2307_v1  ;;  %v2354_v34 = vadd.f32 %v2338_v9, %v2305_v20  ;;  %v2461_v41 = vadd.f32 (!%p2743_p0), %v2434_v30, %v2397_v17  ;;  %v2399_v12 = vld [vmem:[#allocation3 + $0x30] sm:$0xff] (!%p2743_p0)  ;;  %v2485_v17 = vld [vmem:[#allocation5 + $0x60] sm:$0xff] (!%p2743_p0) }
 0x602   : > { %v2420_v6 = vld [vmem:[#allocation4 + $0x58] sm:$0xff] (!%p2743_p0)  ;;  %v2419_v60 = vld [vmem:[#allocation4 + $0x50] sm:$0xff] (!%p2743_p0)  ;;  %v2494_v9 = vsub.f32 (!%p2743_p0), %v2462_v43, %v2478_v21 }
 0x603   : > { %2372 = vst.msk [vmem:[#allocation4 + $0x78] sm:$0xff] %vm2356_vm5, %v2355_v61  ;;  %2371 = vst.msk [vmem:[#allocation4 + $0x70] sm:$0xff] %vm2356_vm5, %v2354_v34  ;;  %3819 = vlog2.f32 (!%p2743_p0), %v2420_v6  ;;  %v2493_v34 = vsub.f32 (!%p2743_p0), %v2461_v41, %v2477_v7  ;;  %v2487_v43 = vld [vmem:[#allocation5 + $0x70] sm:$0xff] (!%p2743_p0) }
 0x604   : > { %3821 = vlog2.f32 %v2419_v60  ;;  %2532 = vperm.xlu1 %3798, %v2494_v9   ;;  %v2404_v60 = vld [vmem:[#allocation3 + $0x58] sm:$0xff] }
 0x605   : > { %v3812_v25 = vpop.eup %3811  ;;  %2527 = vperm.xlu0 %3797, %v2493_v34  }
 0x606   : > { %v2422_v31 = vld [vmem:[#allocation4 + $0x68] sm:$0xff]  ;;  %v2421_v16 = vld [vmem:[#allocation4 + $0x60] sm:$0xff]  ;;  %v3814_v57 = vpop.eup %3813  ;;  %v2440_v54 = vmul.f32 0.6931472, %v3812_v25  ;;  %v2407_v25 = vld [vmem:[#allocation3 + $0x70] sm:$0xff] }
 0x607   : > { %3823 = vlog2.f32 %v2422_v31  ;;  %v2438_v52 = vmul.f32 0.6931472, %v3814_v57  ;;  %v2488_v57 = vld [vmem:[#allocation5 + $0x78] sm:$0xff] }
 0x608   : > { %3825 = vlog2.f32 %v2421_v16  ;;  %v2464_v1 = vadd.f32 %v2440_v54, %v2400_v42 }
 0x609   : > { %v3816_v3 = vpop.eup %3815  ;;  %v2463_v56 = vadd.f32 %v2438_v52, %v2399_v12 }
 0x60a   : > { %v2424_v45 = vld [vmem:[#allocation4 + $0x78] sm:$0xff]  ;;  %v2423_v22 = vld [vmem:[#allocation4 + $0x70] sm:$0xff]  ;;  %v3818_v27 = vpop.eup %3817  ;;  %v2444_v20 = vmul.f32 0.6931472, %v3816_v3  ;;  %v2496_v36 = vsub.f32 %v2464_v1, %v2480_v37 }
 0x60b   : > { %3827 = vlog2.f32 %v2424_v45  ;;  %v2442_v44 = vmul.f32 0.6931472, %v3818_v27  ;;  %v2495_v6 = vsub.f32 %v2463_v56, %v2479_v11 }
 0x60c   : > { %3829 = vlog2.f32 %v2423_v22  ;;  %v2466_v63 = vadd.f32 %v2444_v20, %v2402_v51  ;;  %2542 = vperm.xlu1 %3798, %v2496_v36  }
 0x60d   : > { %v3820_v61 = vpop.eup %3819  ;;  %v2465_v39 = vadd.f32 %v2442_v44, %v2401_v47  ;;  %2537 = vperm.xlu0 %3797, %v2495_v6  }
 0x60e   : > { %v3822_v8 = vpop.eup %3821  ;;  %v2448_v53 = vmul.f32 0.6931472, %v3820_v61  ;;  %v2498_v58 = vsub.f32 %v2466_v63, %v2482_v5 }
 0x60f   : > { %v2446_v49 = vmul.f32 0.6931472, %v3822_v8  ;;  %v2497_v48 = vsub.f32 %v2465_v39, %v2481_v14 }
 0x610   : > { %v2468_v59 = vadd.f32 %v2448_v53, %v2404_v60  ;;  %2552 = vperm.xlu1 %3798, %v2498_v58  }
 0x611   : > { %v3824_v38 = vpop.eup %3823  ;;  %v2467_v4 = vadd.f32 %v2446_v49, %v2403_v10  ;;  %2547 = vperm.xlu0 %3797, %v2497_v48  }
 0x612   : > { %v3826_v24 = vpop.eup %3825  ;;  %v2452_v0 = vmul.f32 0.6931472, %v3824_v38  ;;  %v2500_v29 = vsub.f32 %v2468_v59, %v2484_v55 }
 0x613   : > { %v2450_v31 = vmul.f32 0.6931472, %v3826_v24  ;;  %v2499_v40 = vsub.f32 %v2467_v4, %v2483_v35 }
 0x614   : > { %v2470_v19 = vadd.f32 %v2452_v0, %v2406_v2  ;;  %2562 = vperm.xlu1 %3798, %v2500_v29  }
 0x615   : > { %v3828_v46 = vpop.eup %3827  ;;  %v2469_v18 = vadd.f32 %v2450_v31, %v2405_v26  ;;  %2557 = vperm.xlu0 %3797, %v2499_v40  }
 0x616   : > { %v3830_v28 = vpop.eup %3829  ;;  %v2456_v16 = vmul.f32 0.6931472, %v3828_v46  ;;  %v2502_v23 = vsub.f32 %v2470_v19, %v2486_v15 }
 0x617   : > { %v2454_v62 = vmul.f32 0.6931472, %v3830_v28  ;;  %v2501_v30 = vsub.f32 %v2469_v18, %v2485_v17 }
 0x618   : > { %v2472_v50 = vadd.f32 %v2456_v16, %v2408_v13  ;;  %2572 = vperm.xlu1 %3798, %v2502_v23  }
 0x619   : > { %v2471_v33 = vadd.f32 %v2454_v62, %v2407_v25  ;;  %2567 = vperm.xlu0 %3797, %v2501_v30  }
 0x61a   : > { %v2504_v54 = vsub.f32 %v2472_v50, %v2488_v57 }
 0x61b   : > { %v2503_v45 = vsub.f32 %v2471_v33, %v2487_v43 }
 0x61c   : > { %2582 = vperm.xlu1 %3798, %v2504_v54  }
 0x61d   : > { %2577 = vperm.xlu0 %3797, %v2503_v45  }
 0x678   : > { %v2518_v3 = vpop.permute.xlu1 %2517 }
 0x679   : > { %2587 = vst [vmem:[%s4293_s23 + $0x10] sm:$0xff] %v2518_v3  ;;  %v2508_v32 = vpop.permute.xlu0 %2507 }
 0x67a   : > { %2585 = vst [vmem:[%s4293_s23] sm:$0xff] %v2508_v32 }
 0x67c   : > { %v2523_v21 = vpop.permute.xlu1 %2522 }
 0x67d   : > { %2588 = vst [vmem:[%s4293_s23 + $0x18] sm:$0xff] %v2523_v21 }
 0x67e   : > { %v2513_v41 = vpop.permute.xlu0 %2512 }
 0x67f   : > { %2586 = vst [vmem:[%s4293_s23 + $0x8] sm:$0xff] %v2513_v41 }
 0x683   : > { %v2533_v42 = vpop.permute.xlu1 %2532 }
 0x684   : > { %2590 = vst [vmem:[%s4293_s23 + $0x28] sm:$0xff] %v2533_v42  ;;  %v2528_v52 = vpop.permute.xlu0 %2527 }
 0x685   : > { %2589 = vst [vmem:[%s4293_s23 + $0x20] sm:$0xff] %v2528_v52 }
 0x68b   : > { %v2543_v22 = vpop.permute.xlu1 %2542 }
 0x68c   : > { %2592 = vst [vmem:[%s4293_s23 + $0x38] sm:$0xff] %v2543_v22  ;;  %v2538_v27 = vpop.permute.xlu0 %2537 }
 0x68d   : > { %2591 = vst [vmem:[%s4293_s23 + $0x30] sm:$0xff] %v2538_v27 }
 0x68f   : > { %v2553_v7 = vpop.permute.xlu1 %2552 }
 0x690   : > { %2594 = vst [vmem:[%s4293_s23 + $0x48] sm:$0xff] %v2553_v7  ;;  %v2548_v12 = vpop.permute.xlu0 %2547 }
 0x691   : > { %2593 = vst [vmem:[%s4293_s23 + $0x40] sm:$0xff] %v2548_v12 }
 0x693   : > { %v2563_v9 = vpop.permute.xlu1 %2562 }
 0x694   : > { %2596 = vst [vmem:[%s4293_s23 + $0x58] sm:$0xff] %v2563_v9  ;;  %v2558_v1 = vpop.permute.xlu0 %2557 }
 0x695   : > { %2595 = vst [vmem:[%s4293_s23 + $0x50] sm:$0xff] %v2558_v1 }
 0x697   : > { %v2573_v20 = vpop.permute.xlu1 %2572 }
 0x698   : > { %2598 = vst [vmem:[%s4293_s23 + $0x68] sm:$0xff] %v2573_v20  ;;  %v2568_v61 = vpop.permute.xlu0 %2567 }
 0x699   : > { %2597 = vst [vmem:[%s4293_s23 + $0x60] sm:$0xff] %v2568_v61 }
 0x69b   : > { %v2583_v34 = vpop.permute.xlu1 %2582 }
 0x69c   : > { %2600 = vst [vmem:[%s4293_s23 + $0x78] sm:$0xff] %v2583_v34  ;;  %v2578_v37 = vpop.permute.xlu0 %2577 }
 0x69d   : > { %2599 = vst [vmem:[%s4293_s23 + $0x70] sm:$0xff] %v2578_v37 }
 0x69e PF: > { %s2751_s15 = sshll.u32 %s4005_s16, 11  ;;  %s2615_s24 = sshll.u32 %s4293_s23, 4  ;;  %s5433_s24 = int_to_ptr.vmem [resolvable:$true] %s2615_s24 }
 0x69f   : > { %s5430_s7 = scalar_lea.hbm %s5498_s2, %s2751_s15  ;;  %s2602_s25 = scalar_lea.sflag [#allocation8], %s4276_s3 }
 0x6a0   : > { %s3891_s26 = scalar_lea.vmem %s5433_s24, 2048  ;;  %p5618_p3 = scmp.ne.s32.totalorder %s5540_s27, 0 }
 0x6a1   : > { %p3892_p5 = scmp.ne.s32.totalorder %s5433_s24, %s3891_s26  ;;  %s4027_s20 = smov [#allocation11]  }
 0x6a2   : > { %s3895_s30 = sshll.u32 %s4027_s20, 4  ;;  %s3896_s30 = int_to_ptr.vmem [resolvable:$false] %s3895_s30 }
 0x6a3   : > { %p3893_p1 = pnand %p3892_p5, %p5618_p3  ;;  %s3897_s16 = scalar_lea.vmem %s3896_s30, 4096 }
 0x6a4   : > { %p3898_p2 = scmp.lt.s32.totalorder %s5433_s24, %s3896_s30  ;;  %p3899_p11 = scmp.lt.s32.totalorder %s3897_s16, %s3891_s26 }
 0x6a5   : > { %p3894_p9 = pneg %p3893_p1 }
 0x6a6   : > { %p3900_p7 = por %p3899_p11, %p3898_p2 }
 0x6a8   : > { %p3901_p4 = pnand %p3900_p7, %p3894_p9 }
 0x6aa   : > { %3904 = shalt.err (!%p3901_p4)
}
 0x6ab   : > { %s3905_s23 = scalar_lea.hbm %s5430_s7, 2048  ;;  %s3909_s8 = scalar_lea.hbm %s5498_s2, 4096 }
 0x6ac   : > { %p3906_p8 = scmp.ne.s32.totalorder %s5430_s7, %s3905_s23  ;;  %p3910_p13 = scmp.lt.u32.totalorder %s5430_s7, %s5498_s2 }
 0x6ad   : > { %p3911_p12 = scmp.lt.u32.totalorder %s3909_s8, %s3905_s23  ;;  %p3913_p5 = scmp.lt.u32.totalorder %s3905_s23, %s5430_s7 }
 0x6ae   : > { %p3907_p10 = pnand %p3906_p8, %p5618_p3 }
 0x6af   : > { %p3912_p0 = por %p3911_p12, %p3910_p13 }
 0x6b0   : > { %p3908_p6 = pneg %p3907_p10 }
 0x6b1   : > { %p3914_p1 = por %p3913_p5, %p3912_p0 }
 0x6b3   : > { %p3915_p9 = pnand %p3914_p1, %p3908_p6 }
 0x6b5   : > { %3918 = shalt.err (!%p3915_p9)
}
 0x6b6   : > { %s4028_s15 = smov 128   ;;  %s4029_s6 = smov 8  }
 0x6b7   : > { %3556 = dma.vmem_to_hbm [thread:$0]  (%p5618_p3), %s5433_s24, 2048, %s5430_s7, %s2602_s25, %s4028_s15, %s4028_s15, %s4029_s6  }
 0x6b8 PF: > { %s5619_s28 = sld [smem:[#allocation15_spill]]  ;;  %p3570_p2 = scmp.ge.s32.totalorder %s4017_s19, 2 }
 0x6b9   : > { %s2630_s26 = sand.u32 1, %s3989_s12  }
 0x6ba   : > { %s2631_s20 = scalar_lea.sflag [#allocation8], %s2630_s26 }
 0x6be   : > { %p5620_p11 = scmp.ne.s32.totalorder %s5619_s28, 0 }
 0x6c0   : > { %p3566_p7 = pnand %p3570_p2, %p5620_p11 }
 0x6c2   : > { %3972 = dma.done.wait (!%p3566_p7), %s2631_s20, 2048  }
 0x6c3   : > { %3974 = vsyncadd (!%p3566_p7), %s2631_s20, 4294965248  ;;  %s21_s19 = sadd.s32 1, %s4017_s19   ;;  %s5621_s27 = sld [smem:[#allocation16_spill]] }
 0x6c4   : > { %p18_p4 = scmp.ge.s32.totalorder %s21_s19, 6   ;;  %s5622_s9 = smov %s3981_s10 }
 0x6c5   : > { %s5623_s10 = smov %s3985_s11  ;;  %s5624_s11 = smov %s4217_s21 }
 0x6c6   : > { %s5625_s12 = smov %s3993_s13  ;;  %s5626_s13 = smov %s3997_s14 }
 0x6c7   : > { %s5627_s14 = smov %s4225_s4  ;;  %s5628_s15 = smov %s4009_s17 }
 0x6c8   : > { %s5629_s16 = smov %s4013_s18  ;;  %s5631_s18 = smov %s5637_s22 }
 0x6c9   : > { %s5630_s17 = smov %s5621_s27  ;;  %20 = sbr.rel (!%p18_p4) target bundleno = 13 (0xd), region = 98 }
 0x6d0   :  { %2636 = vsyncpa [#allocation7], 1 }
 0x6d1   :  { %2638 = vsyncpa [#allocation7 + $0x1], 1 }
 0x6d2   :  { %2639 = vsyncpa [#allocation10], 1 }
 0x6d3   :  { %2641 = vsyncpa [#allocation10 + $0x1], 1 }
 0x6d4   :  { %2642 = vsyncpa [#allocation8], 1 }
 0x6d5   :  { %2644 = vsyncpa [#allocation8 + $0x1], 1 }

</bundles_post_ra>
